<compile_context>
chip_gen: v7x
topology: tpu7x:2x2x1
jax: 0.10.0
libtpu: 0.0.40
codegen_flags: <defaults>
</compile_context>

<pallas_src>
import functools

import jax
import jax.numpy as jnp
from jax.experimental import pallas as pl
from jax.experimental.pallas import tpu as pltpu

EPS = 1e-5
K = 3  # kernel_size


# ------------------------------------------------------------------ kernel helpers
def _conv3x3_im2col(src, wmat, th, w):
    """3x3 'SAME' conv of an already zero-padded slab as ONE im2col matmul.

    src : (th+2, w+2, cin)   activation slab
    wmat: (9*cin, cout)      bf16 weight, (dy, dx, cin)-major flattening of HWIO
    returns (th*w, cout) float32 (f32 accumulation on the MXU)
    """
    cin = src.shape[-1]
    # one width shift per dx, reused across the three dy taps (3 relayouts, not 9)
    shifted = [src[:, dx:dx + w, :] for dx in range(K)]            # 3 x (th+2, w, cin)
    cols = [shifted[dx][dy:dy + th].reshape(th * w, cin)           # cheap leading-dim ops
            for dy in range(K) for dx in range(K)]                 # dy-major == weight order
    patch = jnp.concatenate(cols, axis=-1).astype(wmat.dtype)      # (th*w, 9*cin) bf16
    return jax.lax.dot_general(patch, wmat, (((1,), (0,)), ((), ())),
                               preferred_element_type=jnp.float32)


# ------------------------------------------------------------------ pass 1 kernel
def _conv1_stats_kernel(xm_ref, xh_ref, w_ref, a_ref, st_ref):
    """conv1 on one (batch, row-block) tile + per-tile BN1 partial stats.

    xm_ref: (th, w+2, cin)  main rows of the zero-padded input (bf16)
    xh_ref: (2,  w+2, cin)  2-row bottom halo (bf16)
    w_ref : (9*cin, cout)   bf16 conv1 weight
    a_ref : (th, w, cout)   f32 pre-BN conv1 output tile
    st_ref: (1, 2, cout)    f32 per-tile [sum, sum_of_squares]
    """
    th, wp, _ = xm_ref.shape
    w = wp - 2
    cout = a_ref.shape[-1]
    src = jnp.concatenate([xm_ref[...], xh_ref[...]], axis=0)      # (th+2, w+2, cin)
    acc = _conv3x3_im2col(src, w_ref[...], th, w)                  # (th*w, cout) f32
    ssum = jnp.sum(acc, axis=0, keepdims=True)                     # (1, cout)
    ssq = jnp.sum(acc * acc, axis=0, keepdims=True)                # (1, cout)
    st_ref[0] = jnp.concatenate([ssum, ssq], axis=0)               # (2, cout)
    a_ref[...] = acc.reshape(th, w, cout).astype(a_ref.dtype)


# ------------------------------------------------------------------ pass 2 kernel
def _bn1_conv2_stats_kernel(am_ref, ah_ref, sc_ref, sh_ref, w_ref, a_ref, st_ref,
                            *, h_total):
    """BN1 + ReLU (boundary ring masked to zero) fused with conv2 + BN2 partial stats."""
    th, wp, c = am_ref.shape
    w = wp - 2
    cout = a_ref.shape[-1]
    i = pl.program_id(1)                                           # row-block index

    a1 = jnp.concatenate([am_ref[...], ah_ref[...]], axis=0).astype(jnp.float32)
    # single fused per-channel scale/shift (computed in the wrapper from the pass-1 stats)
    h = jnp.maximum(a1 * sc_ref[...].reshape(1, 1, c)
                    + sh_ref[...].reshape(1, 1, c), 0.0)

    # conv2's padding=1 zero-pads the *activation*: zero the 1-wide ring in-kernel instead
    # of materializing a padded scratch buffer.
    row = jax.lax.broadcasted_iota(jnp.int32, h.shape, 0) + i * th  # global padded row
    col = jax.lax.broadcasted_iota(jnp.int32, h.shape, 1)           # padded column
    interior = (row >= 1) & (row <= h_total) & (col >= 1) & (col <= w)
    h = jnp.where(interior, h, 0.0)

    acc = _conv3x3_im2col(h, w_ref[...], th, w)                     # (th*w, cout) f32
    ssum = jnp.sum(acc, axis=0, keepdims=True)
    ssq = jnp.sum(acc * acc, axis=0, keepdims=True)
    st_ref[0] = jnp.concatenate([ssum, ssq], axis=0)
    a_ref[...] = acc.reshape(th, w, cout).astype(a_ref.dtype)


# ------------------------------------------------------------------ pass 3 kernel
def _bn2_relu_kernel(a_ref, sc_ref, sh_ref, o_ref):
    """BN2 + ReLU on the lane-dense collapsed (row-block, W*Cout) layout."""
    x = a_ref[...].astype(jnp.float32)
    o_ref[...] = jnp.maximum(x * sc_ref[...] + sh_ref[...], 0.0)


# ------------------------------------------------------------------ wrapper
def unet_conv_block(x_nchw, params, *, row_block=8):
    """UNetConvBlock forward (training-mode BatchNorm). NCHW in, NCHW out."""
    x = jnp.transpose(x_nchw, (0, 2, 3, 1)).astype(jnp.float32)    # -> NHWC
    n, h, w, cin = x.shape
    cout = params["w1"].shape[0]

    th = row_block                                                 # rows per grid step
    while th > 2 and (h % th or th % 2):
        th //= 2
    assert h % th == 0 and th % 2 == 0, "H must be divisible by an even row block"
    nh = h // th
    cnt = n * h * w                                                # BN sample count per channel

    cparams = pltpu.CompilerParams(
        # Both grid axes are embarrassingly parallel (the BN reduction is handled through
        # per-tile partial sums) -> lets v7x split the grid across its two TensorCores.
        dimension_semantics=("parallel", "parallel"),
        vmem_limit_bytes=32 * 1024 * 1024,  # tiles are tiny; fits v7x's 64 MiB with margin
    )

    # conv weights (Cout, Cin, kH, kW) -> (kH*kW*Cin, Cout), bf16 MXU operands.
    w1 = jnp.transpose(params["w1"], (2, 3, 1, 0)).reshape(K * K * cin, cout)
    w1 = w1.astype(jnp.bfloat16)
    w2 = jnp.transpose(params["w2"], (2, 3, 1, 0)).reshape(K * K * cout, cout)
    w2 = w2.astype(jnp.bfloat16)
    # NOTE: conv biases b1/b2 are intentionally NOT applied: a per-channel bias is exactly
    # cancelled by the training-mode BatchNorm mean subtraction that follows each conv.

    def conv_pass(kernel, src, wmat, extra_args, extra_specs, c_src):
        """conv + per-tile stats pass, gridded over (batch, H row-blocks), 2-row halo."""
        return pl.pallas_call(
            kernel,
            grid=(n, nh),
            in_specs=[
                # main row block of the pre-padded activation
                pl.BlockSpec((None, th, w + 2, c_src), lambda b, i: (b, i, 0, 0)),
                # 2-row bottom halo of the same array (block size 2 along H)
                pl.BlockSpec((None, 2, w + 2, c_src),
                             lambda b, i: (b, (i + 1) * (th // 2), 0, 0)),
                *extra_specs,
                pl.BlockSpec(wmat.shape, lambda b, i: (0, 0)),
            ],
            out_specs=(
                pl.BlockSpec((None, th, w, cout), lambda b, i: (b, i, 0, 0)),
                pl.BlockSpec((None, 1, 2, cout), lambda b, i: (b, i, 0, 0)),
            ),
            out_shape=(
                jax.ShapeDtypeStruct((n, h, w, cout), jnp.float32),   # pre-BN conv output
                jax.ShapeDtypeStruct((n, nh, 2, cout), jnp.float32),  # per-tile [sum, sumsq]
            ),
            compiler_params=cparams,
        )(src, src, *extra_args, wmat)

    def bn_scale_shift(st, gamma, beta):
        """Finalize training-mode BN from the per-tile partial sums (one-pass stats)."""
        s = jnp.sum(st, axis=(0, 1))                               # (2, cout)
        mean = s[0] / cnt
        var = s[1] / cnt - mean * mean                             # biased variance
        scale = gamma.astype(jnp.float32) * jax.lax.rsqrt(var + EPS)
        shift = beta.astype(jnp.float32) - mean * scale
        return scale, shift

    # ---- pass 1: conv1 + BN1 partial stats --------------------------------------------
    # Zero-pad by 1 for the conv halo; extra bottom rows only make the H dimension a
    # multiple of the row block so the main/halo BlockSpecs stay block-aligned.
    xp = jnp.pad(x, ((0, 0), (1, th - 1), (1, 1), (0, 0))).astype(jnp.bfloat16)
    a1, st1 = conv_pass(_conv1_stats_kernel, xp, w1, (), (), cin)
    scale1, shift1 = bn_scale_shift(st1, params["g1"], params["be1"])

    # ---- pass 2: BN1 + ReLU + conv2 + BN2 partial stats (fused) ------------------------
    a1p = jnp.pad(a1, ((0, 0), (1, th - 1), (1, 1), (0, 0)))       # pad values masked in-kernel
    par_spec = pl.BlockSpec((1, cout), lambda b, i: (0, 0))
    a2, st2 = conv_pass(
        functools.partial(_bn1_conv2_stats_kernel, h_total=h),
        a1p, w2,
        (scale1.reshape(1, cout), shift1.reshape(1, cout)),
        (par_spec, par_spec),
        cout,
    )
    scale2, shift2 = bn_scale_shift(st2, params["g2"], params["be2"])

    # ---- pass 3: BN2 + ReLU, lane-dense collapsed (H, W*Cout) layout --------------------
    a2c = a2.reshape(n, h, w * cout)                               # free contiguous reshape
    th3 = th if th % 8 == 0 else h
    scale2t = jnp.tile(scale2, w).reshape(1, w * cout)             # lane l -> channel l % cout
    shift2t = jnp.tile(shift2, w).reshape(1, w * cout)
    yc = pl.pallas_call(
        _bn2_relu_kernel,
        grid=(n, h // th3),
        in_specs=[
            pl.BlockSpec((None, th3, w * cout), lambda b, i: (b, i, 0)),
            pl.BlockSpec((1, w * cout), lambda b, i: (0, 0)),
            pl.BlockSpec((1, w * cout), lambda b, i: (0, 0)),
        ],
        out_specs=pl.BlockSpec((None, th3, w * cout), lambda b, i: (b, i, 0)),
        out_shape=jax.ShapeDtypeStruct((n, h, w * cout), jnp.float32),
        compiler_params=cparams,
    )(a2c, scale2t, shift2t)

    return jnp.transpose(yc.reshape(n, h, w, cout), (0, 3, 1, 2))  # -> NCHW


# ------------------------------------------------------------------ pure-JAX reference
def unet_conv_block_reference(x_nchw, params):
    """Pure-JAX f32 reference (training-mode BN, HIGHEST matmul precision)."""
    x = jnp.transpose(x_nchw, (0, 2, 3, 1)).astype(jnp.float32)

    def conv(x, w, b):
        w_hwio = jnp.transpose(w, (2, 3, 1, 0))
        y = jax.lax.conv_general_dilated(
            x, w_hwio, window_strides=(1, 1), padding="SAME",
            dimension_numbers=("NHWC", "HWIO", "NHWC"),
            precision=jax.lax.Precision.HIGHEST)
        return y + b[None, None, None, :]

    def bn_relu(y, g, be):
        m = jnp.mean(y, axis=(0, 1, 2), keepdims=True)
        v = jnp.mean((y - m) ** 2, axis=(0, 1, 2), keepdims=True)
        return jnp.maximum((y - m) * jax.lax.rsqrt(v + EPS) * g + be, 0.0)

    h = bn_relu(conv(x, params["w1"], params["b1"]), params["g1"], params["be1"])
    y = bn_relu(conv(h, params["w2"], params["b2"]), params["g2"], params["be2"])
    return jnp.transpose(y, (0, 3, 1, 2))


def init_params(key, in_channels, out_channels):
    ks = jax.random.split(key, 8)
    return {
        "w1": 0.1 * jax.random.normal(ks[0], (out_channels, in_channels, K, K), jnp.float32),
        "b1": 0.1 * jax.random.normal(ks[1], (out_channels,), jnp.float32),
        "g1": 1.0 + 0.1 * jax.random.normal(ks[2], (out_channels,), jnp.float32),
        "be1": 0.1 * jax.random.normal(ks[3], (out_channels,), jnp.float32),
        "w2": 0.1 * jax.random.normal(ks[4], (out_channels, out_channels, K, K), jnp.float32),
        "b2": 0.1 * jax.random.normal(ks[5], (out_channels,), jnp.float32),
        "g2": 1.0 + 0.1 * jax.random.normal(ks[6], (out_channels,), jnp.float32),
        "be2": 0.1 * jax.random.normal(ks[7], (out_channels,), jnp.float32),
    }


if __name__ == "__main__":
    key = jax.random.PRNGKey(0)
    k_x, k_p = jax.random.split(key)

    N, CIN, COUT, H, W = 2, 4, 8, 16, 16
    x = jax.random.normal(k_x, (N, CIN, H, W), jnp.float32)        # NCHW, like PyTorch
    params = init_params(k_p, CIN, COUT)

    y = jax.jit(unet_conv_block)(x, params)
    y = jax.block_until_ready(y)

    y_ref = jax.block_until_ready(unet_conv_block_reference(x, params))
    assert y.shape == (N, COUT, H, W)
    # bf16 MXU operands vs. an f32 HIGHEST-precision reference -> relaxed tolerance; any
    # structural error (halo / stats / masking / layout) would produce O(1) differences.
    assert jnp.allclose(y, y_ref, atol=5e-2, rtol=5e-2), \
        f"max abs err {jnp.max(jnp.abs(y - y_ref))}"

    print("KERNEL_OK")
</pallas_src>

<mosaic_0001>
module attributes {stable_mosaic.version = 11 : i64} {
  func.func @_conv1_stats_kernel(%arg0: i32, %arg1: i32, %arg2: memref<1x8x18x4xbf16, #tpu.memory_space<vmem>>, %arg3: memref<1x2x18x4xbf16, #tpu.memory_space<vmem>>, %arg4: memref<36x8xbf16, #tpu.memory_space<vmem>>, %arg5: memref<1x8x16x8xf32, #tpu.memory_space<vmem>>, %arg6: memref<1x1x2x8xf32, #tpu.memory_space<vmem>>) attributes {dimension_semantics = [#tpu.dimension_semantics<parallel>, #tpu.dimension_semantics<parallel>], iteration_bounds = array<i64: 2, 2>, scalar_prefetch = 0 : i64, scratch_operands = 0 : i64, tpu.core_type = #tpu.core_type<tc>, window_params = [{transform_indices = @transform_0, window_bounds = array<i64: 1, 8, 18, 4>}, {transform_indices = @transform_1, window_bounds = array<i64: 1, 2, 18, 4>}, {pipeline_mode = #tpu.pipeline_mode<synchronous>, transform_indices = @transform_2, window_bounds = array<i64: 36, 8>}, {transform_indices = @transform_3, window_bounds = array<i64: 1, 8, 16, 8>}, {transform_indices = @transform_4, window_bounds = array<i64: 1, 1, 2, 8>}]} {
    %c0 = arith.constant 0 : index
    %c0_0 = arith.constant 0 : index
    %c0_1 = arith.constant 0 : index
    %c0_2 = arith.constant 0 : index
    %0 = vector.load %arg2[%c0, %c0_0, %c0_1, %c0_2] : memref<1x8x18x4xbf16, #tpu.memory_space<vmem>>, vector<1x8x18x4xbf16>
    %1 = vector.shape_cast %0 : vector<1x8x18x4xbf16> to vector<8x18x4xbf16>
    %c0_3 = arith.constant 0 : index
    %c0_4 = arith.constant 0 : index
    %c0_5 = arith.constant 0 : index
    %c0_6 = arith.constant 0 : index
    %2 = vector.load %arg3[%c0_3, %c0_4, %c0_5, %c0_6] : memref<1x2x18x4xbf16, #tpu.memory_space<vmem>>, vector<1x2x18x4xbf16>
    %3 = vector.shape_cast %2 : vector<1x2x18x4xbf16> to vector<2x18x4xbf16>
    %4 = tpu.concatenate %1, %3 in 0 : vector<8x18x4xbf16>, vector<2x18x4xbf16> -> vector<10x18x4xbf16>
    %c0_7 = arith.constant 0 : index
    %c0_8 = arith.constant 0 : index
    %5 = vector.load %arg4[%c0_7, %c0_8] : memref<36x8xbf16, #tpu.memory_space<vmem>>, vector<36x8xbf16>
    %6 = vector.extract_strided_slice %4 {offsets = [0, 0, 0], sizes = [10, 16, 4], strides = [1, 1, 1]} : vector<10x18x4xbf16> to vector<10x16x4xbf16>
    %7 = vector.extract_strided_slice %4 {offsets = [0, 1, 0], sizes = [10, 16, 4], strides = [1, 1, 1]} : vector<10x18x4xbf16> to vector<10x16x4xbf16>
    %8 = vector.extract_strided_slice %4 {offsets = [0, 2, 0], sizes = [10, 16, 4], strides = [1, 1, 1]} : vector<10x18x4xbf16> to vector<10x16x4xbf16>
    %9 = vector.extract_strided_slice %6 {offsets = [0, 0, 0], sizes = [8, 16, 4], strides = [1, 1, 1]} : vector<10x16x4xbf16> to vector<8x16x4xbf16>
    %10 = vector.shape_cast %9 : vector<8x16x4xbf16> to vector<128x4xbf16>
    %11 = vector.extract_strided_slice %7 {offsets = [0, 0, 0], sizes = [8, 16, 4], strides = [1, 1, 1]} : vector<10x16x4xbf16> to vector<8x16x4xbf16>
    %12 = vector.shape_cast %11 : vector<8x16x4xbf16> to vector<128x4xbf16>
    %13 = vector.extract_strided_slice %8 {offsets = [0, 0, 0], sizes = [8, 16, 4], strides = [1, 1, 1]} : vector<10x16x4xbf16> to vector<8x16x4xbf16>
    %14 = vector.shape_cast %13 : vector<8x16x4xbf16> to vector<128x4xbf16>
    %15 = vector.extract_strided_slice %6 {offsets = [1, 0, 0], sizes = [8, 16, 4], strides = [1, 1, 1]} : vector<10x16x4xbf16> to vector<8x16x4xbf16>
    %16 = vector.shape_cast %15 : vector<8x16x4xbf16> to vector<128x4xbf16>
    %17 = vector.extract_strided_slice %7 {offsets = [1, 0, 0], sizes = [8, 16, 4], strides = [1, 1, 1]} : vector<10x16x4xbf16> to vector<8x16x4xbf16>
    %18 = vector.shape_cast %17 : vector<8x16x4xbf16> to vector<128x4xbf16>
    %19 = vector.extract_strided_slice %8 {offsets = [1, 0, 0], sizes = [8, 16, 4], strides = [1, 1, 1]} : vector<10x16x4xbf16> to vector<8x16x4xbf16>
    %20 = vector.shape_cast %19 : vector<8x16x4xbf16> to vector<128x4xbf16>
    %21 = vector.extract_strided_slice %6 {offsets = [2, 0, 0], sizes = [8, 16, 4], strides = [1, 1, 1]} : vector<10x16x4xbf16> to vector<8x16x4xbf16>
    %22 = vector.shape_cast %21 : vector<8x16x4xbf16> to vector<128x4xbf16>
    %23 = vector.extract_strided_slice %7 {offsets = [2, 0, 0], sizes = [8, 16, 4], strides = [1, 1, 1]} : vector<10x16x4xbf16> to vector<8x16x4xbf16>
    %24 = vector.shape_cast %23 : vector<8x16x4xbf16> to vector<128x4xbf16>
    %25 = vector.extract_strided_slice %8 {offsets = [2, 0, 0], sizes = [8, 16, 4], strides = [1, 1, 1]} : vector<10x16x4xbf16> to vector<8x16x4xbf16>
    %26 = vector.shape_cast %25 : vector<8x16x4xbf16> to vector<128x4xbf16>
    %27 = tpu.concatenate %10, %12, %14, %16, %18, %20, %22, %24, %26 in 1 : vector<128x4xbf16>, vector<128x4xbf16>, vector<128x4xbf16>, vector<128x4xbf16>, vector<128x4xbf16>, vector<128x4xbf16>, vector<128x4xbf16>, vector<128x4xbf16>, vector<128x4xbf16> -> vector<128x36xbf16>
    %cst = arith.constant dense<0.000000e+00> : vector<128x8xf32>
    %28 = tpu.matmul %27, %5, %cst {dimension_numbers = #tpu.dot_dimension_numbers<[1], [0], [0], [1], [0, 0, 1, 1], [], []>} : vector<128x36xbf16>, vector<36x8xbf16>, vector<128x8xf32> -> vector<128x8xf32>
    %cst_9 = arith.constant dense<0.000000e+00> : vector<8xf32>
    %29 = vector.multi_reduction <add>, %28, %cst_9 [0] : vector<128x8xf32> to vector<8xf32>
    %30 = vector.shape_cast %29 : vector<8xf32> to vector<1x8xf32>
    %31 = arith.mulf %28, %28 : vector<128x8xf32>
    %cst_10 = arith.constant dense<0.000000e+00> : vector<8xf32>
    %32 = vector.multi_reduction <add>, %31, %cst_10 [0] : vector<128x8xf32> to vector<8xf32>
    %33 = vector.shape_cast %32 : vector<8xf32> to vector<1x8xf32>
    %34 = tpu.concatenate %30, %33 in 0 : vector<1x8xf32>, vector<1x8xf32> -> vector<2x8xf32>
    %c0_11 = arith.constant 0 : index
    %c0_12 = arith.constant 0 : index
    %c0_13 = arith.constant 0 : index
    %c0_14 = arith.constant 0 : index
    %35 = vector.load %arg6[%c0_11, %c0_12, %c0_13, %c0_14] : memref<1x1x2x8xf32, #tpu.memory_space<vmem>>, vector<1x1x2x8xf32>
    %36 = vector.shape_cast %35 : vector<1x1x2x8xf32> to vector<2x8xf32>
    %37 = vector.shape_cast %34 : vector<2x8xf32> to vector<1x1x2x8xf32>
    tpu.vector_store %arg6[%c0_11, %c0_12, %c0_13, %c0_14], %37 {strides = array<i32>} : memref<1x1x2x8xf32, #tpu.memory_space<vmem>>, vector<1x1x2x8xf32>,
    %38 = vector.shape_cast %28 : vector<128x8xf32> to vector<8x16x8xf32>
    %c0_15 = arith.constant 0 : index
    %c0_16 = arith.constant 0 : index
    %c0_17 = arith.constant 0 : index
    %c0_18 = arith.constant 0 : index
    %39 = vector.load %arg5[%c0_15, %c0_16, %c0_17, %c0_18] : memref<1x8x16x8xf32, #tpu.memory_space<vmem>>, vector<1x8x16x8xf32>
    %40 = vector.shape_cast %39 : vector<1x8x16x8xf32> to vector<8x16x8xf32>
    %41 = vector.shape_cast %38 : vector<8x16x8xf32> to vector<1x8x16x8xf32>
    tpu.vector_store %arg5[%c0_15, %c0_16, %c0_17, %c0_18], %41 {strides = array<i32>} : memref<1x8x16x8xf32, #tpu.memory_space<vmem>>, vector<1x8x16x8xf32>,
    return
  }
  func.func @transform_0(%arg0: i32, %arg1: i32) -> (i32, i32, i32, i32) {
    %c0_i32 = arith.constant 0 : i32
    %c0_i32_0 = arith.constant 0 : i32
    %c0_i32_1 = arith.constant 0 : i32
    return %arg0, %arg1, %c0_i32, %c0_i32_0 : i32, i32, i32, i32
  }
  func.func @transform_1(%arg0: i32, %arg1: i32) -> (i32, i32, i32, i32) {
    %c1_i32 = arith.constant 1 : i32
    %0 = arith.addi %arg1, %c1_i32 : i32
    %c4_i32 = arith.constant 4 : i32
    %1 = arith.muli %0, %c4_i32 : i32
    %c0_i32 = arith.constant 0 : i32
    %c0_i32_0 = arith.constant 0 : i32
    %c0_i32_1 = arith.constant 0 : i32
    return %arg0, %1, %c0_i32, %c0_i32_0 : i32, i32, i32, i32
  }
  func.func @transform_2(%arg0: i32, %arg1: i32) -> (i32, i32) {
    %c0_i32 = arith.constant 0 : i32
    %c0_i32_0 = arith.constant 0 : i32
    %c0_i32_1 = arith.constant 0 : i32
    return %c0_i32, %c0_i32_0 : i32, i32
  }
  func.func @transform_3(%arg0: i32, %arg1: i32) -> (i32, i32, i32, i32) {
    %c0_i32 = arith.constant 0 : i32
    %c0_i32_0 = arith.constant 0 : i32
    %c0_i32_1 = arith.constant 0 : i32
    return %arg0, %arg1, %c0_i32, %c0_i32_0 : i32, i32, i32, i32
  }
  func.func @transform_4(%arg0: i32, %arg1: i32) -> (i32, i32, i32, i32) {
    %c0_i32 = arith.constant 0 : i32
    %c0_i32_0 = arith.constant 0 : i32
    %c0_i32_1 = arith.constant 0 : i32
    return %arg0, %arg1, %c0_i32, %c0_i32_0 : i32, i32, i32, i32
  }
}

module attributes {stable_mosaic.version = 11 : i64} {
  func.func @_bn1_conv2_stats_kernel(%arg0: i32, %arg1: i32, %arg2: memref<1x8x18x8xf32, #tpu.memory_space<vmem>>, %arg3: memref<1x2x18x8xf32, #tpu.memory_space<vmem>>, %arg4: memref<1x8xf32, #tpu.memory_space<vmem>>, %arg5: memref<1x8xf32, #tpu.memory_space<vmem>>, %arg6: memref<72x8xbf16, #tpu.memory_space<vmem>>, %arg7: memref<1x8x16x8xf32, #tpu.memory_space<vmem>>, %arg8: memref<1x1x2x8xf32, #tpu.memory_space<vmem>>) attributes {dimension_semantics = [#tpu.dimension_semantics<parallel>, #tpu.dimension_semantics<parallel>], iteration_bounds = array<i64: 2, 2>, scalar_prefetch = 0 : i64, scratch_operands = 0 : i64, tpu.core_type = #tpu.core_type<tc>, window_params = [{transform_indices = @transform_0, window_bounds = array<i64: 1, 8, 18, 8>}, {transform_indices = @transform_1, window_bounds = array<i64: 1, 2, 18, 8>}, {pipeline_mode = #tpu.pipeline_mode<synchronous>, transform_indices = @transform_2, window_bounds = array<i64: 1, 8>}, {pipeline_mode = #tpu.pipeline_mode<synchronous>, transform_indices = @transform_3, window_bounds = array<i64: 1, 8>}, {pipeline_mode = #tpu.pipeline_mode<synchronous>, transform_indices = @transform_4, window_bounds = array<i64: 72, 8>}, {transform_indices = @transform_5, window_bounds = array<i64: 1, 8, 16, 8>}, {transform_indices = @transform_6, window_bounds = array<i64: 1, 1, 2, 8>}]} {
    %c0 = arith.constant 0 : index
    %c0_0 = arith.constant 0 : index
    %c0_1 = arith.constant 0 : index
    %c0_2 = arith.constant 0 : index
    %0 = vector.load %arg2[%c0, %c0_0, %c0_1, %c0_2] : memref<1x8x18x8xf32, #tpu.memory_space<vmem>>, vector<1x8x18x8xf32>
    %1 = vector.shape_cast %0 : vector<1x8x18x8xf32> to vector<8x18x8xf32>
    %c0_3 = arith.constant 0 : index
    %c0_4 = arith.constant 0 : index
    %c0_5 = arith.constant 0 : index
    %c0_6 = arith.constant 0 : index
    %2 = vector.load %arg3[%c0_3, %c0_4, %c0_5, %c0_6] : memref<1x2x18x8xf32, #tpu.memory_space<vmem>>, vector<1x2x18x8xf32>
    %3 = vector.shape_cast %2 : vector<1x2x18x8xf32> to vector<2x18x8xf32>
    %4 = tpu.concatenate %1, %3 in 0 : vector<8x18x8xf32>, vector<2x18x8xf32> -> vector<10x18x8xf32>
    %c0_7 = arith.constant 0 : index
    %c0_8 = arith.constant 0 : index
    %5 = vector.load %arg4[%c0_7, %c0_8] : memref<1x8xf32, #tpu.memory_space<vmem>>, vector<1x8xf32>
    %6 = vector.shape_cast %5 : vector<1x8xf32> to vector<1x1x8xf32>
    %7 = vector.broadcast %6 : vector<1x1x8xf32> to vector<10x18x8xf32>
    %8 = arith.mulf %4, %7 : vector<10x18x8xf32>
    %c0_9 = arith.constant 0 : index
    %c0_10 = arith.constant 0 : index
    %9 = vector.load %arg5[%c0_9, %c0_10] : memref<1x8xf32, #tpu.memory_space<vmem>>, vector<1x8xf32>
    %10 = vector.shape_cast %9 : vector<1x8xf32> to vector<1x1x8xf32>
    %11 = vector.broadcast %10 : vector<1x1x8xf32> to vector<10x18x8xf32>
    %12 = arith.addf %8, %11 : vector<10x18x8xf32>
    %cst = arith.constant 0.000000e+00 : f32
    %13 = vector.broadcast %cst : f32 to vector<10x18x8xf32>
    %14 = arith.maximumf %12, %13 : vector<10x18x8xf32>
    %15 = tpu.iota {dimensions = array<i32: 0>} : vector<10x18x8xi32>
    %c8_i32 = arith.constant 8 : i32
    %16 = arith.muli %arg1, %c8_i32 : i32
    %17 = vector.broadcast %16 : i32 to vector<10x18x8xi32>
    %18 = arith.addi %15, %17 : vector<10x18x8xi32>
    %19 = tpu.iota {dimensions = array<i32: 1>} : vector<10x18x8xi32>
    %c1_i32 = arith.constant 1 : i32
    %20 = vector.broadcast %c1_i32 : i32 to vector<10x18x8xi32>
    %21 = arith.cmpi sge, %18, %20 : vector<10x18x8xi32>
    %c16_i32 = arith.constant 16 : i32
    %22 = vector.broadcast %c16_i32 : i32 to vector<10x18x8xi32>
    %23 = arith.cmpi sle, %18, %22 : vector<10x18x8xi32>
    %24 = arith.andi %21, %23 : vector<10x18x8xi1>
    %c1_i32_11 = arith.constant 1 : i32
    %25 = vector.broadcast %c1_i32_11 : i32 to vector<10x18x8xi32>
    %26 = arith.cmpi sge, %19, %25 : vector<10x18x8xi32>
    %27 = arith.andi %24, %26 : vector<10x18x8xi1>
    %c16_i32_12 = arith.constant 16 : i32
    %28 = vector.broadcast %c16_i32_12 : i32 to vector<10x18x8xi32>
    %29 = arith.cmpi sle, %19, %28 : vector<10x18x8xi32>
    %30 = arith.andi %27, %29 : vector<10x18x8xi1>
    %cst_13 = arith.constant 0.000000e+00 : f32
    %31 = vector.broadcast %cst_13 : f32 to vector<10x18x8xf32>
    %32 = arith.select %30, %14, %31 : vector<10x18x8xi1>, vector<10x18x8xf32>
    %c0_14 = arith.constant 0 : index
    %c0_15 = arith.constant 0 : index
    %33 = vector.load %arg6[%c0_14, %c0_15] : memref<72x8xbf16, #tpu.memory_space<vmem>>, vector<72x8xbf16>
    %34 = vector.extract_strided_slice %32 {offsets = [0, 0, 0], sizes = [10, 16, 8], strides = [1, 1, 1]} : vector<10x18x8xf32> to vector<10x16x8xf32>
    %35 = vector.extract_strided_slice %32 {offsets = [0, 1, 0], sizes = [10, 16, 8], strides = [1, 1, 1]} : vector<10x18x8xf32> to vector<10x16x8xf32>
    %36 = vector.extract_strided_slice %32 {offsets = [0, 2, 0], sizes = [10, 16, 8], strides = [1, 1, 1]} : vector<10x18x8xf32> to vector<10x16x8xf32>
    %37 = vector.extract_strided_slice %34 {offsets = [0, 0, 0], sizes = [8, 16, 8], strides = [1, 1, 1]} : vector<10x16x8xf32> to vector<8x16x8xf32>
    %38 = vector.shape_cast %37 : vector<8x16x8xf32> to vector<128x8xf32>
    %39 = vector.extract_strided_slice %35 {offsets = [0, 0, 0], sizes = [8, 16, 8], strides = [1, 1, 1]} : vector<10x16x8xf32> to vector<8x16x8xf32>
    %40 = vector.shape_cast %39 : vector<8x16x8xf32> to vector<128x8xf32>
    %41 = vector.extract_strided_slice %36 {offsets = [0, 0, 0], sizes = [8, 16, 8], strides = [1, 1, 1]} : vector<10x16x8xf32> to vector<8x16x8xf32>
    %42 = vector.shape_cast %41 : vector<8x16x8xf32> to vector<128x8xf32>
    %43 = vector.extract_strided_slice %34 {offsets = [1, 0, 0], sizes = [8, 16, 8], strides = [1, 1, 1]} : vector<10x16x8xf32> to vector<8x16x8xf32>
    %44 = vector.shape_cast %43 : vector<8x16x8xf32> to vector<128x8xf32>
    %45 = vector.extract_strided_slice %35 {offsets = [1, 0, 0], sizes = [8, 16, 8], strides = [1, 1, 1]} : vector<10x16x8xf32> to vector<8x16x8xf32>
    %46 = vector.shape_cast %45 : vector<8x16x8xf32> to vector<128x8xf32>
    %47 = vector.extract_strided_slice %36 {offsets = [1, 0, 0], sizes = [8, 16, 8], strides = [1, 1, 1]} : vector<10x16x8xf32> to vector<8x16x8xf32>
    %48 = vector.shape_cast %47 : vector<8x16x8xf32> to vector<128x8xf32>
    %49 = vector.extract_strided_slice %34 {offsets = [2, 0, 0], sizes = [8, 16, 8], strides = [1, 1, 1]} : vector<10x16x8xf32> to vector<8x16x8xf32>
    %50 = vector.shape_cast %49 : vector<8x16x8xf32> to vector<128x8xf32>
    %51 = vector.extract_strided_slice %35 {offsets = [2, 0, 0], sizes = [8, 16, 8], strides = [1, 1, 1]} : vector<10x16x8xf32> to vector<8x16x8xf32>
    %52 = vector.shape_cast %51 : vector<8x16x8xf32> to vector<128x8xf32>
    %53 = vector.extract_strided_slice %36 {offsets = [2, 0, 0], sizes = [8, 16, 8], strides = [1, 1, 1]} : vector<10x16x8xf32> to vector<8x16x8xf32>
    %54 = vector.shape_cast %53 : vector<8x16x8xf32> to vector<128x8xf32>
    %55 = tpu.concatenate %38, %40, %42, %44, %46, %48, %50, %52, %54 in 1 : vector<128x8xf32>, vector<128x8xf32>, vector<128x8xf32>, vector<128x8xf32>, vector<128x8xf32>, vector<128x8xf32>, vector<128x8xf32>, vector<128x8xf32>, vector<128x8xf32> -> vector<128x72xf32>
    %56 = arith.truncf %55 : vector<128x72xf32> to vector<128x72xbf16>
    %cst_16 = arith.constant dense<0.000000e+00> : vector<128x8xf32>
    %57 = tpu.matmul %56, %33, %cst_16 {dimension_numbers = #tpu.dot_dimension_numbers<[1], [0], [0], [1], [0, 0, 1, 1], [], []>} : vector<128x72xbf16>, vector<72x8xbf16>, vector<128x8xf32> -> vector<128x8xf32>
    %cst_17 = arith.constant dense<0.000000e+00> : vector<8xf32>
    %58 = vector.multi_reduction <add>, %57, %cst_17 [0] : vector<128x8xf32> to vector<8xf32>
    %59 = vector.shape_cast %58 : vector<8xf32> to vector<1x8xf32>
    %60 = arith.mulf %57, %57 : vector<128x8xf32>
    %cst_18 = arith.constant dense<0.000000e+00> : vector<8xf32>
    %61 = vector.multi_reduction <add>, %60, %cst_18 [0] : vector<128x8xf32> to vector<8xf32>
    %62 = vector.shape_cast %61 : vector<8xf32> to vector<1x8xf32>
    %63 = tpu.concatenate %59, %62 in 0 : vector<1x8xf32>, vector<1x8xf32> -> vector<2x8xf32>
    %c0_19 = arith.constant 0 : index
    %c0_20 = arith.constant 0 : index
    %c0_21 = arith.constant 0 : index
    %c0_22 = arith.constant 0 : index
    %64 = vector.load %arg8[%c0_19, %c0_20, %c0_21, %c0_22] : memref<1x1x2x8xf32, #tpu.memory_space<vmem>>, vector<1x1x2x8xf32>
    %65 = vector.shape_cast %64 : vector<1x1x2x8xf32> to vector<2x8xf32>
    %66 = vector.shape_cast %63 : vector<2x8xf32> to vector<1x1x2x8xf32>
    tpu.vector_store %arg8[%c0_19, %c0_20, %c0_21, %c0_22], %66 {strides = array<i32>} : memref<1x1x2x8xf32, #tpu.memory_space<vmem>>, vector<1x1x2x8xf32>,
    %67 = vector.shape_cast %57 : vector<128x8xf32> to vector<8x16x8xf32>
    %c0_23 = arith.constant 0 : index
    %c0_24 = arith.constant 0 : index
    %c0_25 = arith.constant 0 : index
    %c0_26 = arith.constant 0 : index
    %68 = vector.load %arg7[%c0_23, %c0_24, %c0_25, %c0_26] : memref<1x8x16x8xf32, #tpu.memory_space<vmem>>, vector<1x8x16x8xf32>
    %69 = vector.shape_cast %68 : vector<1x8x16x8xf32> to vector<8x16x8xf32>
    %70 = vector.shape_cast %67 : vector<8x16x8xf32> to vector<1x8x16x8xf32>
    tpu.vector_store %arg7[%c0_23, %c0_24, %c0_25, %c0_26], %70 {strides = array<i32>} : memref<1x8x16x8xf32, #tpu.memory_space<vmem>>, vector<1x8x16x8xf32>,
    return
  }
  func.func @transform_0(%arg0: i32, %arg1: i32) -> (i32, i32, i32, i32) {
    %c0_i32 = arith.constant 0 : i32
    %c0_i32_0 = arith.constant 0 : i32
    %c0_i32_1 = arith.constant 0 : i32
    return %arg0, %arg1, %c0_i32, %c0_i32_0 : i32, i32, i32, i32
  }
  func.func @transform_1(%arg0: i32, %arg1: i32) -> (i32, i32, i32, i32) {
    %c1_i32 = arith.constant 1 : i32
    %0 = arith.addi %arg1, %c1_i32 : i32
    %c4_i32 = arith.constant 4 : i32
    %1 = arith.muli %0, %c4_i32 : i32
    %c0_i32 = arith.constant 0 : i32
    %c0_i32_0 = arith.constant 0 : i32
    %c0_i32_1 = arith.constant 0 : i32
    return %arg0, %1, %c0_i32, %c0_i32_0 : i32, i32, i32, i32
  }
  func.func @transform_2(%arg0: i32, %arg1: i32) -> (i32, i32) {
    %c0_i32 = arith.constant 0 : i32
    %c0_i32_0 = arith.constant 0 : i32
    %c0_i32_1 = arith.constant 0 : i32
    return %c0_i32, %c0_i32_0 : i32, i32
  }
  func.func @transform_3(%arg0: i32, %arg1: i32) -> (i32, i32) {
    %c0_i32 = arith.constant 0 : i32
    %c0_i32_0 = arith.constant 0 : i32
    %c0_i32_1 = arith.constant 0 : i32
    return %c0_i32, %c0_i32_0 : i32, i32
  }
  func.func @transform_4(%arg0: i32, %arg1: i32) -> (i32, i32) {
    %c0_i32 = arith.constant 0 : i32
    %c0_i32_0 = arith.constant 0 : i32
    %c0_i32_1 = arith.constant 0 : i32
    return %c0_i32, %c0_i32_0 : i32, i32
  }
  func.func @transform_5(%arg0: i32, %arg1: i32) -> (i32, i32, i32, i32) {
    %c0_i32 = arith.constant 0 : i32
    %c0_i32_0 = arith.constant 0 : i32
    %c0_i32_1 = arith.constant 0 : i32
    return %arg0, %arg1, %c0_i32, %c0_i32_0 : i32, i32, i32, i32
  }
  func.func @transform_6(%arg0: i32, %arg1: i32) -> (i32, i32, i32, i32) {
    %c0_i32 = arith.constant 0 : i32
    %c0_i32_0 = arith.constant 0 : i32
    %c0_i32_1 = arith.constant 0 : i32
    return %arg0, %arg1, %c0_i32, %c0_i32_0 : i32, i32, i32, i32
  }
}

module attributes {stable_mosaic.version = 11 : i64} {
  func.func @_bn2_relu_kernel(%arg0: i32, %arg1: i32, %arg2: memref<1x8x128xf32, #tpu.memory_space<vmem>>, %arg3: memref<1x128xf32, #tpu.memory_space<vmem>>, %arg4: memref<1x128xf32, #tpu.memory_space<vmem>>, %arg5: memref<1x8x128xf32, #tpu.memory_space<vmem>>) attributes {dimension_semantics = [#tpu.dimension_semantics<parallel>, #tpu.dimension_semantics<parallel>], iteration_bounds = array<i64: 2, 2>, scalar_prefetch = 0 : i64, scratch_operands = 0 : i64, tpu.core_type = #tpu.core_type<tc>, window_params = [{transform_indices = @transform_0, window_bounds = array<i64: 1, 8, 128>}, {pipeline_mode = #tpu.pipeline_mode<synchronous>, transform_indices = @transform_1, window_bounds = array<i64: 1, 128>}, {pipeline_mode = #tpu.pipeline_mode<synchronous>, transform_indices = @transform_2, window_bounds = array<i64: 1, 128>}, {transform_indices = @transform_3, window_bounds = array<i64: 1, 8, 128>}]} {
    %c0 = arith.constant 0 : index
    %c0_0 = arith.constant 0 : index
    %c0_1 = arith.constant 0 : index
    %0 = vector.load %arg2[%c0, %c0_0, %c0_1] : memref<1x8x128xf32, #tpu.memory_space<vmem>>, vector<1x8x128xf32>
    %1 = vector.shape_cast %0 : vector<1x8x128xf32> to vector<8x128xf32>
    %c0_2 = arith.constant 0 : index
    %c0_3 = arith.constant 0 : index
    %2 = vector.load %arg3[%c0_2, %c0_3] : memref<1x128xf32, #tpu.memory_space<vmem>>, vector<1x128xf32>
    %3 = vector.broadcast %2 : vector<1x128xf32> to vector<8x128xf32>
    %4 = arith.mulf %1, %3 : vector<8x128xf32>
    %c0_4 = arith.constant 0 : index
    %c0_5 = arith.constant 0 : index
    %5 = vector.load %arg4[%c0_4, %c0_5] : memref<1x128xf32, #tpu.memory_space<vmem>>, vector<1x128xf32>
    %6 = vector.broadcast %5 : vector<1x128xf32> to vector<8x128xf32>
    %7 = arith.addf %4, %6 : vector<8x128xf32>
    %cst = arith.constant 0.000000e+00 : f32
    %8 = vector.broadcast %cst : f32 to vector<8x128xf32>
    %9 = arith.maximumf %7, %8 : vector<8x128xf32>
    %c0_6 = arith.constant 0 : index
    %c0_7 = arith.constant 0 : index
    %c0_8 = arith.constant 0 : index
    %10 = vector.load %arg5[%c0_6, %c0_7, %c0_8] : memref<1x8x128xf32, #tpu.memory_space<vmem>>, vector<1x8x128xf32>
    %11 = vector.shape_cast %10 : vector<1x8x128xf32> to vector<8x128xf32>
    %12 = vector.shape_cast %9 : vector<8x128xf32> to vector<1x8x128xf32>
    tpu.vector_store %arg5[%c0_6, %c0_7, %c0_8], %12 {strides = array<i32>} : memref<1x8x128xf32, #tpu.memory_space<vmem>>, vector<1x8x128xf32>,
    return
  }
  func.func @transform_0(%arg0: i32, %arg1: i32) -> (i32, i32, i32) {
    %c0_i32 = arith.constant 0 : i32
    %c0_i32_0 = arith.constant 0 : i32
    return %arg0, %arg1, %c0_i32 : i32, i32, i32
  }
  func.func @transform_1(%arg0: i32, %arg1: i32) -> (i32, i32) {
    %c0_i32 = arith.constant 0 : i32
    %c0_i32_0 = arith.constant 0 : i32
    %c0_i32_1 = arith.constant 0 : i32
    return %c0_i32, %c0_i32_0 : i32, i32
  }
  func.func @transform_2(%arg0: i32, %arg1: i32) -> (i32, i32) {
    %c0_i32 = arith.constant 0 : i32
    %c0_i32_0 = arith.constant 0 : i32
    %c0_i32_1 = arith.constant 0 : i32
    return %c0_i32, %c0_i32_0 : i32, i32
  }
  func.func @transform_3(%arg0: i32, %arg1: i32) -> (i32, i32, i32) {
    %c0_i32 = arith.constant 0 : i32
    %c0_i32_0 = arith.constant 0 : i32
    return %arg0, %arg1, %c0_i32 : i32, i32, i32
  }
}

</mosaic_0001>

<bundles_post_ra>
// kernel: tile.18
= control target key start
LH: loop header
LB: loop body
LE: loop exit
PB: predicated region body
PF: predicated region fallthrough
CT: control target
= control target key end

     0   :  { %s28_s0 = inlined_call_operand.vmem [shape: f32[8], index: 0, kind: input, shape index: {}]   ;;  %s29_s1 = inlined_call_operand.vmem [shape: f32[16,8], index: 1, kind: output, shape index: {}]  }
   0x1   :  { %v4_v0 = vld [vmem:[%s28_s0] ss:$0 sm:$0xff] }
   0x2   :  { %5 = vst [vmem:[%s29_s1] sm:$0xff] %v4_v0  ;;  %8 = vst [vmem:[%s29_s1 + $0x8] sm:$0xff] %v4_v0 }

// kernel: tile.19
= control target key start
LH: loop header
LB: loop body
LE: loop exit
PB: predicated region body
PF: predicated region fallthrough
CT: control target
= control target key end

     0   :  { %s131_s10 = smov 120   ;;  %s132_s11 = smov 104   ;;  %vm3_vm0 = vcmask 64512   ;;  %vm9_vm1 = vcmask 1048512   ;;  %vm15_vm2 = vcmask 982912   ;;  %vm21_vm3 = vcmask 917312   ;;  %s207_s0 = inlined_call_operand.vmem [shape: f32[16,8], index: 0, kind: input, shape index: {}]   ;;  %s208_s1 = inlined_call_operand.vmem [shape: f32[1,128], index: 1, kind: output, shape index: {}]  }
   0x1   :  { %v101_v0 = vld [vmem:[%s207_s0 + $0xf] sm:$0x1]   ;;  %v103_v1 = vld [vmem:[%s207_s0 + $0xd] sm:$0x1]   ;;  %v102_v2 = vld [vmem:[%s207_s0 + $0xe] sm:$0x1]  }
   0x2   :  { %7 = vrot.lane.b32.xlu0 %v101_v0, %s131_s10  ;;  %19 = vrot.lane.b32.xlu1 %v103_v1, %s132_s11  ;;  %v104_v3 = vld [vmem:[%s207_s0 + $0xc] sm:$0x1]   ;;  %s133_s16 = smov 112   ;;  %s134_s17 = smov 96   ;;  %v105_v4 = vld [vmem:[%s207_s0 + $0xb] sm:$0x1]  }
   0x3   :  { %v106_v5 = vld [vmem:[%s207_s0 + $0xa] sm:$0x1]   ;;  %v2_v6 = vld [vmem:[%s207_s0] sm:$0x1]   ;;  %s135_s24 = smov 88   ;;  %s136_s25 = smov 80  }
   0x4   :  { %4 = vst.msk [vmem:[#allocation0] sm:$0x1] %vm3_vm0, %v2_v6   ;;  %v107_v7 = vld [vmem:[%s207_s0 + $0x9] sm:$0x1]   ;;  %v108_v8 = vld [vmem:[%s207_s0 + $0x8] sm:$0x1]  }
   0x5   :  { %s137_s30 = smov 72   ;;  %s138_s2 = smov 64   ;;  %v109_v9 = vld [vmem:[%s207_s0 + $0x7] sm:$0x1]   ;;  %v110_v10 = vld [vmem:[%s207_s0 + $0x6] sm:$0x1]  }
   0x6   :  { %13 = vrot.lane.b32.xlu0 %v102_v2, %s133_s16  ;;  %25 = vrot.lane.b32.xlu1 %v104_v3, %s134_s17  ;;  %s139_s7 = smov 56   ;;  %s140_s8 = smov 48   ;;  %v111_v11 = vld [vmem:[%s207_s0 + $0x5] sm:$0x1]   ;;  %v112_v12 = vld [vmem:[%s207_s0 + $0x4] sm:$0x1]  }
   0x7   :  { %s141_s13 = smov 40   ;;  %s142_s14 = smov 32   ;;  %v113_v13 = vld [vmem:[%s207_s0 + $0x3] sm:$0x1]   ;;  %v114_v14 = vld [vmem:[%s207_s0 + $0x2] sm:$0x1]  }
   0x8   :  { %s143_s19 = smov 24   ;;  %s144_s20 = smov 16   ;;  %v115_v15 = vld [vmem:[%s207_s0 + $0x1] sm:$0x1]   ;;  %vm27_vm4 = vcmask 851712   ;;  %vm33_vm5 = vcmask 786112  }
   0x9   :  { %s145_s0 = smov 8   ;;  %vm39_vm6 = vcmask 720512   ;;  %vm45_vm7 = vcmask 654912   ;;  %vm51_vm8 = vcmask 589312   ;;  %vm57_vm9 = vcmask 523712  }
   0xa   :  { %31 = vrot.lane.b32.xlu0 %v105_v4, %s135_s24  ;;  %37 = vrot.lane.b32.xlu1 %v106_v5, %s136_s25  ;;  %vm63_vm10 = vcmask 458112   ;;  %vm69_vm11 = vcmask 392512   ;;  %vm75_vm12 = vcmask 326912   ;;  %vm81_vm13 = vcmask 261312  }
   0xb   :  { %vm87_vm14 = vcmask 195712   ;;  %vm93_vm15 = vcmask 130112  }
   0xe   :  { %43 = vrot.lane.b32.xlu0 %v107_v7, %s137_s30  ;;  %49 = vrot.lane.b32.xlu1 %v108_v8, %s138_s2 }
  0x12   :  { %55 = vrot.lane.b32.xlu0 %v109_v9, %s139_s7  ;;  %61 = vrot.lane.b32.xlu1 %v110_v10, %s140_s8 }
  0x16   :  { %67 = vrot.lane.b32.xlu0 %v111_v11, %s141_s13  ;;  %73 = vrot.lane.b32.xlu1 %v112_v12, %s142_s14 }
  0x1a   :  { %79 = vrot.lane.b32.xlu0 %v113_v13, %s143_s19  ;;  %85 = vrot.lane.b32.xlu1 %v114_v14, %s144_s20 }
  0x1e   :  { %91 = vrot.lane.b32.xlu0 %v115_v15, %s145_s0 }
  0x74   :  { %v8_v16 = vpop.permute.xlu0 %7   ;;  %v20_v17 = vpop.permute.xlu1 %19  }
  0x75   :  { %10 = vst.msk [vmem:[#allocation0] sm:$0x1] %vm9_vm1, %v8_v16  }
  0x78   :  { %v14_v18 = vpop.permute.xlu0 %13   ;;  %v26_v19 = vpop.permute.xlu1 %25  }
  0x79   :  { %16 = vst.msk [vmem:[#allocation0] sm:$0x1] %vm15_vm2, %v14_v18  }
  0x7a   :  { %22 = vst.msk [vmem:[#allocation0] sm:$0x1] %vm21_vm3, %v20_v17  }
  0x7b   :  { %28 = vst.msk [vmem:[#allocation0] sm:$0x1] %vm27_vm4, %v26_v19  }
  0x7c   :  { %v32_v20 = vpop.permute.xlu0 %31   ;;  %v38_v21 = vpop.permute.xlu1 %37  }
  0x7d   :  { %34 = vst.msk [vmem:[#allocation0] sm:$0x1] %vm33_vm5, %v32_v20  }
  0x7e   :  { %40 = vst.msk [vmem:[#allocation0] sm:$0x1] %vm39_vm6, %v38_v21  }
  0x80   :  { %v44_v22 = vpop.permute.xlu0 %43   ;;  %v50_v23 = vpop.permute.xlu1 %49  }
  0x81   :  { %46 = vst.msk [vmem:[#allocation0] sm:$0x1] %vm45_vm7, %v44_v22  }
  0x82   :  { %52 = vst.msk [vmem:[#allocation0] sm:$0x1] %vm51_vm8, %v50_v23  }
  0x84   :  { %v56_v24 = vpop.permute.xlu0 %55   ;;  %v62_v25 = vpop.permute.xlu1 %61  }
  0x85   :  { %58 = vst.msk [vmem:[#allocation0] sm:$0x1] %vm57_vm9, %v56_v24  }
  0x86   :  { %64 = vst.msk [vmem:[#allocation0] sm:$0x1] %vm63_vm10, %v62_v25  }
  0x88   :  { %v68_v26 = vpop.permute.xlu0 %67   ;;  %v74_v27 = vpop.permute.xlu1 %73  }
  0x89   :  { %70 = vst.msk [vmem:[#allocation0] sm:$0x1] %vm69_vm11, %v68_v26  }
  0x8a   :  { %76 = vst.msk [vmem:[#allocation0] sm:$0x1] %vm75_vm12, %v74_v27  }
  0x8c   :  { %v80_v28 = vpop.permute.xlu0 %79   ;;  %v86_v29 = vpop.permute.xlu1 %85  }
  0x8d   :  { %82 = vst.msk [vmem:[#allocation0] sm:$0x1] %vm81_vm13, %v80_v28  }
  0x8e   :  { %88 = vst.msk [vmem:[#allocation0] sm:$0x1] %vm87_vm14, %v86_v29  }
  0x90   :  { %v92_v30 = vpop.permute.xlu0 %91  }
  0x91   :  { %94 = vst.msk [vmem:[#allocation0] sm:$0x1] %vm93_vm15, %v92_v30  }
  0x98   :  { %v98_v31 = vld [vmem:[#allocation0] sm:$0x1] }
  0x99   :  { %100 = vst [vmem:[%s208_s1] sm:$0x1] %v98_v31 }

// kernel: unet_conv_block.3
= control target key start
LH: loop header
LB: loop body
LE: loop exit
PB: predicated region body
PF: predicated region fallthrough
CT: control target
= control target key end

     0   :  { %s1728_s15 = smov 0   ;;  %s1730_s16 = smov 0   ;;  %s2417_s0 = inlined_call_operand.vmem [shape: bf16[2,24,18,4], index: 0, kind: input, shape index: {}, may-alias: {0,1}]   ;;  %s2418_s1 = inlined_call_operand.vmem [shape: bf16[2,24,18,4], index: 1, kind: input, shape index: {}, may-alias: {0,1}]   ;;  %s2419_s2 = inlined_call_operand.vmem [shape: bf16[36,8], index: 2, kind: input, shape index: {}]   ;;  %s2420_s3 = inlined_call_operand.vmem [shape: f32[2,16,16,8], index: 3, kind: output, shape index: {0}]   ;;  %s2421_s4 = inlined_call_operand.vmem [shape: f32[2,2,2,8], index: 4, kind: output, shape index: {1}]  }
   0x1   :  { %s1732_s17 = smov 0   ;;  %s1734_s18 = smov 0  }
   0x2   :  { %s1736_s19 = smov 0  }
   0x3 LB: > { %s24_s20 = sadd.s32 1, %s1685_s17  ;;  %s27_s21 = sadd.s32 1, %s1689_s18  ;;  %s1693_s19 = sphi %s1736_s19, %s15_s19   ;;  %s1689_s18 = sphi %s1734_s18, %s2430_s18   ;;  %s1685_s17 = sphi %s1732_s17, %s2429_s17   ;;  %s1681_s16 = sphi %s1730_s16, %s2428_s16   ;;  %s1677_s15 = sphi %s1728_s15, %s2427_s15  }
   0x4   : > { %p25_p0 = scmp.ge.s32.totalorder %s24_s20, 2  ;;  %p1476_p1 = scmp.ge.s32.totalorder %s1693_s19, 1 }
   0x5   : > { %p215_p2 = scmp.lt.s32.totalorder %s1693_s19, 5 }
   0x6   : > { %s2432_s20 = smov (%p25_p0, %s24_s20), 0  ;;  %s2434_s21 = smov (!%p25_p0, %s27_s21), %s1689_s18 }
   0x7   : > { %p216_p3 = pnand %p1476_p1, %p215_p2  ;;  %p29_p4 = scmp.ge.s32.totalorder %s2434_s21, 2 }
   0x8   : > { %s1761_s22 = sshll.u32 (!%p216_p3), %s1677_s15, 3  ;;  %p272_p5 = scmp.lt.s32.totalorder (!%p216_p3), %s1681_s16, 1  ;;  %vm571_vm0 = vcmask (!%p216_p3), 1042432   ;;  %vm572_vm1 = vcmask (!%p216_p3), 1046532   ;;  %vm352_vm2 = vsmask.f32 (!%p216_p3), 3328 }
   0x9   : > { %s2436_s21 = smov (%p29_p4, %s2434_s21), 0  ;;  %219 = sbr.rel (%p216_p3) target bundleno = 510 (0x1fe), region = 32 }
   0xa   : > { %p274_p6 = scmp.lt.s32.totalorder (!%p216_p3), %s1761_s22, 23  ;;  %vm353_vm3 = vsmask.f32 (!%p216_p3), 7440  ;;  %s1695_s5 = smov (!%p216_p3), 12   ;;  %vm1819_vm4 = vmor (!%p216_p3), %vm571_vm0, %vm572_vm1  ;;  %vm1092_vm6 = vcmask (!%p216_p3), 1041408   ;;  %vm916_vm7 = vcmask (!%p216_p3), 31744  }
   0xb   : > { %s1696_s6 = smov (!%p216_p3), 24   ;;  %s1697_s7 = smov (!%p216_p3), 20   ;;  %vm1855_vm5 = vmor (!%p216_p3), %vm352_vm2, %vm353_vm3  ;;  %vm941_vm8 = vcmask (!%p216_p3), 64512   ;;  %vm958_vm9 = vcmask (!%p216_p3), 97280   ;;  %vm975_vm10 = vcmask (!%p216_p3), 130048   ;;  %vm992_vm11 = vcmask (!%p216_p3), 162816  }
   0xc   : > { %s1698_s8 = smov (!%p216_p3), 8   ;;  %s1699_s9 = smov (!%p216_p3), 4   ;;  %vm1009_vm12 = vcmask (!%p216_p3), 195584   ;;  %vm1026_vm13 = vcmask (!%p216_p3), 228352   ;;  %vm1043_vm14 = vcmask (!%p216_p3), 261120   ;;  %vm1075_vm15 = vcmask (!%p216_p3), 293888  }
   0xd   : > { %s1549_s14 = sadd.s32 (!%p216_p3), 8, %s1761_s22  ;;  %s1702_s28 = smov (!%p216_p3), 32   ;;  %vm1283_vm0 = vcmask (!%p216_p3), 1040384   ;;  %vm1285_vm1 = vcmask (!%p216_p3), 58368  }
   0xe   : > { %p1928_p7 = scmp.lt.s32.totalorder (!%p216_p3), %s1549_s14, 23  ;;  %p300_p8 = scmp.lt.s32.totalorder (!%p216_p3), %s1761_s22, 15 }
   0xf   : > { %p310_p9 = scmp.lt.s32.totalorder (!%p216_p3), %s1677_s15, 1 }
  0x10   : > { %s2438_s16 = smov (!%p272_p5, %s1681_s16), 1  ;;  %s2440_s14 = smov (!%p1928_p7, %s1549_s14), 23 }
  0x11   : > { %s275_s23 = scalar_select %p274_p6, %s1761_s22, 23 }
  0x12   : > { %s1592_s24 = smul.u32 72, %s2438_s16  ;;  %s2442_s22 = smov (!%p300_p8, %s1761_s22), 15 }
  0x13   : > { %s1591_s25 = smul.u32 3, %s275_s23  ;;  %s2444_s15 = smov (!%p310_p9, %s1677_s15), 1 }
  0x15   : > { %s278_s26 = sadd.s32 %s1592_s24, %s1591_s25  ;;  %s1700_s25 = smov 16  }
  0x16   : > { %s1478_s27 = sshll.u32 %s278_s26, 2  ;;  %s1701_s26 = smov 28  }
  0x17   : > { %s1773_s30 = scalar_lea.vmem %s2417_s0, %s1478_s27  ;;  %s1593_s27 = smul.u32 3, %s2440_s14 }
  0x18   : > { %v1776_v0 = vld [vmem:[%s1773_s30 + $0x18] sm:$0xf]  ;;  %v1779_v1 = vld [vmem:[%s1773_s30 + $0x1c] sm:$0xf]  ;;  %v320_v2 = vld [vmem:[%s1773_s30 + $0xc] sm:$0xf] }
  0x19   : > { %v417_v3 = vshrl.u32 %v1779_v1, 16  ;;  %v1785_v4 = vcombine.low %v1776_v0, %v1779_v1  ;;  %v404_v5 = vshrl.u32 %v1776_v0, 16  ;;  %v407_v6 = vshll.u32 %v1776_v0, 16  ;;  %v1790_v7 = vld [vmem:[%s1773_s30 + $0x10] sm:$0xf]  ;;  %s2009_s29 = sadd.s32 %s1593_s27, %s1592_s24 }
  0x1a   : > { %v389_v8 = vshll.u32 %v1790_v7, 16  ;;  %v393_v9 = vshrl.u32 %v1790_v7, 16  ;;  %v1795_v10 = vcombine.low %v320_v2, %v1790_v7  ;;  %v380_v11 = vshrl.u32 %v320_v2, 16  ;;  %v1798_v12 = vld [vmem:[%s1773_s30 + $0x24] sm:$0xf]  ;;  %s1481_s24 = sshll.u32 %s2009_s29, 2 }
  0x1b   : > { %807 = vrot.lane.b32.xlu1 %v1785_v4, %s1695_s5  ;;  %v383_v13 = vshll.u32 %v320_v2, 16  ;;  %v1803_v14 = vld [vmem:[%s1773_s30 + $0x28] sm:$0xf]  ;;  %v428_v15 = vshrl.u32 %v1798_v12, 16  ;;  %v431_v16 = vshll.u32 %v1798_v12, 16  ;;  %v1489_v17 = vrot.slane %v320_v2, 9  ;;  %s2050_s12 = scalar_lea.vmem %s2418_s1, %s1481_s24 }
  0x1c   : > { %v1807_v18 = vrot.slane %v393_v9, 4  ;;  %805 = vrot.lane.b32.xlu0 %v1795_v10, %s1695_s5  ;;  %v382_v19 = vrot.slane %v380_v11, 4  ;;  %v441_v20 = vshrl.u32 %v1803_v14, 16  ;;  %v1814_v21 = vcombine.low %v1798_v12, %v1803_v14  ;;  %v322_v22 = vld [vmem:[%s1773_s30 + $0x14] sm:$0x1] }
  0x1d   : > { %v385_v24 = vrot.slane %v383_v13, 5  ;;  %v583_v25 = vrot.slane %v1790_v7, 5  ;;  %v586_v26 = vrot.slane %v322_v22, 5  ;;  %v1825_v27 = vld [vmem:[%s1773_s30] sm:$0xf]  ;;  %v1490_v28 = vrot.slane %v1776_v0, 9 }
  0x1e   : > { %v1829_v29 = vld [vmem:[%s1773_s30 + $0x4] sm:$0xf]  ;;  %v319_v30 = vld [vmem:[%s1773_s30 + $0x8] sm:$0x1]  ;;  %v1488_v31 = vrot.slane %v1825_v27, 9  ;;  %v356_v32 = vshrl.u32 %v1825_v27, 16 }
  0x1f   : > { %864 = vrot.lane.b32.xlu1 %v1814_v21, %s1696_s6  ;;  %v584_v33 = vsel %vm1819_vm4, %v1489_v17, %v583_v25  ;;  %v585_v34 = vrot.slane %v583_v25, 4  ;;  %v576_v35 = vrot.slane %v1829_v29, 5  ;;  %v579_v36 = vrot.slane %v319_v30, 5  ;;  %v325_v41 = vld [vmem:[%s1773_s30 + $0x20] sm:$0x1] }
  0x20   : > { %862 = vrot.lane.b32.xlu0 %v1785_v4, %s1696_s6  ;;  %v358_v37 = vrot.slane %v356_v32, 4  ;;  %v359_v38 = vshll.u32 %v1825_v27, 16  ;;  %v365_v39 = vshll.u32 %v1829_v29, 16  ;;  %v369_v40 = vshrl.u32 %v1829_v29, 16 }
  0x21   : > { %v587_v42 = vsel %vm1819_vm4, %v585_v34, %v586_v26  ;;  %v577_v43 = vsel %vm1819_vm4, %v1488_v31, %v576_v35  ;;  %v578_v44 = vrot.slane %v576_v35, 4  ;;  %v375_v45 = vshll.u32 %v319_v30, 16  ;;  %v1884_v30 = vld [vmem:[%s1773_s30 + $0x2c] sm:$0x1] }
  0x22   : > { %v1515_v46 = vcombine.low %v584_v33, %v587_v42  ;;  %v361_v47 = vrot.slane %v359_v38, 5  ;;  %v367_v48 = vrot.slane %v365_v39, 5  ;;  %v371_v49 = vrot.slane %v369_v40, 4  ;;  %v1653_v38 = vld [vmem:[%s2419_s2 + $0x8] sm:$0xff]  }
  0x23   : > { %v580_v50 = vsel %vm1819_vm4, %v578_v44, %v579_v36  ;;  %v377_v51 = vrot.slane %v375_v45, 5  ;;  %v590_v52 = vrot.slane %v1779_v1, 5  ;;  %v593_v53 = vrot.slane %v325_v41, 5  ;;  %v1912_v45 = vld [vmem:[%s1773_s30 + $0x34] sm:$0xf] }
  0x24   : > { %843 = vrot.lane.b32.xlu0 %v1515_v46, %s1697_s7  ;;  %v1514_v54 = vcombine.low %v577_v43, %v580_v50  ;;  %v362_v55 = vor.u32 %v361_v47, %v358_v37  ;;  %v372_v56 = vor.u32 %v371_v49, %v367_v48  ;;  %v386_v57 = vor.u32 %v385_v24, %v382_v19  ;;  %v1900_v37 = vld [vmem:[%s1773_s30 + $0x30] sm:$0xf] }
  0x25   : > { %v591_v59 = vsel %vm1819_vm4, %v1490_v28, %v590_v52  ;;  %v592_v60 = vrot.slane %v590_v52, 4  ;;  %v391_v61 = vrot.slane %v389_v8, 5  ;;  %v399_v62 = vshll.u32 %v322_v22, 16 }
  0x26   : > { %786 = vrot.lane.b32.xlu1 %v1514_v54, %s1698_s8  ;;  %v363_v63 = vrot.slane %v362_v55, 4  ;;  %v373_v2 = vrot.slane %v372_v56, 4  ;;  %v387_v9 = vrot.slane %v386_v57, 4  ;;  %v406_v11 = vrot.slane %v404_v5, 4  ;;  %v331_v56 = vld [vmem:[%s1773_s30 + $0x38] sm:$0x1] }
  0x27   : > { %v594_v13 = vsel %vm1819_vm4, %v592_v60, %v593_v53  ;;  %v396_v17 = vor.u32 %v1807_v18, %v391_v61  ;;  %v401_v19 = vrot.slane %v399_v62, 5  ;;  %v409_v7 = vrot.slane %v407_v6, 5 }
  0x28   : > { %v368_v8 = vsel %vm1855_vm5, %v363_v63, %v367_v48  ;;  %v378_v22 = vsel %vm1855_vm5, %v373_v2, %v377_v51  ;;  %v1875_v24 = vcombine.low %v591_v59, %v594_v13  ;;  %v392_v5 = vsel %vm1855_vm5, %v387_v9, %v391_v61  ;;  %v1933_v61 = vld [vmem:[%s1773_s30 + $0x3c] sm:$0xf] }
  0x29   : > { %v1506_v25 = vcombine.low %v368_v8, %v378_v22  ;;  %v397_v26 = vrot.slane %v396_v17, 4  ;;  %v410_v28 = vor.u32 %v409_v7, %v406_v11  ;;  %v413_v18 = vshll.u32 %v1779_v1, 16  ;;  %v1943_v17 = vld [vmem:[%s1773_s30 + $0x40] sm:$0xf] }
  0x2a   : > { %788 = vrot.lane.b32.xlu1 %v1515_v46, %s1698_s8  ;;  %v419_v0 = vrot.slane %v417_v3, 4  ;;  %v423_v6 = vshll.u32 %v325_v41, 16  ;;  %v430_v31 = vrot.slane %v428_v15, 4  ;;  %v433_v32 = vrot.slane %v431_v16, 5  ;;  %v1652_v3 = vld [vmem:[%s2419_s2] sm:$0xff]  }
  0x2b   : > { %746 = vrot.lane.b32.xlu0 %v1506_v25, %s1699_s9  ;;  %v402_v33 = vsel %vm1855_vm5, %v397_v26, %v401_v19  ;;  %v411_v34 = vrot.slane %v410_v28, 4  ;;  %v415_v35 = vrot.slane %v413_v18, 5  ;;  %v437_v1 = vshll.u32 %v1803_v14, 16  ;;  %1561 = vmatprep.subr.bf16.mxu0 %v1652_v3 }
  0x2c   : > { %v1507_v36 = vcombine.low %v392_v5, %v402_v33  ;;  %v434_v15 = vor.u32 %v433_v32, %v430_v31  ;;  %v443_v16 = vrot.slane %v441_v20, 4  ;;  %v425_v40 = vrot.slane %v423_v6, 5  ;;  %1583 = vmatprep.subr.bf16.mxu1 %v1652_v3  ;;  %1562 = vmatpush3.bf16.msra.mxu0 %v1652_v3  ;;  %v1962_v31 = vld [vmem:[%s1773_s30 + $0x44] sm:$0x1] }
  0x2d   : > { %v420_v39 = vor.u32 %v419_v0, %v415_v35  ;;  %v439_v41 = vrot.slane %v437_v1, 5  ;;  %v447_v42 = vshll.u32 %v1884_v30, 16  ;;  %v416_v43 = vsel %vm1855_vm5, %v411_v34, %v415_v35  ;;  %1563 = vmatprep.subr.bf16.mxu0 %v1653_v38  ;;  %1586 = vmatpush3.bf16.msra.mxu1 %v1652_v3 }
  0x2e   : > { %845 = vrot.lane.b32.xlu1 %v1875_v24, %s1697_s7  ;;  %v435_v20 = vrot.slane %v434_v15, 4  ;;  %v597_v44 = vrot.slane %v1803_v14, 5  ;;  %v452_v49 = vshrl.u32 %v1900_v37, 16  ;;  %v1491_v50 = vrot.slane %v1798_v12, 9  ;;  %1584 = vmatprep.subr.bf16.mxu1 %v1653_v38 }
  0x2f   : > { %748 = vrot.lane.b32.xlu0 %v1507_v36, %s1699_s9  ;;  %v421_v46 = vrot.slane %v420_v39, 4  ;;  %v444_v47 = vor.u32 %v443_v16, %v439_v41  ;;  %v449_v48 = vrot.slane %v447_v42, 5  ;;  %v600_v51 = vrot.slane %v1884_v30, 5 }
  0x30   : > { %v455_v14 = vshll.u32 %v1900_v37, 16  ;;  %v440_v53 = vsel %vm1855_vm5, %v435_v20, %v439_v41  ;;  %v465_v55 = vshrl.u32 %v1912_v45, 16  ;;  %v599_v57 = vrot.slane %v597_v44, 4  ;;  %1564 = vmatpush3.bf16.msra.mxu0 %v1653_v38 }
  0x31   : > { %v426_v52 = vsel %vm1855_vm5, %v421_v46, %v425_v40  ;;  %v445_v54 = vrot.slane %v444_v47, 4  ;;  %v454_v59 = vrot.slane %v452_v49, 4  ;;  %v461_v63 = vshll.u32 %v1912_v45, 16  ;;  %1587 = vmatpush3.bf16.msra.mxu1 %v1653_v38  ;;  %v1981_v40 = vld [vmem:[%s1773_s30 + $0x4c] sm:$0xf] }
  0x32   : > { %v1508_v12 = vcombine.low %v416_v43, %v426_v52  ;;  %v457_v60 = vrot.slane %v455_v14, 5  ;;  %v467_v2 = vrot.slane %v465_v55, 4  ;;  %v471_v13 = vshll.u32 %v331_v56, 16 }
  0x33   : > { %824 = vrot.lane.b32.xlu0 %v1507_v36, %s1700_s25  ;;  %v450_v62 = vsel %vm1855_vm5, %v445_v54, %v449_v48  ;;  %v598_v19 = vsel %vm1819_vm4, %v1491_v50, %v597_v44  ;;  %v463_v7 = vrot.slane %v461_v63, 5  ;;  %v604_v8 = vrot.slane %v1912_v45, 5  ;;  %v1972_v36 = vld [vmem:[%s1773_s30 + $0x48] sm:$0xf] }
  0x34   : > { %826 = vrot.lane.b32.xlu1 %v1508_v12, %s1700_s25  ;;  %v1940_v9 = vcombine.low %v440_v53, %v450_v62  ;;  %v458_v11 = vor.u32 %v457_v60, %v454_v59  ;;  %v476_v22 = vshrl.u32 %v1933_v61, 16  ;;  %v601_v5 = vsel %vm1819_vm4, %v599_v57, %v600_v51  ;;  %v337_v51 = vld [vmem:[%s1773_s30 + $0x50] sm:$0x1]  ;;  %v2021_v59 = vld [vmem:[%s1773_s30 + $0x54] sm:$0xf] }
  0x35   : > { %v1492_v25 = vrot.slane %v1900_v37, 9  ;;  %v607_v26 = vrot.slane %v331_v56, 5  ;;  %v479_v28 = vshll.u32 %v1933_v61, 16  ;;  %v468_v0 = vor.u32 %v467_v2, %v463_v7 }
  0x36   : > { %v459_v18 = vrot.slane %v458_v11, 4  ;;  %v606_v6 = vrot.slane %v604_v8, 4  ;;  %v489_v30 = vshrl.u32 %v1943_v17, 16  ;;  %v473_v32 = vrot.slane %v471_v13, 5 }
  0x37   : > { %881 = vrot.lane.b32.xlu0 %v1508_v12, %s1701_s26  ;;  %v478_v33 = vrot.slane %v476_v22, 4  ;;  %v481_v34 = vrot.slane %v479_v28, 5  ;;  %v485_v35 = vshll.u32 %v1943_v17, 16  ;;  %v1969_v1 = vcombine.low %v1900_v37, %v1912_v45 }
  0x38   : > { %883 = vrot.lane.b32.xlu1 %v1940_v9, %s1701_s26  ;;  %v469_v3 = vrot.slane %v468_v0, 4  ;;  %v605_v15 = vsel %vm1819_vm4, %v1492_v25, %v604_v8  ;;  %v608_v16 = vsel %vm1819_vm4, %v606_v6, %v607_v26  ;;  %v495_v39 = vshll.u32 %v1962_v31, 16  ;;  %v2038_v8 = vld [vmem:[%s1773_s30 + $0x58] sm:$0xf] }
  0x39   : > { %v482_v38 = vor.u32 %v481_v34, %v478_v33  ;;  %v1985_v37 = vcombine.low %v598_v19, %v601_v5  ;;  %v464_v41 = vsel %vm1855_vm5, %v459_v18, %v463_v7  ;;  %v1991_v42 = vcombine.low %v1933_v61, %v1943_v17 }
  0x3a   : > { %v491_v43 = vrot.slane %v489_v30, 4  ;;  %v474_v20 = vsel %vm1855_vm5, %v469_v3, %v473_v32  ;;  %v1996_v44 = vrot.slane %v485_v35, 5  ;;  %v611_v45 = vrot.slane %v1943_v17, 5  ;;  %v340_v30 = vld [vmem:[%s1773_s30 + $0x5c] sm:$0x1] }
  0x3b   : > { %900 = vrot.lane.b32.xlu0 %v1875_v24, %s1702_s28  ;;  %v500_v46 = vshrl.u32 %v1972_v36, 16  ;;  %v2000_v47 = vcombine.low %v605_v15, %v608_v16  ;;  %v2002_v48 = vrot.slane %v482_v38, 4  ;;  %v503_v49 = vshll.u32 %v1972_v36, 16 }
  0x3c   : > { %750 = vrot.lane.b32.xlu1 %v1508_v12, %s1699_s9  ;;  %v513_v50 = vshrl.u32 %v1981_v40, 16  ;;  %v2011_v14 = vrot.slane %v495_v39, 5  ;;  %v1493_v52 = vrot.slane %v1933_v61, 9  ;;  %v614_v53 = vrot.slane %v1962_v31, 5 }
  0x3d   : > { %v502_v54 = vrot.slane %v500_v46, 4  ;;  %v2017_v55 = vcombine.low %v464_v41, %v474_v20  ;;  %v505_v56 = vrot.slane %v503_v49, 5  ;;  %v509_v12 = vshll.u32 %v1981_v40, 16  ;;  %v2063_v20 = vld [vmem:[%s2050_s12] sm:$0xf] }
  0x3e   : > { %v515_v57 = vrot.slane %v513_v50, 4  ;;  %v492_v60 = vor.u32 %v491_v43, %v1996_v44  ;;  %v2028_v62 = vrot.slane %v611_v45, 4  ;;  %v519_v63 = vshll.u32 %v337_v51, 16 }
  0x3f   : > { %902 = vrot.lane.b32.xlu0 %v1985_v37, %s1702_s28  ;;  %v1494_v2 = vrot.slane %v1972_v36, 9  ;;  %v488_v11 = vsel %vm1855_vm5, %v2002_v48, %v1996_v44  ;;  %v506_v13 = vor.u32 %v505_v56, %v502_v54  ;;  %v511_v19 = vrot.slane %v509_v12, 5  ;;  %v2072_v54 = vld [vmem:[%s2050_s12 + $0x4] sm:$0xf] }
  0x40   : > { %752 = vrot.lane.b32.xlu1 %v1940_v9, %s1699_s9  ;;  %v618_v7 = vrot.slane %v1981_v40, 5  ;;  %v521_v22 = vrot.slane %v519_v63, 5  ;;  %v621_v5 = vrot.slane %v337_v51, 5  ;;  %v524_v25 = vshrl.u32 %v2021_v59, 16 }
  0x41   : > { %v527_v26 = vshll.u32 %v2021_v59, 16  ;;  %v507_v28 = vrot.slane %v506_v13, 4  ;;  %v516_v18 = vor.u32 %v515_v57, %v511_v19  ;;  %v493_v32 = vrot.slane %v492_v60, 4 }
  0x42   : > { %v619_v0 = vsel %vm1819_vm4, %v1494_v2, %v618_v7  ;;  %v620_v6 = vrot.slane %v618_v7, 4  ;;  %v537_v33 = vshrl.u32 %v2038_v8, 16  ;;  %v533_v16 = vshll.u32 %v2038_v8, 16  ;;  %v343_v7 = vld [vmem:[%s2050_s12 + $0x8] sm:$0x1] }
  0x43   : > { %790 = vrot.lane.b32.xlu0 %v1875_v24, %s1698_s8  ;;  %v526_v24 = vrot.slane %v524_v25, 4  ;;  %v529_v34 = vrot.slane %v527_v26, 5  ;;  %v512_v35 = vsel %vm1855_vm5, %v507_v28, %v511_v19  ;;  %v517_v3 = vrot.slane %v516_v18, 4 }
  0x44   : > { %792 = vrot.lane.b32.xlu1 %v1985_v37, %s1698_s8  ;;  %v622_v15 = vsel %vm1819_vm4, %v620_v6, %v621_v5  ;;  %v539_v41 = vrot.slane %v537_v33, 4  ;;  %v543_v43 = vshll.u32 %v340_v30, 16  ;;  %v535_v49 = vrot.slane %v533_v16, 5 }
  0x45   : > { %v2060_v38 = vcombine.low %v619_v0, %v622_v15  ;;  %v530_v39 = vor.u32 %v529_v34, %v526_v24  ;;  %v522_v46 = vsel %vm1855_vm5, %v517_v3, %v521_v22  ;;  %v1495_v50 = vrot.slane %v2021_v59, 9  ;;  %v2099_v24 = vld [vmem:[%s2050_s12 + $0xc] sm:$0xf]  ;;  %v2106_v15 = vld [vmem:[%s2050_s12 + $0x10] sm:$0xf] }
  0x46   : > { %v625_v51 = vrot.slane %v2038_v8, 5  ;;  %v2076_v56 = vcombine.low %v512_v35, %v522_v46  ;;  %v545_v57 = vrot.slane %v543_v43, 5  ;;  %v628_v60 = vrot.slane %v340_v30, 5 }
  0x47   : > { %809 = vrot.lane.b32.xlu0 %v1814_v21, %s1695_s5  ;;  %v531_v12 = vrot.slane %v530_v39, 4  ;;  %v540_v63 = vor.u32 %v539_v41, %v535_v49  ;;  %v631_v19 = vshrl.u32 %v2063_v20, 16  ;;  %v498_v22 = vsel %vm1855_vm5, %v493_v32, %v2011_v14 }
  0x48   : > { %811 = vrot.lane.b32.xlu1 %v1969_v1, %s1695_s5  ;;  %v626_v2 = vsel %vm1819_vm4, %v1495_v50, %v625_v51  ;;  %v627_v13 = vrot.slane %v625_v51, 4  ;;  %v634_v25 = vshll.u32 %v2063_v20, 16  ;;  %v644_v26 = vshrl.u32 %v2072_v54, 16 }
  0x49   : > { %v536_v5 = vsel %vm1855_vm5, %v531_v12, %v535_v49  ;;  %v541_v28 = vrot.slane %v540_v63, 4  ;;  %v633_v0 = vrot.slane %v631_v19, 4  ;;  %v640_v6 = vshll.u32 %v2072_v54, 16  ;;  %v346_v63 = vld [vmem:[%s2050_s12 + $0x14] sm:$0x1] }
  0x4a   : > { %v629_v18 = vsel %vm1819_vm4, %v627_v13, %v628_v60  ;;  %v636_v30 = vrot.slane %v634_v25, 5  ;;  %v646_v32 = vrot.slane %v644_v26, 4  ;;  %v650_v33 = vshll.u32 %v343_v7, 16 }
  0x4b   : > { %828 = vrot.lane.b32.xlu0 %v1940_v9, %s1700_s25  ;;  %v2096_v14 = vcombine.low %v626_v2, %v629_v18  ;;  %v546_v9 = vsel %vm1855_vm5, %v541_v28, %v545_v57  ;;  %v642_v34 = vrot.slane %v640_v6, 5  ;;  %v1496_v35 = vrot.slane %v2063_v20, 9 }
  0x4c   : > { %830 = vrot.lane.b32.xlu1 %v2017_v55, %s1700_s25  ;;  %v659_v3 = vrot.slane %v2072_v54, 5  ;;  %v2108_v16 = vcombine.low %v536_v5, %v546_v9  ;;  %v637_v39 = vor.u32 %v636_v30, %v633_v0  ;;  %v652_v41 = vrot.slane %v650_v33, 5 }
  0x4d   : > { %v662_v43 = vrot.slane %v343_v7, 5  ;;  %v647_v46 = vor.u32 %v646_v32, %v642_v34  ;;  %v665_v51 = vshrl.u32 %v2099_v24, 16  ;;  %v1511_v12 = vcombine.low %v488_v11, %v498_v22 }
  0x4e   : > { %v660_v49 = vsel %vm1819_vm4, %v1496_v35, %v659_v3  ;;  %v661_v50 = vrot.slane %v659_v3, 4  ;;  %v638_v57 = vrot.slane %v637_v39, 4  ;;  %v668_v60 = vshll.u32 %v2099_v24, 16  ;;  %v1654_v39 = vld [vmem:[%s2419_s2 + $0x10] ss:$0 sps:$4 sm:$0x33]  }
  0x4f   : > { %847 = vrot.lane.b32.xlu0 %v1985_v37, %s1697_s7  ;;  %v678_v37 = vshrl.u32 %v2106_v15, 16  ;;  %v648_v2 = vrot.slane %v647_v46, 4  ;;  %v667_v19 = vrot.slane %v665_v51, 4  ;;  %v674_v7 = vshll.u32 %v2106_v15, 16  ;;  %1589 = vmatprep.subr.msk.bf16.mxu0 %vm1092_vm6, %v1654_v39 }
  0x50   : > { %849 = vrot.lane.b32.xlu1 %v2000_v47, %s1697_s7  ;;  %v663_v13 = vsel %vm1819_vm4, %v661_v50, %v662_v43  ;;  %v643_v5 = vsel %vm1855_vm5, %v638_v57, %v642_v34  ;;  %v670_v44 = vrot.slane %v668_v60, 5  ;;  %v684_v26 = vshll.u32 %v346_v63, 16  ;;  %1590 = vmatprep.subr.msk.bf16.mxu1 %vm1092_vm6, %v1654_v39 }
  0x51   : > { %v2130_v25 = vcombine.low %v660_v49, %v663_v13  ;;  %v680_v48 = vrot.slane %v678_v37, 4  ;;  %v653_v11 = vsel %vm1855_vm5, %v648_v2, %v652_v41  ;;  %v676_v22 = vrot.slane %v674_v7, 5 }
  0x52   : > { %v1497_v28 = vrot.slane %v2099_v24, 9  ;;  %v2139_v18 = vcombine.low %v643_v5, %v653_v11  ;;  %v671_v0 = vor.u32 %v670_v44, %v667_v19  ;;  %v693_v6 = vrot.slane %v2106_v15, 5 }
  0x53   : > { %866 = vrot.lane.b32.xlu0 %v1969_v1, %s1696_s6  ;;  %v696_v30 = vrot.slane %v346_v63, 5  ;;  %v681_v32 = vor.u32 %v680_v48, %v676_v22  ;;  %v686_v33 = vrot.slane %v684_v26, 5  ;;  %v1498_v9 = vcombine.low %v1825_v27, %v1829_v29 }
  0x54   : > { %868 = vrot.lane.b32.xlu1 %v1991_v42, %s1696_s6  ;;  %v672_v34 = vrot.slane %v671_v0, 4  ;;  %v2146_v35 = vsel %vm1819_vm4, %v1497_v28, %v693_v6  ;;  %v695_v3 = vrot.slane %v693_v6, 4  ;;  %v612_v43 = vsel %vm1819_vm4, %v1493_v52, %v611_v45 }
  0x55   : > { %v682_v41 = vrot.slane %v681_v32, 4  ;;  %v615_v46 = vsel %vm1819_vm4, %v2028_v62, %v614_v53  ;;  %v1094_v45 = vsel %vm1092_vm6, %v1654_v39, 0  ;;  %v2183_v23 = vcombine.low %v1972_v36, %v1981_v40 }
  0x56   : > { %v677_v49 = vsel %vm1855_vm5, %v672_v34, %v676_v22  ;;  %v697_v50 = vsel %vm1819_vm4, %v695_v3, %v696_v30  ;;  %v1519_v31 = vcombine.low %v612_v43, %v615_v46  ;;  %1566 = vmatpush3.bf16.msra.mxu0 %v1094_v45  ;;  %1588 = vmatpush3.bf16.msra.mxu1 %v1094_v45 }
  0x57   : > { %885 = vrot.lane.b32.xlu0 %v2017_v55, %s1701_s26  ;;  %v687_v17 = vsel %vm1855_vm5, %v682_v41, %v686_v33  ;;  %v1527_v61 = vcombine.low %v2146_v35, %v697_v50  ;;  %v2197_v58 = vcombine.low %v2021_v59, %v2038_v8  ;;  %v1522_v36 = vcombine.low %v2063_v20, %v2072_v54 }
  0x58   : > { %887 = vrot.lane.b32.xlu1 %v1511_v12, %s1701_s26  ;;  %v1526_v51 = vcombine.low %v677_v49, %v687_v17  ;;  %v1525_v52 = vcombine.low %v2099_v24, %v2106_v15 }
  0x5b   : > { %904 = vrot.lane.b32.xlu0 %v2000_v47, %s1702_s28 }
  0x5c   : > { %754 = vrot.lane.b32.xlu1 %v2017_v55, %s1699_s9 }
  0x5f   : > { %906 = vrot.lane.b32.xlu0 %v1519_v31, %s1702_s28 }
  0x60   : > { %756 = vrot.lane.b32.xlu1 %v1511_v12, %s1699_s9 }
  0x63   : > { %794 = vrot.lane.b32.xlu0 %v2000_v47, %s1698_s8 }
  0x64   : > { %796 = vrot.lane.b32.xlu1 %v1519_v31, %s1698_s8 }
  0x67   : > { %813 = vrot.lane.b32.xlu0 %v1991_v42, %s1695_s5 }
  0x68   : > { %815 = vrot.lane.b32.xlu1 %v2183_v23, %s1695_s5 }
  0x6b   : > { %832 = vrot.lane.b32.xlu0 %v1511_v12, %s1700_s25 }
  0x6c   : > { %834 = vrot.lane.b32.xlu1 %v2076_v56, %s1700_s25 }
  0x6f   : > { %851 = vrot.lane.b32.xlu0 %v1519_v31, %s1697_s7 }
  0x70   : > { %853 = vrot.lane.b32.xlu1 %v2060_v38, %s1697_s7 }
  0x73   : > { %870 = vrot.lane.b32.xlu0 %v2183_v23, %s1696_s6 }
  0x74   : > { %872 = vrot.lane.b32.xlu1 %v2197_v58, %s1696_s6 }
  0x77   : > { %889 = vrot.lane.b32.xlu0 %v2076_v56, %s1701_s26 }
  0x78   : > { %891 = vrot.lane.b32.xlu1 %v2108_v16, %s1701_s26 }
  0x7b   : > { %908 = vrot.lane.b32.xlu0 %v2060_v38, %s1702_s28 }
  0x7c   : > { %758 = vrot.lane.b32.xlu1 %v2076_v56, %s1699_s9 }
  0x7f   : > { %910 = vrot.lane.b32.xlu0 %v2096_v14, %s1702_s28 }
  0x80   : > { %760 = vrot.lane.b32.xlu1 %v2108_v16, %s1699_s9 }
  0x83   : > { %798 = vrot.lane.b32.xlu0 %v2060_v38, %s1698_s8 }
  0x84   : > { %800 = vrot.lane.b32.xlu1 %v2096_v14, %s1698_s8 }
  0x87   : > { %817 = vrot.lane.b32.xlu0 %v2197_v58, %s1695_s5 }
  0x88   : > { %819 = vrot.lane.b32.xlu1 %v1522_v36, %s1695_s5  ;;  %s1483_s5 = sshll.u32 %s2442_s22, 1  ;;  %s1486_s22 = sshll.u32 %s2438_s16, 1 }
  0x8b   : > { %836 = vrot.lane.b32.xlu0 %v2108_v16, %s1700_s25 }
  0x8c   : > { %838 = vrot.lane.b32.xlu1 %v2139_v18, %s1700_s25  ;;  %s313_s25 = sadd.s32 %s1486_s22, %s2444_s15 }
  0x8d   : > { %v808_v40 = vpop.permute.xlu1 %807 }
  0x8e   : > { %v806_v47 = vpop.permute.xlu0 %805 }
  0x8f   : > { %855 = vrot.lane.b32.xlu0 %v2096_v14, %s1697_s7 }
  0x90   : > { %857 = vrot.lane.b32.xlu1 %v2130_v25, %s1697_s7 }
  0x91   : > { %v865_v53 = vpop.permute.xlu1 %864 }
  0x92   : > { %v863_v55 = vpop.permute.xlu0 %862 }
  0x93   : > { %874 = vrot.lane.b32.xlu0 %v1522_v36, %s1696_s6 }
  0x94   : > { %876 = vrot.lane.b32.xlu1 %v1525_v52, %s1696_s6  ;;  %s1484_s6 = sshll.u32 %s2438_s16, 5 }
  0x95   : > { %s304_s7 = sadd.s32 %s1484_s6, %s1483_s5 }
  0x96   : > { %v844_v59 = vpop.permute.xlu0 %843  ;;  %s1485_s8 = sshll.u32 %s304_s7, 3 }
  0x97   : > { %893 = vrot.lane.b32.xlu0 %v2139_v18, %s1701_s26  ;;  %s2330_s23 = scalar_lea.vmem %s2420_s3, %s1485_s8 }
  0x98   : > { %895 = vrot.lane.b32.xlu1 %v1526_v51, %s1701_s26  ;;  %v787_v62 = vpop.permute.xlu1 %786  ;;  %s1487_s26 = sshll.u32 %s313_s25, 1 }
  0x99   : > { %s315_s29 = scalar_lea.vmem %s2421_s4, %s1487_s26 }
  0x9b   : > { %912 = vrot.lane.b32.xlu0 %v2130_v25, %s1702_s28 }
  0x9c   : > { %914 = vrot.lane.b32.xlu1 %v1527_v61, %s1702_s28  ;;  %v789_v8 = vpop.permute.xlu1 %788 }
  0x9d   : > { %v747_v38 = vpop.permute.xlu0 %746 }
  0x9e   : > { %v919_v20 = vsel %vm916_vm7, %v1498_v9, %v747_v38 }
  0x9f   : > { %v943_v14 = vsel %vm941_vm8, %v919_v20, %v787_v62 }
  0xa0   : > { %v846_v54 = vpop.permute.xlu1 %845  ;;  %v960_v12 = vsel %vm958_vm9, %v943_v14, %v806_v47 }
  0xa1   : > { %v749_v56 = vpop.permute.xlu0 %748 }
  0xa2   : > { %v922_v24 = vsel %vm916_vm7, %v1795_v10, %v749_v56 }
  0xa3   : > { %v945_v15 = vsel %vm941_vm8, %v922_v24, %v789_v8 }
  0xa4   : > { %v962_v16 = vsel %vm958_vm9, %v945_v15, %v808_v40 }
  0xa5   : > { %v825_v57 = vpop.permute.xlu0 %824 }
  0xa6   : > { %v827_v27 = vpop.permute.xlu1 %826  ;;  %v977_v29 = vsel %vm975_vm10, %v960_v12, %v825_v57 }
  0xa7   : > { %v994_v60 = vsel %vm992_vm11, %v977_v29, %v844_v59  ;;  %v979_v37 = vsel %vm975_vm10, %v962_v16, %v827_v27 }
  0xa8   : > { %v1011_v2 = vsel %vm1009_vm12, %v994_v60, %v863_v55  ;;  %v996_v13 = vsel %vm992_vm11, %v979_v37, %v846_v54 }
  0xa9   : > { %v882_v63 = vpop.permute.xlu0 %881  ;;  %v1013_v5 = vsel %vm1009_vm12, %v996_v13, %v865_v53 }
  0xaa   : > { %v884_v10 = vpop.permute.xlu1 %883  ;;  %v1028_v19 = vsel %vm1026_vm13, %v1011_v2, %v882_v63 }
  0xab   : > { %v1030_v48 = vsel %vm1026_vm13, %v1013_v5, %v884_v10 }
  0xad   : > { %v901_v7 = vpop.permute.xlu0 %900 }
  0xae   : > { %v751_v25 = vpop.permute.xlu1 %750  ;;  %v1045_v44 = vsel %vm1043_vm14, %v1028_v19, %v901_v7 }
  0xaf   : > { %1567 = vmatprep.mubr.msk.bf16.mxu0 %vm1075_vm15, %v1045_v44  ;;  %v925_v3 = vsel %vm916_vm7, %v1785_v4, %v751_v25 }
  0xb1   : > { %v903_v11 = vpop.permute.xlu0 %902 }
  0xb2   : > { %v753_v22 = vpop.permute.xlu1 %752  ;;  %v1047_v26 = vsel %vm1043_vm14, %v1030_v48, %v903_v11 }
  0xb3   : > { %1568 = vmatmul.mubr.msk.bf16.vlgmr.msra.gmra.mrb[0].mxu0 %vm1075_vm15, %v1047_v26  ;;  %v928_v50 = vsel %vm916_vm7, %v1814_v21, %v753_v22 }
  0xb5   : > { %v791_v28 = vpop.permute.xlu0 %790 }
  0xb6   : > { %v793_v18 = vpop.permute.xlu1 %792  ;;  %v947_v39 = vsel %vm941_vm8, %v925_v3, %v791_v28 }
  0xb7   : > { %v949_v61 = vsel %vm941_vm8, %v928_v50, %v793_v18 }
  0xb9   : > { %v810_v0 = vpop.permute.xlu0 %809 }
  0xba   : > { %v812_v6 = vpop.permute.xlu1 %811  ;;  %v964_v41 = vsel %vm958_vm9, %v947_v39, %v810_v0 }
  0xbb   : > { %v966_v45 = vsel %vm958_vm9, %v949_v61, %v812_v6 }
  0xbd   : > { %v829_v30 = vpop.permute.xlu0 %828 }
  0xbe   : > { %v831_v32 = vpop.permute.xlu1 %830  ;;  %v981_v46 = vsel %vm975_vm10, %v964_v41, %v829_v30 }
  0xbf   : > { %v983_v36 = vsel %vm975_vm10, %v966_v45, %v831_v32 }
  0xc1   : > { %v848_v33 = vpop.permute.xlu0 %847 }
  0xc2   : > { %v850_v9 = vpop.permute.xlu1 %849  ;;  %v998_v17 = vsel %vm992_vm11, %v981_v46, %v848_v33 }
  0xc3   : > { %v1000_v52 = vsel %vm992_vm11, %v983_v36, %v850_v9 }
  0xc5   : > { %v867_v34 = vpop.permute.xlu0 %866 }
  0xc6   : > { %v869_v35 = vpop.permute.xlu1 %868  ;;  %v1015_v51 = vsel %vm1009_vm12, %v998_v17, %v867_v34 }
  0xc7   : > { %v1017_v21 = vsel %vm1009_vm12, %v1000_v52, %v869_v35 }
  0xc9   : > { %v886_v43 = vpop.permute.xlu0 %885 }
  0xca   : > { %v888_v49 = vpop.permute.xlu1 %887  ;;  %v1032_v4 = vsel %vm1026_vm13, %v1015_v51, %v886_v43 }
  0xcb   : > { %v1034_v53 = vsel %vm1026_vm13, %v1017_v21, %v888_v49 }
  0xcd   : > { %v905_v31 = vpop.permute.xlu0 %904 }
  0xce   : > { %v755_v40 = vpop.permute.xlu1 %754  ;;  %v1049_v47 = vsel %vm1043_vm14, %v1032_v4, %v905_v31 }
  0xcf   : > { %1571 = vmatprep.mubr.msk.bf16.mxu0 %vm1075_vm15, %v1049_v47  ;;  %v931_v57 = vsel %vm916_vm7, %v1969_v1, %v755_v40 }
  0xd1   : > { %v907_v55 = vpop.permute.xlu0 %906 }
  0xd2   : > { %v757_v59 = vpop.permute.xlu1 %756  ;;  %v1051_v62 = vsel %vm1043_vm14, %v1034_v53, %v907_v55 }
  0xd3   : > { %1572 = vmatmul.mubr.msk.bf16.gmra.mrb[4].mxu0 %vm1075_vm15, %v1051_v62  ;;  %v934_v10 = vsel %vm916_vm7, %v1991_v42, %v757_v59 }
  0xd5   : > { %v795_v8 = vpop.permute.xlu0 %794 }
  0xd6   : > { %v797_v38 = vpop.permute.xlu1 %796  ;;  %v951_v27 = vsel %vm941_vm8, %v931_v57, %v795_v8 }
  0xd7   : > { %v953_v13 = vsel %vm941_vm8, %v934_v10, %v797_v38 }
  0xd9   : > { %v814_v20 = vpop.permute.xlu0 %813 }
  0xda   : > { %v816_v54 = vpop.permute.xlu1 %815  ;;  %v968_v29 = vsel %vm958_vm9, %v951_v27, %v814_v20 }
  0xdb   : > { %v970_v7 = vsel %vm958_vm9, %v953_v13, %v816_v54 }
  0xdd   : > { %v833_v56 = vpop.permute.xlu0 %832 }
  0xde   : > { %v835_v14 = vpop.permute.xlu1 %834  ;;  %v985_v37 = vsel %vm975_vm10, %v968_v29, %v833_v56 }
  0xdf   : > { %v987_v25 = vsel %vm975_vm10, %v970_v7, %v835_v14 }
  0xe1   : > { %v852_v24 = vpop.permute.xlu0 %851 }
  0xe2   : > { %v854_v15 = vpop.permute.xlu1 %853  ;;  %v1002_v2 = vsel %vm992_vm11, %v985_v37, %v852_v24 }
  0xe3   : > { %v1004_v11 = vsel %vm992_vm11, %v987_v25, %v854_v15 }
  0xe5   : > { %v871_v16 = vpop.permute.xlu0 %870 }
  0xe6   : > { %v873_v12 = vpop.permute.xlu1 %872  ;;  %v1019_v19 = vsel %vm1009_vm12, %v1002_v2, %v871_v16 }
  0xe7   : > { %v1021_v42 = vsel %vm1009_vm12, %v1004_v11, %v873_v12 }
  0xe9   : > { %v890_v60 = vpop.permute.xlu0 %889 }
  0xea   : > { %v892_v63 = vpop.permute.xlu1 %891  ;;  %v1036_v1 = vsel %vm1026_vm13, %v1019_v19, %v890_v60 }
  0xeb   : > { %v1038_v22 = vsel %vm1026_vm13, %v1021_v42, %v892_v63 }
  0xed   : > { %v909_v5 = vpop.permute.xlu0 %908 }
  0xee   : > { %v759_v44 = vpop.permute.xlu1 %758  ;;  %v1053_v48 = vsel %vm1043_vm14, %v1036_v1, %v909_v5 }
  0xef   : > { %1575 = vmatprep.mubr.msk.bf16.mxu1 %vm1075_vm15, %v1053_v48  ;;  %v937_v41 = vsel %vm916_vm7, %v2183_v23, %v759_v44 }
  0xf1   : > { %v911_v26 = vpop.permute.xlu0 %910 }
  0xf2   : > { %v761_v28 = vpop.permute.xlu1 %760  ;;  %v1055_v18 = vsel %vm1043_vm14, %v1038_v22, %v911_v26 }
  0xf3   : > { %1576 = vmatmul.mubr.msk.bf16.vlgmr.msra.gmra.mrb[0].mxu1 %vm1075_vm15, %v1055_v18  ;;  %v940_v43 = vsel %vm916_vm7, %v2197_v58, %v761_v28 }
  0xf5   : > { %v799_v0 = vpop.permute.xlu0 %798 }
  0xf6   : > { %v801_v6 = vpop.permute.xlu1 %800  ;;  %v955_v46 = vsel %vm941_vm8, %v937_v41, %v799_v0 }
  0xf7   : > { %v957_v49 = vsel %vm941_vm8, %v940_v43, %v801_v6 }
  0xf9   : > { %v818_v30 = vpop.permute.xlu0 %817 }
  0xfa   : > { %v820_v32 = vpop.permute.xlu1 %819  ;;  %v972_v50 = vsel %vm958_vm9, %v955_v46, %v818_v30 }
  0xfb   : > { %v974_v61 = vsel %vm958_vm9, %v957_v49, %v820_v32 }
  0xfd   : > { %v837_v33 = vpop.permute.xlu0 %836 }
  0xfe   : > { %v839_v9 = vpop.permute.xlu1 %838  ;;  %v989_v51 = vsel %vm975_vm10, %v972_v50, %v837_v33 }
  0xff   : > { %v991_v4 = vsel %vm975_vm10, %v974_v61, %v839_v9 }
 0x101   : > { %v856_v34 = vpop.permute.xlu0 %855 }
 0x102   : > { %v858_v35 = vpop.permute.xlu1 %857  ;;  %v1006_v23 = vsel %vm992_vm11, %v989_v51, %v856_v34 }
 0x103   : > { %v1008_v58 = vsel %vm992_vm11, %v991_v4, %v858_v35 }
 0x105   : > { %v875_v3 = vpop.permute.xlu0 %874 }
 0x106   : > { %v877_v39 = vpop.permute.xlu1 %876  ;;  %v1023_v31 = vsel %vm1009_vm12, %v1006_v23, %v875_v3 }
 0x107   : > { %v1025_v36 = vsel %vm1009_vm12, %v1008_v58, %v877_v39 }
 0x109   : > { %v894_v17 = vpop.permute.xlu0 %893 }
 0x10a   : > { %v896_v45 = vpop.permute.xlu1 %895  ;;  %v1040_v40 = vsel %vm1026_vm13, %v1023_v31, %v894_v17 }
 0x10b   : > { %v1042_v52 = vsel %vm1026_vm13, %v1025_v36, %v896_v45 }
 0x10d   : > { %v913_v47 = vpop.permute.xlu0 %912 }
 0x10e   : > { %v915_v21 = vpop.permute.xlu1 %914  ;;  %v1057_v53 = vsel %vm1043_vm14, %v1040_v40, %v913_v47 }
 0x10f   : > { %v1059_v55 = vsel %vm1043_vm14, %v1042_v52, %v915_v21  ;;  %1579 = vmatprep.mubr.msk.bf16.mxu1 %vm1075_vm15, %v1057_v53 }
 0x110   : > { %1580 = vmatmul.mubr.msk.bf16.gmra.mrb[4].mxu1 %vm1075_vm15, %v1059_v55 }
 0x186   : > { %v1569_v59 = vpop.f32.mrb[0].mxu0 }
 0x187   : > { %1289 = vst.msk [vmem:[%s2330_s23 + $0x10] sm:$0xff] %vm941_vm8, %v1569_v59  ;;  %v1130_v62 = vpop.f32.mrb[1].mxu0  ;;  %v1232_v54 = vmul.f32 %v1569_v59, %v1569_v59  ;;  %v1196_v16 = vsel %vm941_vm8, %v1569_v59, 0.0 }
 0x188   : > { %v1230_v8 = vmul.f32 %v1130_v62, %v1130_v62  ;;  %1287 = vst.msk [vmem:[%s2330_s23] sm:$0xff] %vm941_vm8, %v1130_v62  ;;  %v1570_v38 = vpop.f32.mrb[2].mxu0  ;;  %v1193_v56 = vsel %vm941_vm8, %v1130_v62, 0.0 }
 0x189   : > { %1290 = vst.msk [vmem:[%s2330_s23 + $0x18] sm:$0xff] %vm941_vm8, %v1570_v38  ;;  %v1133_v20 = vpop.f32.mrb[3].mxu0  ;;  %v1233_v57 = vmul.f32 %v1570_v38, %v1570_v38  ;;  %v1249_v37 = vsel %vm941_vm8, %v1232_v54, 0.0  ;;  %v1198_v63 = vsel %vm941_vm8, %v1570_v38, 0.0 }
 0x18a   : > { %v1194_v14 = vsel %vm941_vm8, %v1133_v20, 0.0  ;;  %v1231_v24 = vmul.f32 %v1133_v20, %v1133_v20  ;;  %1288 = vst.msk [vmem:[%s2330_s23 + $0x8] sm:$0xff] %vm941_vm8, %v1133_v20  ;;  %v1246_v12 = vsel %vm941_vm8, %v1230_v8, 0.0 }
 0x18b   : > { %v1195_v15 = vadd.f32 %v1194_v14, %v1193_v56  ;;  %v1251_v13 = vsel %vm941_vm8, %v1233_v57, 0.0 }
 0x18c   : > { %v1247_v27 = vsel %vm941_vm8, %v1231_v24, 0.0 }
 0x18d   : > { %v1197_v29 = vadd.f32 %v1196_v16, %v1195_v15  ;;  %v1248_v60 = vadd.f32 %v1247_v27, %v1246_v12 }
 0x18f   : > { %v1250_v10 = vadd.f32 %v1249_v37, %v1248_v60  ;;  %v1199_v2 = vadd.f32 %v1198_v63, %v1197_v29 }
 0x191   : > { %v1252_v19 = vadd.f32 %v1251_v13, %v1250_v10 }
 0x1a6   : > { %v1573_v7 = vpop.f32.mrb[4].mxu0 }
 0x1a7   : > { %1293 = vst.msk [vmem:[%s2330_s23 + $0x30] sm:$0xff] %vm941_vm8, %v1573_v7  ;;  %v1146_v1 = vpop.f32.mrb[5].mxu0  ;;  %v1236_v42 = vmul.f32 %v1573_v7, %v1573_v7  ;;  %v1204_v6 = vsel %vm941_vm8, %v1573_v7, 0.0 }
 0x1a8   : > { %v1200_v5 = vsel %vm941_vm8, %v1146_v1, 0.0  ;;  %v1234_v25 = vmul.f32 %v1146_v1, %v1146_v1  ;;  %1291 = vst.msk [vmem:[%s2330_s23 + $0x20] sm:$0xff] %vm941_vm8, %v1146_v1  ;;  %v1574_v44 = vpop.f32.mrb[6].mxu0 }
 0x1a9   : > { %v1201_v48 = vadd.f32 %v1200_v5, %v1199_v2  ;;  %1294 = vst.msk [vmem:[%s2330_s23 + $0x38] sm:$0xff] %vm941_vm8, %v1574_v44  ;;  %v1149_v11 = vpop.f32.mrb[7].mxu0  ;;  %v1237_v30 = vmul.f32 %v1574_v44, %v1574_v44  ;;  %v1257_v34 = vsel %vm941_vm8, %v1236_v42, 0.0  ;;  %v1206_v35 = vsel %vm941_vm8, %v1574_v44, 0.0 }
 0x1aa   : > { %v1253_v22 = vsel %vm941_vm8, %v1234_v25, 0.0  ;;  %v1202_v26 = vsel %vm941_vm8, %v1149_v11, 0.0  ;;  %v1235_v28 = vmul.f32 %v1149_v11, %v1149_v11  ;;  %1292 = vst.msk [vmem:[%s2330_s23 + $0x28] sm:$0xff] %vm941_vm8, %v1149_v11 }
 0x1ab   : > { %v1254_v18 = vadd.f32 %v1253_v22, %v1252_v19  ;;  %v1203_v0 = vadd.f32 %v1202_v26, %v1201_v48  ;;  %v1259_v41 = vsel %vm941_vm8, %v1237_v30, 0.0 }
 0x1ac   : > { %v1255_v32 = vsel %vm941_vm8, %v1235_v28, 0.0 }
 0x1ad   : > { %v1205_v33 = vadd.f32 %v1204_v6, %v1203_v0  ;;  %v1256_v9 = vadd.f32 %v1255_v32, %v1254_v18 }
 0x1af   : > { %v1258_v3 = vadd.f32 %v1257_v34, %v1256_v9  ;;  %v1207_v39 = vadd.f32 %v1206_v35, %v1205_v33 }
 0x1b1   : > { %v1260_v43 = vadd.f32 %v1259_v41, %v1258_v3 }
 0x1c6   : > { %v1577_v46 = vpop.f32.mrb[0].mxu1 }
 0x1c7   : > { %1297 = vst.msk [vmem:[%s2330_s23 + $0x50] sm:$0xff] %vm941_vm8, %v1577_v46  ;;  %v1162_v49 = vpop.f32.mrb[1].mxu1  ;;  %v1240_v4 = vmul.f32 %v1577_v46, %v1577_v46  ;;  %v1212_v47 = vsel %vm941_vm8, %v1577_v46, 0.0 }
 0x1c8   : > { %v1208_v50 = vsel %vm941_vm8, %v1162_v49, 0.0  ;;  %v1238_v17 = vmul.f32 %v1162_v49, %v1162_v49  ;;  %1295 = vst.msk [vmem:[%s2330_s23 + $0x40] sm:$0xff] %vm941_vm8, %v1162_v49  ;;  %v1578_v61 = vpop.f32.mrb[2].mxu1 }
 0x1c9   : > { %v1209_v51 = vadd.f32 %v1208_v50, %v1207_v39  ;;  %1298 = vst.msk [vmem:[%s2330_s23 + $0x58] sm:$0xff] %vm941_vm8, %v1578_v61  ;;  %v1165_v45 = vpop.f32.mrb[3].mxu1  ;;  %v1241_v52 = vmul.f32 %v1578_v61, %v1578_v61  ;;  %v1265_v59 = vsel %vm941_vm8, %v1240_v4, 0.0  ;;  %v1214_v62 = vsel %vm941_vm8, %v1578_v61, 0.0 }
 0x1ca   : > { %v1261_v23 = vsel %vm941_vm8, %v1238_v17, 0.0  ;;  %v1210_v58 = vsel %vm941_vm8, %v1165_v45, 0.0  ;;  %v1239_v31 = vmul.f32 %v1165_v45, %v1165_v45  ;;  %1296 = vst.msk [vmem:[%s2330_s23 + $0x48] sm:$0xff] %vm941_vm8, %v1165_v45 }
 0x1cb   : > { %v1262_v36 = vadd.f32 %v1261_v23, %v1260_v43  ;;  %v1211_v40 = vadd.f32 %v1210_v58, %v1209_v51  ;;  %v1267_v20 = vsel %vm941_vm8, %v1241_v52, 0.0 }
 0x1cc   : > { %v1263_v21 = vsel %vm941_vm8, %v1239_v31, 0.0 }
 0x1cd   : > { %v1213_v53 = vadd.f32 %v1212_v47, %v1211_v40  ;;  %v1264_v55 = vadd.f32 %v1263_v21, %v1262_v36 }
 0x1cf   : > { %v1266_v8 = vadd.f32 %v1265_v59, %v1264_v55  ;;  %v1215_v38 = vadd.f32 %v1214_v62, %v1213_v53 }
 0x1d1   : > { %v1268_v54 = vadd.f32 %v1267_v20, %v1266_v8 }
 0x1e3   : > { %v1581_v56 = vpop.f32.mrb[4].mxu1 }
 0x1e4   : > { %1301 = vst.msk [vmem:[%s2330_s23 + $0x70] sm:$0xff] %vm941_vm8, %v1581_v56  ;;  %v1178_v14 = vpop.f32.mrb[5].mxu1  ;;  %v1244_v27 = vmul.f32 %v1581_v56, %v1581_v56  ;;  %v1220_v2 = vsel %vm941_vm8, %v1581_v56, 0.0 }
 0x1e5   : > { %v1216_v24 = vsel %vm941_vm8, %v1178_v14, 0.0  ;;  %v1242_v15 = vmul.f32 %v1178_v14, %v1178_v14  ;;  %1299 = vst.msk [vmem:[%s2330_s23 + $0x60] sm:$0xff] %vm941_vm8, %v1178_v14  ;;  %v1582_v16 = vpop.f32.mrb[6].mxu1 }
 0x1e6   : > { %v1217_v12 = vadd.f32 %v1216_v24, %v1215_v38  ;;  %1302 = vst.msk [vmem:[%s2330_s23 + $0x78] sm:$0xff] %vm941_vm8, %v1582_v16  ;;  %v1181_v57 = vpop.f32.mrb[7].mxu1  ;;  %v1245_v13 = vmul.f32 %v1582_v16, %v1582_v16  ;;  %v1273_v5 = vsel %vm941_vm8, %v1244_v27, 0.0  ;;  %v1222_v25 = vsel %vm941_vm8, %v1582_v16, 0.0 }
 0x1e7   : > { %v1269_v29 = vsel %vm941_vm8, %v1242_v15, 0.0  ;;  %v1218_v60 = vsel %vm941_vm8, %v1181_v57, 0.0  ;;  %v1243_v37 = vmul.f32 %v1181_v57, %v1181_v57  ;;  %1300 = vst.msk [vmem:[%s2330_s23 + $0x68] sm:$0xff] %vm941_vm8, %v1181_v57 }
 0x1e8   : > { %v1270_v63 = vadd.f32 %v1269_v29, %v1268_v54  ;;  %v1219_v10 = vadd.f32 %v1218_v60, %v1217_v12  ;;  %v1275_v11 = vsel %vm941_vm8, %v1245_v13, 0.0 }
 0x1e9   : > { %v1271_v19 = vsel %vm941_vm8, %v1243_v37, 0.0 }
 0x1ea   : > { %v1221_v7 = vadd.f32 %v1220_v2, %v1219_v10  ;;  %v1272_v1 = vadd.f32 %v1271_v19, %v1270_v63 }
 0x1ec   : > { %v1223_v44 = vadd.f32 %v1222_v25, %v1221_v7  ;;  %v1274_v48 = vadd.f32 %v1273_v5, %v1272_v1 }
 0x1ee   : > { %v1224_v42 = vrot.slane %v1223_v44, 4  ;;  %v1276_v22 = vadd.f32 %v1275_v11, %v1274_v48 }
 0x1f0   : > { %v1225_v26 = vadd.f32 %v1224_v42, %v1223_v44  ;;  %v1277_v28 = vrot.slane %v1276_v22, 4 }
 0x1f2   : > { %v1226_v18 = vrot.slane %v1225_v26, 2  ;;  %v1278_v0 = vadd.f32 %v1277_v28, %v1276_v22 }
 0x1f4   : > { %v1227_v6 = vadd.f32 %v1226_v18, %v1225_v26  ;;  %v1279_v30 = vrot.slane %v1278_v0, 2 }
 0x1f6   : > { %v1228_v32 = vrot.slane %v1227_v6, 1  ;;  %v1280_v33 = vadd.f32 %v1279_v30, %v1278_v0 }
 0x1f8   : > { %v1281_v9 = vrot.slane %v1280_v33, 1  ;;  %v1229_v34 = vadd.f32 %v1228_v32, %v1227_v6 }
 0x1fa   : > { %v1282_v35 = vadd.f32 %v1281_v9, %v1280_v33 }
 0x1fc   : > { %v1284_v3 = vsel %vm1283_vm0, %v1229_v34, %v1282_v35 }
 0x1fd   : > { %1286 = vst.msk [vmem:[%s315_s29] sm:$0x3] %vm1285_vm1, %v1284_v3 }
 0x1fe PF: > { %s15_s19 = sadd.s32 1, %s1693_s19   ;;  %s2427_s15 = smov %s1685_s17 }
 0x1ff   : > { %p12_p10 = scmp.ge.s32.totalorder %s15_s19, 6   ;;  %s2428_s16 = smov %s1689_s18 }
 0x200   : > { %s2429_s17 = smov %s2432_s20  ;;  %s2430_s18 = smov %s2436_s21 }
 0x201   :  { %14 = sbr.rel (!%p12_p10) target bundleno = 3 (0x3), region = 77 }

// kernel: unet_conv_block.4
= control target key start
LH: loop header
LB: loop body
LE: loop exit
PB: predicated region body
PF: predicated region fallthrough
CT: control target
= control target key end

     0   :  { %s2300_s21 = smov 0   ;;  %s2302_s22 = smov 0   ;;  %s3324_s0 = inlined_call_operand.vmem [shape: f32[2,24,18,8], index: 0, kind: input, shape index: {}, may-alias: {0,1}]   ;;  %s3325_s1 = inlined_call_operand.vmem [shape: f32[2,24,18,8], index: 1, kind: input, shape index: {}, may-alias: {0,1}]   ;;  %s3326_s2 = inlined_call_operand.vmem [shape: f32[1,8], index: 2, kind: input, shape index: {}]   ;;  %s3327_s3 = inlined_call_operand.vmem [shape: f32[1,8], index: 3, kind: input, shape index: {}]   ;;  %s3328_s4 = inlined_call_operand.vmem [shape: bf16[72,8], index: 4, kind: input, shape index: {}]   ;;  %s3329_s5 = inlined_call_operand.vmem [shape: f32[2,16,16,8], index: 5, kind: output, shape index: {0}]   ;;  %s3330_s6 = inlined_call_operand.vmem [shape: f32[2,2,2,8], index: 6, kind: output, shape index: {1}]  }
   0x1   :  { %s2304_s23 = smov 0   ;;  %s2306_s24 = smov 0  }
   0x2   :  { %s2308_s25 = smov 0  }
   0x3 LB: > { %s26_s26 = sadd.s32 1, %s2247_s23  ;;  %s29_s27 = sadd.s32 1, %s2251_s24  ;;  %s2255_s25 = sphi %s2308_s25, %s17_s25   ;;  %s2251_s24 = sphi %s2306_s24, %s3435_s24   ;;  %s2247_s23 = sphi %s2304_s23, %s3434_s23   ;;  %s2243_s22 = sphi %s2302_s22, %s3433_s22   ;;  %s2239_s21 = sphi %s2300_s21, %s3432_s21  }
   0x4   : > { %p27_p0 = scmp.ge.s32.totalorder %s26_s26, 2  ;;  %p1751_p1 = scmp.ge.s32.totalorder %s2255_s25, 1 }
   0x5   : > { %p265_p2 = scmp.lt.s32.totalorder %s2255_s25, 5 }
   0x6   : > { %s3437_s26 = smov (%p27_p0, %s26_s26), 0  ;;  %s3439_s27 = smov (!%p27_p0, %s29_s27), %s2251_s24 }
   0x7   : > { %p266_p3 = pnand %p1751_p1, %p265_p2  ;;  %p31_p4 = scmp.ge.s32.totalorder %s3439_s27, 2 }
   0x8   : > { %s2333_s28 = sshll.u32 (!%p266_p3), %s2239_s21, 3  ;;  %p326_p5 = scmp.lt.s32.totalorder (!%p266_p3), %s2243_s22, 1  ;;  %v516_v0 = vlaneseq (!%p266_p3)  ;;  %v2356_v7 = vld [vmem:[%s3326_s2] ss:$0 sm:$0xff] (!%p266_p3)  ;;  %v2213_v63 = vld [vmem:[%s3328_s4 + $0x8] sm:$0xff] (!%p266_p3)  }
   0x9   : > { %s3441_s27 = smov (%p31_p4, %s3439_s27), 0  ;;  %269 = sbr.rel (%p266_p3) target bundleno = 518 (0x206), region = 40 }
   0xa   : > { %p328_p6 = scmp.lt.s32.totalorder (!%p266_p3), %s2333_s28, 23  ;;  %v2337_v1 = vstv (!%p266_p3), %s2333_s28  ;;  %v2344_v3 = vshrl.u32 (!%p266_p3), %v516_v0, 7  ;;  %v2363_v8 = vld [vmem:[%s3327_s3] ss:$0 sm:$0xff] (!%p266_p3)  ;;  %s1789_s17 = sadd.s32 (!%p266_p3), 8, %s2333_s28 }
   0xb   : > { %v508_v2 = vadd.s32 (!%p266_p3), 2, %v2337_v1  ;;  %v507_v4 = vadd.s32 (!%p266_p3), 1, %v2337_v1  ;;  %v509_v5 = vadd.s32 (!%p266_p3), 3, %v2337_v1  ;;  %vm520_vm2 = vcmp.ge.s32.totalorder (!%p266_p3), %v2337_v1, 1  ;;  %p341_p7 = scmp.lt.s32.totalorder (!%p266_p3), %s1789_s17, 23  ;;  %s2257_s18 = smov (!%p266_p3), 24  }
   0xc   : > { %v2349_v6 = vadd.s32 (!%p266_p3), 16, %v2344_v3  ;;  %vm530_vm3 = vcmp.le.s32.totalorder (!%p266_p3), %v2337_v1, 16  ;;  %v2366_v9 = vadd.s32 (!%p266_p3), 6, %v2337_v1  ;;  %vm3332_vm7 = vcmp.ge.s32.totalorder (!%p266_p3), %v2344_v3, 1  ;;  %s2259_s10 = smov (!%p266_p3), 16   ;;  %p354_p8 = scmp.lt.s32.totalorder (!%p266_p3), %s2333_s28, 15 }
   0xd   : > { %vm522_vm0 = vcmp.ge.s32.totalorder (!%p266_p3), %v508_v2, 1  ;;  %vm532_vm1 = vcmp.le.s32.totalorder (!%p266_p3), %v508_v2, 16  ;;  %vm521_vm4 = vcmp.ge.s32.totalorder (!%p266_p3), %v507_v4, 1  ;;  %vm531_vm5 = vcmp.le.s32.totalorder (!%p266_p3), %v507_v4, 16  ;;  %vm2461_vm13 = vmand (!%p266_p3), %vm520_vm2, %vm530_vm3  ;;  %p364_p9 = scmp.lt.s32.totalorder (!%p266_p3), %s2239_s21, 1 }
   0xe   : > { %vm2373_vm6 = vmand (!%p266_p3), %vm522_vm0, %vm532_vm1  ;;  %vm523_vm8 = vcmp.ge.s32.totalorder (!%p266_p3), %v509_v5, 1  ;;  %vm533_vm9 = vcmp.le.s32.totalorder (!%p266_p3), %v509_v5, 16  ;;  %v2379_v11 = vadd.s32 (!%p266_p3), 4, %v2337_v1  ;;  %vm3334_vm10 = vcmp.le.s32.totalorder (!%p266_p3), %v2349_v6, 16 }
   0xf   : > { %v2386_v15 = vadd.s32 (!%p266_p3), 7, %v2337_v1  ;;  %v2389_v16 = vadd.s32 (!%p266_p3), 8, %v2337_v1  ;;  %vm2397_vm11 = vmand (!%p266_p3), %vm521_vm4, %vm531_vm5  ;;  %v2403_v23 = vadd.s32 (!%p266_p3), 9, %v2337_v1  ;;  %vm536_vm14 = vcmp.le.s32.totalorder (!%p266_p3), %v2366_v9, 16 }
  0x10   : > { %s3443_s22 = smov (!%p326_p5, %s2243_s22), 1  ;;  %vm2410_vm12 = vmand %vm523_vm8, %vm533_vm9  ;;  %vm3331_vm4 = vcmask 1045504   ;;  %vm3333_vm5 = vcmask 1046528   ;;  %s3445_s17 = smov (!%p341_p7, %s1789_s17), 23 }
  0x11   : > { %s329_s29 = scalar_select %p328_p6, %s2333_s28, 23  ;;  %vm2423_vm15 = vmand %vm2373_vm6, %vm3332_vm7  ;;  %vm527_vm8 = vcmp.ge.s32.totalorder %v2386_v15, 1  ;;  %vm537_vm9 = vcmp.le.s32.totalorder %v2386_v15, 16  ;;  %vm539_vm3 = vcmp.le.s32.totalorder %v2403_v23, 16 }
  0x12   : > { %s1842_s30 = smul.u32 72, %s3443_s22  ;;  %vm2436_vm0 = vmand %vm2397_vm11, %vm3332_vm7  ;;  %s3447_s28 = smov (!%p354_p8, %s2333_s28), 15 }
  0x13   : > { %s1841_s7 = smul.u32 3, %s329_s29  ;;  %vm2449_vm1 = vmand %vm2410_vm12, %vm3332_vm7  ;;  %s2258_s29 = smov 48  }
  0x14   : > { %s1843_s19 = smul.u32 3, %s3445_s17  ;;  %s2261_s17 = smov 32  }
  0x15   : > { %s332_s8 = sadd.s32 %s1842_s30, %s1841_s7  ;;  %s2264_s7 = smov 64  }
  0x16   : > { %s1753_s11 = sshll.u32 %s332_s8, 3  ;;  %s2555_s20 = sadd.s32 %s1843_s19, %s1842_s30 }
  0x17   : > { %s2371_s16 = scalar_lea.vmem %s3324_s0, %s1753_s11  ;;  %s2260_s11 = smov 8  }
  0x18   : > { %v377_v12 = vld [vmem:[%s2371_s16 + $0x30] sm:$0xff]  ;;  %v378_v13 = vld [vmem:[%s2371_s16 + $0x38] sm:$0xff]  ;;  %v375_v19 = vld [vmem:[%s2371_s16 + $0x20] sm:$0xff]  ;;  %s2262_s19 = smov 40   ;;  %s2263_s30 = smov 56  }
  0x19   : > { %v374_v14 = vld [vmem:[%s2371_s16 + $0x18] sm:$0xff]  ;;  %v414_v17 = vmul.f32 %v2356_v7, %v377_v12  ;;  %v415_v18 = vmul.f32 %v2356_v7, %v378_v13  ;;  %v380_v22 = vld [vmem:[%s2371_s16 + $0x48] sm:$0xff]  ;;  %v412_v24 = vmul.f32 %v2356_v7, %v375_v19  ;;  %v381_v25 = vld [vmem:[%s2371_s16 + $0x50] sm:$0xff]  ;;  %s1756_s8 = sshll.u32 %s2555_s20, 3  ;;  %s3449_s21 = smov (!%p364_p9, %s2239_s21), 1 }
  0x1a   : > { %v411_v20 = vmul.f32 %v2356_v7, %v374_v14  ;;  %v417_v26 = vmul.f32 %v2356_v7, %v380_v22  ;;  %v371_v28 = vld [vmem:[%s2371_s16] sm:$0xff]  ;;  %v418_v33 = vmul.f32 %v2356_v7, %v381_v25  ;;  %v372_v34 = vld [vmem:[%s2371_s16 + $0x8] sm:$0xff]  ;;  %v373_v35 = vld [vmem:[%s2371_s16 + $0x10] sm:$0x3]  ;;  %s2837_s12 = scalar_lea.vmem %s3325_s1, %s1756_s8 }
  0x1b   : > { %v451_v29 = vadd.f32 %v2363_v8, %v414_v17  ;;  %v452_v30 = vadd.f32 %v2363_v8, %v415_v18  ;;  %v449_v36 = vadd.f32 %v2363_v8, %v412_v24  ;;  %v408_v39 = vmul.f32 %v2356_v7, %v371_v28  ;;  %v376_v55 = vld [vmem:[%s2371_s16 + $0x28] sm:$0x3]  ;;  %v379_v0 = vld [vmem:[%s2371_s16 + $0x40] sm:$0x3] }
  0x1c   : > { %v448_v32 = vadd.f32 %v2363_v8, %v411_v20  ;;  %v454_v38 = vadd.f32 %v2363_v8, %v417_v26  ;;  %v409_v40 = vmul.f32 %v2356_v7, %v372_v34  ;;  %v455_v44 = vadd.f32 %v2363_v8, %v418_v33 }
  0x1d   : > { %v481_v41 = vmax.f32 %v451_v29, 0.0  ;;  %v482_v42 = vmax.f32 %v452_v30, 0.0  ;;  %v479_v46 = vmax.f32 %v449_v36, 0.0  ;;  %v410_v48 = vmul.f32 %v2356_v7, %v373_v35  ;;  %v2212_v36 = vld [vmem:[%s3328_s4] sm:$0xff]  }
  0x1e   : > { %v478_v43 = vmax.f32 %v448_v32, 0.0  ;;  %v484_v47 = vmax.f32 %v454_v38, 0.0  ;;  %v445_v49 = vadd.f32 %v2363_v8, %v408_v39  ;;  %v485_v54 = vmax.f32 %v455_v44, 0.0  ;;  %1803 = vmatprep.subr.bf16.mxu0 %v2212_v36  ;;  %1829 = vmatprep.subr.bf16.mxu1 %v2212_v36 }
  0x1f   : > { %v2467_v51 = vsel %vm2423_vm15, %v481_v41, 0.0  ;;  %v2471_v52 = vsel %vm2373_vm6, %v482_v42, 0.0  ;;  %v2482_v57 = vsel %vm2397_vm11, %v479_v46, 0.0  ;;  %v446_v61 = vadd.f32 %v2363_v8, %v409_v40  ;;  %vm2504_vm15 = vmand %vm2461_vm13, %vm3332_vm7  ;;  %v382_v46 = vld [vmem:[%s2371_s16 + $0x58] sm:$0x3]  ;;  %1804 = vmatpush3.bf16.msra.mxu0 %v2212_v36  ;;  %1834 = vmatpush3.bf16.msra.mxu1 %v2212_v36 }
  0x20   : > { %v2475_v53 = vsel %vm2436_vm0, %v478_v43, 0.0  ;;  %v1897_v56 = vpack.i.bf16 %v2471_v52, %v2467_v51  ;;  %v2486_v58 = vsel %vm2449_vm1, %v484_v47, 0.0  ;;  %v2496_v60 = vsel %vm2410_vm12, %v485_v54, 0.0  ;;  %vm2518_vm0 = vmand %vm2461_vm13, %vm3334_vm10  ;;  %1805 = vmatprep.subr.bf16.mxu0 %v2213_v63  ;;  %1830 = vmatprep.subr.bf16.mxu1 %v2213_v63 }
  0x21   : > { %v1892_v59 = vpack.i.bf16 %v2482_v57, %v2475_v53  ;;  %v447_v62 = vadd.f32 %v2363_v8, %v410_v48  ;;  %v2512_v2 = vpack.i.bf16 %v2496_v60, %v2486_v58  ;;  %v475_v4 = vmax.f32 %v445_v49, 0.0  ;;  %vm2529_vm1 = vmand %vm2373_vm6, %vm3334_vm10 }
  0x22   : > { %1898 = vrot.lane.b32.xlu1 %v1897_v56, %s2257_s18  ;;  %v413_v12 = vmul.f32 %v2356_v7, %v376_v55  ;;  %v726_v13 = vrot.slane %v2475_v53, 2  ;;  %v476_v17 = vmax.f32 %v446_v61, 0.0  ;;  %v727_v19 = vrot.slane %v2482_v57, 2  ;;  %vm2542_vm6 = vmand %vm2397_vm11, %vm3334_vm10 }
  0x23   : > { %1893 = vrot.lane.b32.xlu0 %v1892_v59, %s2257_s18  ;;  %v477_v18 = vmax.f32 %v447_v62, 0.0  ;;  %v685_v20 = vrot.slane %v2475_v53, 1  ;;  %v2548_v22 = vsel %vm2504_vm15, %v475_v4, 0.0  ;;  %v686_v25 = vrot.slane %v2482_v57, 1  ;;  %1806 = vmatpush3.bf16.msra.mxu0 %v2213_v63 }
  0x24   : > { %v450_v24 = vadd.f32 %v2363_v8, %v413_v12  ;;  %v416_v26 = vmul.f32 %v2356_v7, %v379_v0  ;;  %v2559_v21 = vsel %vm2461_vm13, %v476_v17, 0.0  ;;  %v721_v29 = vrot.slane %v2548_v22, 2  ;;  %1835 = vmatpush3.bf16.msra.mxu1 %v2213_v63 }
  0x25   : > { %v618_v28 = vsel %vm2518_vm0, %v477_v18, 0.0  ;;  %v680_v30 = vrot.slane %v2548_v22, 1  ;;  %vm3358_vm11 = vcmp.ge.s32.totalorder %v2366_v9, 1  ;;  %v722_v32 = vrot.slane %v2559_v21, 2 }
  0x26   : > { %vm2569_vm15 = vmand %vm3358_vm11, %vm536_vm14  ;;  %1908 = vrot.lane.b32.xlu1 %v2512_v2, %s2258_s29  ;;  %v724_v33 = vrot.slane %v618_v28, 2  ;;  %v681_v34 = vrot.slane %v2559_v21, 1  ;;  %v683_v35 = vrot.slane %v618_v28, 1  ;;  %v480_v37 = vmax.f32 %v450_v24, 0.0 }
  0x27   : > { %vm2581_vm13 = vmand %vm2569_vm15, %vm3332_vm7  ;;  %1903 = vrot.lane.b32.xlu0 %v1897_v56, %s2258_s29  ;;  %v728_v38 = vsel %vm3331_vm4, %v726_v13, %v727_v19  ;;  %v687_v39 = vsel %vm3333_vm5, %v685_v20, %v686_v25  ;;  %v453_v40 = vadd.f32 %v2363_v8, %v416_v26  ;;  %v723_v43 = vsel %vm3331_vm4, %v721_v29, %v722_v32 }
  0x28   : > { %vm2596_vm14 = vmand %vm2410_vm12, %vm3334_vm10  ;;  %v725_v44 = vsel %vm3331_vm4, %v722_v32, %v724_v33  ;;  %v682_v45 = vsel %vm3333_vm5, %v680_v30, %v681_v34  ;;  %v684_v27 = vsel %vm3333_vm5, %v681_v34, %v683_v35  ;;  %v621_v50 = vsel %vm2542_vm6, %v480_v37, 0.0  ;;  %v2214_v30 = vld [vmem:[%s3328_s4 + $0x10] sm:$0xff]   ;;  %v383_v34 = vld [vmem:[%s2371_s16 + $0x60] sm:$0xff] }
  0x29   : > { %vm2604_vm0 = vmand %vm2569_vm15, %vm3334_vm10  ;;  %v1922_v48 = vpack.i.bf16 %v725_v44, %v723_v43  ;;  %v1912_v49 = vpack.i.bf16 %v684_v27, %v682_v45  ;;  %v483_v54 = vmax.f32 %v453_v40, 0.0  ;;  %v729_v15 = vrot.slane %v621_v50, 2  ;;  %v384_v35 = vld [vmem:[%s2371_s16 + $0x68] sm:$0xff]  ;;  %1807 = vmatprep.subr.bf16.mxu0 %v2214_v30  ;;  %1831 = vmatprep.subr.bf16.mxu1 %v2214_v30  ;;  %v385_v43 = vld [vmem:[%s2371_s16 + $0x70] sm:$0x3] }
  0x2a   : > { %vm2617_vm12 = vmand %vm527_vm8, %vm537_vm9  ;;  %v688_v56 = vrot.slane %v621_v50, 1  ;;  %v690_v59 = vrot.slane %v2467_v51, 1  ;;  %v691_v61 = vrot.slane %v2471_v52, 1  ;;  %v731_v4 = vrot.slane %v2467_v51, 2  ;;  %v386_v44 = vld [vmem:[%s2371_s16 + $0x78] sm:$0xff]  ;;  %1808 = vmatpush3.bf16.msra.mxu0 %v2214_v30  ;;  %1836 = vmatpush3.bf16.msra.mxu1 %v2214_v30 }
  0x2b   : > { %vm2627_vm11 = vmand %vm2617_vm12, %vm3332_vm7  ;;  %1923 = vrot.lane.b32.xlu1 %v1922_v48, %s2259_s10  ;;  %1913 = vrot.lane.b32.xlu0 %v1912_v49, %s2260_s11  ;;  %v624_v0 = vsel %vm2529_vm1, %v483_v54, 0.0  ;;  %v732_v5 = vrot.slane %v2471_v52, 2  ;;  %v419_v12 = vmul.f32 %v2356_v7, %v382_v46  ;;  %vm3373_vm9 = vcmp.le.s32.totalorder %v2389_v16, 16  ;;  %v387_v49 = vld [vmem:[%s2371_s16 + $0x80] sm:$0xff]  ;;  %v2215_v50 = vld [vmem:[%s3328_s4 + $0x18] sm:$0xff]  }
  0x2c   : > { %vm2637_vm8 = vmand %vm2617_vm12, %vm3334_vm10  ;;  %vm3374_vm6 = vcmp.ge.s32.totalorder %v2389_v16, 1  ;;  %v3375_v13 = vmov 0  ;;  %v730_v17 = vsel %vm3331_vm4, %v727_v19, %v729_v15  ;;  %v689_v18 = vsel %vm3333_vm5, %v686_v25, %v688_v56  ;;  %v388_v56 = vld [vmem:[%s2371_s16 + $0x88] sm:$0x3]  ;;  %1809 = vmatprep.subr.bf16.mxu0 %v2215_v50  ;;  %1832 = vmatprep.subr.bf16.mxu1 %v2215_v50 }
  0x2d   : > { %vm2655_vm2 = vmand %vm3374_vm6, %vm3373_vm9  ;;  %v692_v14 = vsel %vm3333_vm5, %v690_v59, %v691_v61  ;;  %v693_v20 = vrot.slane %v624_v0, 1  ;;  %v1927_v16 = vpack.i.bf16 %v730_v17, %v728_v38  ;;  %v1917_v24 = vpack.i.bf16 %v689_v18, %v687_v39  ;;  %v389_v18 = vld [vmem:[%s2371_s16 + $0x90] sm:$0xff] }
  0x2e   : > { %v3376_v13 = vsel %vm2655_vm2, 4294967295, %v3375_v13  ;;  %vm2666_vm1 = vmand %vm2655_vm2, %vm3332_vm7  ;;  %v3379_v19 = vmov 0  ;;  %v734_v26 = vrot.slane %v624_v0, 2  ;;  %v456_v28 = vadd.f32 %v2363_v8, %v419_v12  ;;  %1810 = vmatpush3.bf16.msra.mxu0 %v2215_v50  ;;  %1837 = vmatpush3.bf16.msra.mxu1 %v2215_v50 }
  0x2f   : > { %vm2674_vm9 = vmand %vm2655_vm2, %vm3334_vm10  ;;  %v694_v25 = vsel %vm3333_vm5, %v691_v61, %v693_v20  ;;  %vm3381_vm4 = vcmp.ge.s32.totalorder %v2403_v23, 1  ;;  %1928 = vrot.lane.b32.xlu1 %v1927_v16, %s2259_s10  ;;  %1918 = vrot.lane.b32.xlu0 %v1917_v24, %s2260_s11  ;;  %v695_v33 = vrot.slane %v2486_v58, 1  ;;  %v696_v23 = vrot.slane %v2496_v60, 1 }
  0x30   : > { %v3380_v19 = vsel %vm2674_vm9, 4294967295, %v3379_v19  ;;  %vm2685_vm7 = vmand %vm3381_vm4, %vm539_vm3  ;;  %v2694_v32 = vpack.i.bf16 %v694_v25, %v692_v14  ;;  %vm3384_vm4 = vcmp.ge.s32.totalorder %v2344_v3, 1  ;;  %vm3387_vm6 = vcmask 1045504  }
  0x31   : > { %vm2704_vm3 = vmand %vm2685_vm7, %vm3384_vm4  ;;  %v733_v37 = vsel %vm3387_vm6, %v731_v4, %v732_v5  ;;  %v486_v39 = vmax.f32 %v456_v28, 0.0  ;;  %vm534_vm10 = vcmp.le.s32.totalorder %v2379_v11, 16  ;;  %vm3389_vm9 = vcmp.le.s32.totalorder %v2349_v6, 16 }
  0x32   : > { %vm3388_vm5 = vmmov %vm3387_vm6  ;;  %v3390_v40 = vmov 0  ;;  %v511_v45 = vadd.s32 5, %v2337_v1  ;;  %v420_v46 = vmul.f32 %v2356_v7, %v383_v34  ;;  %v421_v48 = vmul.f32 %v2356_v7, %v384_v35 }
  0x33   : > { %v735_v38 = vsel %vm3388_vm5, %v732_v5, %v734_v26  ;;  %vm2715_vm2 = vmand %vm2685_vm7, %vm3389_vm9  ;;  %v627_v27 = vsel %vm2596_vm14, %v486_v39, 0.0  ;;  %1938 = vrot.lane.b32.xlu1 %v2694_v32, %s2261_s17  ;;  %1933 = vrot.lane.b32.xlu0 %v1917_v24, %s2261_s17  ;;  %vm3392_vm5 = vcmask 1046528   ;;  %vm3393_vm14 = vcmp.ge.s32.totalorder %v2379_v11, 1 }
  0x34   : > { %v3391_v40 = vsel %vm2715_vm2, 4294967295, %v3390_v40  ;;  %v2733_v1 = vpack.i.bf16 %v735_v38, %v733_v37  ;;  %v697_v41 = vsel %vm3392_vm5, %v695_v33, %v696_v23  ;;  %v698_v54 = vrot.slane %v627_v27, 1  ;;  %vm2740_vm9 = vmand %vm3393_vm14, %vm534_vm10 }
  0x35   : > { %v457_v59 = vadd.f32 %v2363_v8, %v420_v46  ;;  %v458_v61 = vadd.f32 %v2363_v8, %v421_v48  ;;  %v422_v63 = vmul.f32 %v2356_v7, %v385_v43  ;;  %v423_v0 = vmul.f32 %v2356_v7, %v386_v44  ;;  %vm3396_vm6 = vmmov %vm3392_vm5 }
  0x36   : > { %v699_v4 = vsel %vm3396_vm6, %v696_v23, %v698_v54  ;;  %v424_v5 = vmul.f32 %v2356_v7, %v387_v49  ;;  %vm525_vm4 = vcmp.ge.s32.totalorder %v511_v45, 1  ;;  %vm535_vm5 = vcmp.le.s32.totalorder %v511_v45, 16 }
  0x37   : > { %v736_v11 = vrot.slane %v2486_v58, 2  ;;  %vm3397_vm10 = vcmp.ge.s32.totalorder %v2344_v3, 1  ;;  %v425_v17 = vmul.f32 %v2356_v7, %v388_v56  ;;  %1948 = vrot.lane.b32.xlu1 %v2733_v1, %s2262_s19  ;;  %1943 = vrot.lane.b32.xlu0 %v1927_v16, %s2262_s19  ;;  %v2765_v14 = vpack.i.bf16 %v699_v4, %v697_v41  ;;  %vm2777_vm2 = vmand %vm525_vm4, %vm535_vm5 }
  0x38   : > { %vm2756_vm14 = vmand %vm2740_vm9, %vm3397_vm10  ;;  %v487_v20 = vmax.f32 %v457_v59, 0.0  ;;  %v488_v24 = vmax.f32 %v458_v61, 0.0  ;;  %v459_v25 = vadd.f32 %v2363_v8, %v422_v63  ;;  %vm3400_vm6 = vcmp.le.s32.totalorder %v2349_v6, 16  ;;  %v390_v61 = vld [vmem:[%s2371_s16 + $0x98] sm:$0xff] }
  0x39   : > { %vm600_vm10 = vmand %vm2740_vm9, %vm3400_vm6  ;;  %v737_v26 = vrot.slane %v2496_v60, 2  ;;  %v739_v28 = vrot.slane %v627_v27, 2  ;;  %v460_v30 = vadd.f32 %v2363_v8, %v423_v0  ;;  %v461_v33 = vadd.f32 %v2363_v8, %v424_v5 }
  0x3a   : > { %v2783_v23 = vsel %vm2756_vm14, %v487_v20, 0.0  ;;  %v2787_v34 = vsel %vm2740_vm9, %v488_v24, 0.0  ;;  %v489_v35 = vmax.f32 %v459_v25, 0.0  ;;  %v426_v37 = vmul.f32 %v2356_v7, %v389_v18  ;;  %v391_v18 = vld [vmem:[%s2371_s16 + $0xa0] sm:$0x3]  ;;  %v392_v24 = vld [vmem:[%s2371_s16 + $0xa8] sm:$0xff] }
  0x3b   : > { %v462_v38 = vadd.f32 %v2363_v8, %v425_v17  ;;  %1958 = vrot.lane.b32.xlu1 %v2765_v14, %s2263_s30  ;;  %1953 = vrot.lane.b32.xlu0 %v2694_v32, %s2263_s30  ;;  %v490_v43 = vmax.f32 %v460_v30, 0.0  ;;  %v491_v44 = vmax.f32 %v461_v33, 0.0  ;;  %vm3403_vm4 = vcmp.ge.s32.totalorder %v2344_v3, 1  ;;  %v393_v33 = vld [vmem:[%s2371_s16 + $0xb0] sm:$0xff] }
  0x3c   : > { %v630_v39 = vsel %vm600_vm10, %v489_v35, 0.0  ;;  %vm568_vm9 = vmand %vm2777_vm2, %vm3403_vm4  ;;  %vm3404_vm5 = vcmask 1045504   ;;  %v700_v46 = vrot.slane %v2783_v23, 1  ;;  %v701_v48 = vrot.slane %v2787_v34, 1 }
  0x3d   : > { %v738_v45 = vsel %vm3404_vm5, %v736_v11, %v737_v26  ;;  %vm3405_vm14 = vmmov %vm3404_vm5  ;;  %v703_v49 = vrot.slane %v630_v39, 1  ;;  %v741_v50 = vrot.slane %v2783_v23, 2  ;;  %v742_v41 = vrot.slane %v2787_v34, 2 }
  0x3e   : > { %v740_v27 = vsel %vm3405_vm14, %v737_v26, %v739_v28  ;;  %v744_v54 = vrot.slane %v630_v39, 2  ;;  %v2805_v3 = vsel %vm568_vm9, %v490_v43, 0.0  ;;  %v492_v15 = vmax.f32 %v462_v38, 0.0  ;;  %vm603_vm10 = vmand %vm2777_vm2, %vm3400_vm6  ;;  %v394_v38 = vld [vmem:[%s2371_s16 + $0xb8] sm:$0x3]  ;;  %v395_v39 = vld [vmem:[%s2837_s12] sm:$0xff] }
  0x3f   : > { %1968 = vrot.lane.b32.xlu1 %v2694_v32, %s2260_s11  ;;  %1963 = vrot.lane.b32.xlu0 %v2733_v1, %s2264_s7  ;;  %v2811_v56 = vpack.i.bf16 %v740_v27, %v738_v45  ;;  %v2815_v59 = vsel %vm2777_vm2, %v491_v44, 0.0  ;;  %vm3406_vm4 = vcmask 1046528   ;;  %v743_v0 = vsel %vm3404_vm5, %v741_v50, %v742_v41  ;;  %vm3408_vm14 = vmmov %vm3404_vm5 }
  0x40   : > { %v702_v32 = vsel %vm3406_vm4, %v700_v46, %v701_v48  ;;  %vm3407_vm9 = vmmov %vm3406_vm4  ;;  %v745_v4 = vsel %vm3408_vm14, %v742_v41, %v744_v54  ;;  %v705_v5 = vrot.slane %v2805_v3, 1  ;;  %v2828_v11 = vsel %vm603_vm10, %v492_v15, 0.0  ;;  %v396_v15 = vld [vmem:[%s2837_s12 + $0x8] sm:$0xff] }
  0x41   : > { %v704_v63 = vsel %vm3407_vm9, %v701_v48, %v703_v49  ;;  %v706_v6 = vrot.slane %v2815_v59, 1  ;;  %v427_v12 = vmul.f32 %v2356_v7, %v390_v61  ;;  %v463_v17 = vadd.f32 %v2363_v8, %v426_v37  ;;  %vm3409_vm2 = vmmov %vm3406_vm4 }
  0x42   : > { %v2845_v20 = vpack.i.bf16 %v2787_v34, %v2783_v23  ;;  %v2848_v25 = vpack.i.bf16 %v704_v63, %v702_v32  ;;  %v2852_v26 = vpack.i.bf16 %v2815_v59, %v2805_v3  ;;  %v2856_v16 = vpack.i.bf16 %v745_v4, %v743_v0  ;;  %vm3412_vm6 = vmmov %vm3409_vm2 }
  0x43   : > { %1978 = vrot.lane.b32.xlu1 %v2765_v14, %s2260_s11  ;;  %1973 = vrot.lane.b32.xlu0 %v2811_v56, %s2264_s7  ;;  %v464_v28 = vadd.f32 %v2363_v8, %v427_v12  ;;  %v493_v30 = vmax.f32 %v463_v17, 0.0  ;;  %v708_v35 = vrot.slane %v2828_v11, 1  ;;  %v428_v37 = vmul.f32 %v2356_v7, %v391_v18  ;;  %vm3414_vm10 = vmmov %vm3404_vm5 }
  0x44   : > { %v707_v43 = vsel %vm3409_vm2, %v705_v5, %v706_v6  ;;  %v429_v27 = vmul.f32 %v2356_v7, %v392_v24  ;;  %v430_v50 = vmul.f32 %v2356_v7, %v393_v33  ;;  %v431_v54 = vmul.f32 %v2356_v7, %v394_v38  ;;  %vm3418_vm4 = vmmov %vm3404_vm5 }
  0x45   : > { %v494_v44 = vmax.f32 %v464_v28, 0.0  ;;  %v2865_v45 = vsel %vm2581_vm13, %v493_v30, 0.0  ;;  %v465_v46 = vadd.f32 %v2363_v8, %v428_v37  ;;  %v432_v61 = vmul.f32 %v2356_v7, %v395_v39  ;;  %vm3411_vm13 = vmmov %vm3404_vm5 }
  0x46   : > { %v710_v48 = vrot.slane %v2865_v45, 1  ;;  %v751_v49 = vrot.slane %v2865_v45, 2  ;;  %v466_v41 = vadd.f32 %v2363_v8, %v429_v27  ;;  %v747_v4 = vrot.slane %v2815_v59, 2  ;;  %vm3422_vm14 = vmmov %vm3418_vm4 }
  0x47   : > { %1988 = vrot.lane.b32.xlu1 %v2811_v56, %s2259_s10  ;;  %1983 = vrot.lane.b32.xlu0 %v2733_v1, %s2259_s10  ;;  %v2878_v9 = vsel %vm2569_vm15, %v494_v44, 0.0  ;;  %v746_v1 = vrot.slane %v2805_v3, 2  ;;  %v495_v32 = vmax.f32 %v465_v46, 0.0  ;;  %v467_v31 = vadd.f32 %v2363_v8, %v430_v50  ;;  %vm3410_vm15 = vmmov %vm3409_vm2 }
  0x48   : > { %v711_v63 = vrot.slane %v2878_v9, 1  ;;  %v752_v0 = vrot.slane %v2878_v9, 2  ;;  %v496_v5 = vmax.f32 %v466_v41, 0.0  ;;  %v468_v12 = vadd.f32 %v2363_v8, %v431_v54 }
  0x49   : > { %v636_v17 = vsel %vm2604_vm0, %v495_v32, 0.0  ;;  %v433_v28 = vmul.f32 %v2356_v7, %v396_v15  ;;  %v497_v37 = vmax.f32 %v467_v31, 0.0  ;;  %v709_v39 = vsel %vm3412_vm6, %v706_v6, %v708_v35  ;;  %vm3413_vm0 = vmmov %vm3409_vm2 }
  0x4a   : > { %v712_v18 = vsel %vm3410_vm15, %v710_v48, %v711_v63  ;;  %v753_v24 = vsel %vm3411_vm13, %v751_v49, %v752_v0  ;;  %v713_v30 = vrot.slane %v636_v17, 1  ;;  %v754_v33 = vrot.slane %v636_v17, 2  ;;  %vm3423_vm2 = vmmov %vm3418_vm4 }
  0x4b   : > { %1998 = vrot.lane.b32.xlu1 %v2845_v20, %s2257_s18  ;;  %1993 = vrot.lane.b32.xlu0 %v2512_v2, %s2257_s18  ;;  %v2901_v38 = vsel %vm2627_vm11, %v496_v5, 0.0  ;;  %v498_v44 = vmax.f32 %v468_v12, 0.0  ;;  %v469_v42 = vadd.f32 %v2363_v8, %v432_v61  ;;  %v2910_v48 = vsel %vm2617_vm12, %v497_v37, 0.0  ;;  %vm3415_vm12 = vmmov %vm3413_vm0  ;;  %v400_v37 = vld [vmem:[%s2837_s12 + $0x28] sm:$0x3] }
  0x4c   : > { %v715_v2 = vrot.slane %v2901_v38, 1  ;;  %v714_v27 = vsel %vm3413_vm0, %v711_v63, %v713_v30  ;;  %v755_v46 = vsel %vm3414_vm10, %v752_v0, %v754_v33  ;;  %v470_v55 = vadd.f32 %v2363_v8, %v433_v28  ;;  %vm3416_vm11 = vmmov %vm3413_vm0  ;;  %v397_v0 = vld [vmem:[%s2837_s12 + $0x10] sm:$0x3]  ;;  %v398_v28 = vld [vmem:[%s2837_s12 + $0x18] sm:$0xff] }
  0x4d   : > { %v2917_v6 = vpack.i.bf16 %v714_v27, %v712_v18  ;;  %v2919_v35 = vpack.i.bf16 %v755_v46, %v753_v24  ;;  %v639_v49 = vsel %vm2637_vm8, %v498_v44, 0.0  ;;  %v756_v47 = vrot.slane %v2901_v38, 2  ;;  %vm3417_vm8 = vmmov %vm3404_vm5  ;;  %v399_v33 = vld [vmem:[%s2837_s12 + $0x20] sm:$0xff] }
  0x4e   : > { %v716_v50 = vrot.slane %v2910_v48, 1  ;;  %v718_v41 = vrot.slane %v639_v49, 1  ;;  %v757_v54 = vrot.slane %v2910_v48, 2  ;;  %v759_v15 = vrot.slane %v639_v49, 2  ;;  %vm3421_vm5 = vmmov %vm3418_vm4 }
  0x4f   : > { %2008 = vrot.lane.b32.xlu1 %v2848_v25, %s2261_s17  ;;  %2003 = vrot.lane.b32.xlu0 %v2765_v14, %s2261_s17  ;;  %v499_v32 = vmax.f32 %v469_v42, 0.0  ;;  %v500_v63 = vmax.f32 %v470_v55, 0.0  ;;  %v749_v62 = vrot.slane %v2828_v11, 2  ;;  %v2937_v12 = vpack.i.bf16 %v709_v39, %v707_v43  ;;  %vm3425_vm6 = vmmov %vm3413_vm0 }
  0x50   : > { %v717_v61 = vsel %vm3415_vm12, %v715_v2, %v716_v50  ;;  %v719_v14 = vsel %vm3416_vm11, %v716_v50, %v718_v41  ;;  %v758_v5 = vsel %vm3417_vm8, %v756_v47, %v757_v54  ;;  %v760_v17 = vsel %vm3418_vm4, %v757_v54, %v759_v15 }
  0x51   : > { %v2934_v31 = vpack.i.bf16 %v719_v14, %v717_v61  ;;  %v640_v18 = vsel %vm2666_vm1, %v499_v32, 0.0  ;;  %vm3419_vm9 = vnez %v3376_v13  ;;  %v2945_v30 = vpack.i.bf16 %v760_v17, %v758_v5  ;;  %vm3420_vm1 = vmmov %vm3413_vm0 }
  0x52   : > { %v641_v24 = vsel %vm3419_vm9, %v500_v63, 0.0  ;;  %v434_v11 = vmul.f32 %v2356_v7, %v397_v0  ;;  %v764_v44 = vrot.slane %v640_v18, 1  ;;  %v769_v39 = vrot.slane %v640_v18, 2  ;;  %vm3426_vm0 = vmmov %vm3423_vm2 }
  0x53   : > { %2018 = vrot.lane.b32.xlu1 %v2856_v16, %s2262_s19  ;;  %2013 = vrot.lane.b32.xlu0 %v2811_v56, %s2262_s19  ;;  %v2947_v56 = vpack.i.bf16 %v641_v24, %v640_v18  ;;  %v765_v43 = vrot.slane %v641_v24, 1  ;;  %v770_v10 = vrot.slane %v641_v24, 2  ;;  %v435_v2 = vmul.f32 %v2356_v7, %v398_v28  ;;  %vm3429_vm10 = vmmov %vm3426_vm0 }
  0x54   : > { %v471_v13 = vadd.f32 %v2363_v8, %v434_v11  ;;  %v436_v27 = vmul.f32 %v2356_v7, %v399_v33  ;;  %v437_v46 = vmul.f32 %v2356_v7, %v400_v37  ;;  %v750_v50 = vsel %vm3423_vm2, %v747_v4, %v749_v62  ;;  %v2216_v7 = vld [vmem:[%s3328_s4 + $0x20] ss:$0 sps:$4 sm:$0xff]   ;;  %vm3430_vm12 = vmmov %vm3420_vm1 }
  0x55   : > { %v766_v42 = vsel %vm3420_vm1, %v764_v44, %v765_v43  ;;  %v771_v49 = vsel %vm3421_vm5, %v769_v39, %v770_v10  ;;  %v472_v47 = vadd.f32 %v2363_v8, %v435_v2  ;;  %vm3424_vm15 = vnez %v3380_v19  ;;  %vm3431_vm11 = vmmov %vm3426_vm0 }
  0x56   : > { %v501_v55 = vmax.f32 %v471_v13, 0.0  ;;  %v473_v41 = vadd.f32 %v2363_v8, %v436_v27  ;;  %v474_v54 = vadd.f32 %v2363_v8, %v437_v46  ;;  %vm1367_vm13 = vcmask 1043456  }
  0x57   : > { %2028 = vrot.lane.b32.xlu1 %v2852_v26, %s2258_s29  ;;  %2023 = vrot.lane.b32.xlu0 %v2845_v20, %s2258_s29  ;;  %v748_v20 = vsel %vm3422_vm14, %v746_v1, %v747_v4  ;;  %v502_v15 = vmax.f32 %v472_v47, 0.0  ;;  %v2077_v2 = vpack.i.bf16 %v2878_v9, %v2865_v45  ;;  %vm1171_vm8 = vcmask 64512  }
  0x58   : > { %v642_v1 = vsel %vm3424_vm15, %v501_v55, 0.0  ;;  %v503_v14 = vmax.f32 %v473_v41, 0.0  ;;  %v504_v32 = vmax.f32 %v474_v54, 0.0  ;;  %v2052_v63 = vpack.i.bf16 %v750_v50, %v748_v20  ;;  %1839 = vmatprep.subr.msk.bf16.mxu0 %vm1367_vm13, %v2216_v7  ;;  %1840 = vmatprep.subr.msk.bf16.mxu1 %vm1367_vm13, %v2216_v7 }
  0x59   : > { %v767_v61 = vrot.slane %v642_v1, 1  ;;  %v772_v4 = vrot.slane %v642_v1, 2  ;;  %v643_v8 = vsel %vm2704_vm3, %v502_v15, 0.0  ;;  %vm3427_vm3 = vnez %v3391_v40 }
  0x5a   : > { %v644_v5 = vsel %vm2685_vm7, %v503_v14, 0.0  ;;  %v777_v17 = vrot.slane %v643_v8, 1  ;;  %v782_v11 = vrot.slane %v643_v8, 2  ;;  %v645_v29 = vsel %vm3427_vm3, %v504_v32, 0.0  ;;  %vm3428_vm7 = vmmov %vm3420_vm1 }
  0x5b   : > { %2038 = vrot.lane.b32.xlu1 %v2937_v12, %s2263_s30  ;;  %2033 = vrot.lane.b32.xlu0 %v2848_v25, %s2263_s30  ;;  %v768_v0 = vsel %vm3425_vm6, %v765_v43, %v767_v61  ;;  %v773_v62 = vsel %vm3426_vm0, %v770_v10, %v772_v4  ;;  %v778_v18 = vrot.slane %v644_v5, 1  ;;  %v783_v24 = vrot.slane %v644_v5, 2 }
  0x5c   : > { %v2167_v19 = vpack.i.bf16 %v768_v0, %v766_v42  ;;  %v2177_v36 = vpack.i.bf16 %v773_v62, %v771_v49  ;;  %v2187_v28 = vpack.i.bf16 %v644_v5, %v643_v8  ;;  %v780_v37 = vrot.slane %v645_v29, 1 }
  0x5d   : > { %v779_v33 = vsel %vm3428_vm7, %v777_v17, %v778_v18  ;;  %v785_v44 = vrot.slane %v645_v29, 2  ;;  %v784_v43 = vsel %vm3429_vm10, %v782_v11, %v783_v24  ;;  %vm1188_vm4 = vcmask 130048  }
  0x5e   : > { %v781_v39 = vsel %vm3430_vm12, %v778_v18, %v780_v37  ;;  %vm1205_vm9 = vcmask 195584   ;;  %vm1222_vm1 = vcmask 261120   ;;  %vm1239_vm5 = vcmask 326656  }
  0x5f   : > { %2048 = vrot.lane.b32.xlu1 %v2848_v25, %s2260_s11  ;;  %2043 = vrot.lane.b32.xlu0 %v2856_v16, %s2264_s7  ;;  %v1369_v25 = vsel %vm1367_vm13, %v2216_v7, 0  ;;  %v786_v13 = vsel %vm3431_vm11, %v783_v24, %v785_v44  ;;  %v2197_v10 = vpack.i.bf16 %v781_v39, %v779_v33  ;;  %vm1256_vm14 = vcmask 392192  }
  0x60   : > { %v2207_v40 = vpack.i.bf16 %v786_v13, %v784_v43  ;;  %1812 = vmatpush3.bf16.msra.mxu0 %v1369_v25  ;;  %1838 = vmatpush3.bf16.msra.mxu1 %v1369_v25  ;;  %vm1273_vm2 = vcmask 457728   ;;  %vm1290_vm15 = vcmask 523264   ;;  %vm1342_vm13 = vcmask 588800  }
  0x61   : > { %vm1558_vm6 = vcmask 1040384   ;;  %vm1560_vm0 = vcmask 58368  }
  0x63   : > { %2058 = vrot.lane.b32.xlu1 %v2937_v12, %s2260_s11  ;;  %2053 = vrot.lane.b32.xlu0 %v2052_v63, %s2264_s7 }
  0x67   : > { %2068 = vrot.lane.b32.xlu1 %v2052_v63, %s2259_s10  ;;  %2063 = vrot.lane.b32.xlu0 %v2856_v16, %s2259_s10  ;;  %v2107_v16 = vpack.i.bf16 %v2910_v48, %v2901_v38 }
  0x6b   : > { %2078 = vrot.lane.b32.xlu1 %v2077_v2, %s2257_s18  ;;  %2073 = vrot.lane.b32.xlu0 %v2852_v26, %s2257_s18 }
  0x6f   : > { %2088 = vrot.lane.b32.xlu1 %v2917_v6, %s2261_s17  ;;  %2083 = vrot.lane.b32.xlu0 %v2937_v12, %s2261_s17 }
  0x73   : > { %2098 = vrot.lane.b32.xlu1 %v2919_v35, %s2262_s19  ;;  %2093 = vrot.lane.b32.xlu0 %v2052_v63, %s2262_s19 }
  0x77   : > { %2108 = vrot.lane.b32.xlu1 %v2107_v16, %s2258_s29  ;;  %2103 = vrot.lane.b32.xlu0 %v2077_v2, %s2258_s29 }
  0x7b   : > { %2118 = vrot.lane.b32.xlu1 %v2934_v31, %s2263_s30  ;;  %2113 = vrot.lane.b32.xlu0 %v2917_v6, %s2263_s30 }
  0x7f   : > { %2128 = vrot.lane.b32.xlu1 %v2917_v6, %s2260_s11  ;;  %2123 = vrot.lane.b32.xlu0 %v2919_v35, %s2264_s7 }
  0x83   : > { %2138 = vrot.lane.b32.xlu1 %v2934_v31, %s2260_s11  ;;  %2133 = vrot.lane.b32.xlu0 %v2945_v30, %s2264_s7 }
  0x87   : > { %2148 = vrot.lane.b32.xlu1 %v2945_v30, %s2259_s10  ;;  %2143 = vrot.lane.b32.xlu0 %v2919_v35, %s2259_s10 }
  0x8b   : > { %2158 = vrot.lane.b32.xlu1 %v2947_v56, %s2257_s18  ;;  %2153 = vrot.lane.b32.xlu0 %v2107_v16, %s2257_s18  ;;  %s1758_s18 = sshll.u32 %s3447_s28, 1  ;;  %s1761_s28 = sshll.u32 %s3443_s22, 1 }
  0x8f   : > { %2168 = vrot.lane.b32.xlu1 %v2167_v19, %s2261_s17  ;;  %2163 = vrot.lane.b32.xlu0 %v2934_v31, %s2261_s17 }
  0x93   : > { %2178 = vrot.lane.b32.xlu1 %v2177_v36, %s2262_s19  ;;  %2173 = vrot.lane.b32.xlu0 %v2945_v30, %s2262_s19  ;;  %s367_s19 = sadd.s32 %s1761_s28, %s3449_s21 }
  0x94   : > { %v1899_v26 = vpop.permute.xlu1 %1898 }
  0x95   : > { %v1894_v6 = vpop.permute.xlu0 %1893  ;;  %v1901_v17 = vunpack.i.h.bf16 %v1899_v26 }
  0x96   : > { %v1896_v14 = vunpack.i.h.bf16 %v1894_v6  ;;  %v1895_v32 = vunpack.i.l.bf16 %v1894_v6 }
  0x97   : > { %2188 = vrot.lane.b32.xlu1 %v2187_v28, %s2258_s29  ;;  %2183 = vrot.lane.b32.xlu0 %v2947_v56, %s2258_s29  ;;  %s1759_s29 = sshll.u32 %s3443_s22, 5 }
  0x98   : > { %v3051_v35 = vpop.permute.xlu1 %1908  ;;  %s358_s10 = sadd.s32 %s1759_s29, %s1758_s18 }
  0x99   : > { %v3053_v12 = vpop.permute.xlu0 %1903  ;;  %s1760_s11 = sshll.u32 %s358_s10, 3 }
  0x9a   : > { %v1905_v6 = vunpack.i.l.bf16 %v3053_v12  ;;  %s3237_s17 = scalar_lea.vmem %s3329_s5, %s1760_s11 }
  0x9b   : > { %2198 = vrot.lane.b32.xlu1 %v2197_v10, %s2263_s30  ;;  %2193 = vrot.lane.b32.xlu0 %v2167_v19, %s2263_s30  ;;  %v1900_v19 = vunpack.i.l.bf16 %v1899_v26  ;;  %v1906_v26 = vunpack.i.h.bf16 %v3053_v12  ;;  %s1762_s30 = sshll.u32 %s367_s19, 1 }
  0x9c   : > { %s369_s20 = scalar_lea.vmem %s3330_s6, %s1762_s30 }
  0x9d   : > { %v1924_v31 = vpop.permute.xlu1 %1923  ;;  %v1914_v42 = vpop.permute.xlu0 %1913 }
  0x9e   : > { %v1916_v46 = vunpack.i.h.bf16 %v1914_v42  ;;  %v1915_v55 = vunpack.i.l.bf16 %v1914_v42  ;;  %v1926_v47 = vunpack.i.h.bf16 %v1924_v31  ;;  %v1925_v20 = vunpack.i.l.bf16 %v1924_v31 }
  0x9f   : > { %2208 = vrot.lane.b32.xlu1 %v2207_v40, %s2264_s7  ;;  %2203 = vrot.lane.b32.xlu0 %v2177_v36, %s2264_s7 }
  0xa0   : > { %v1173_v54 = vsel %vm1171_vm8, %v2559_v21, %v1916_v46  ;;  %v1172_v7 = vsel %vm1171_vm8, %v2548_v22, %v1915_v55 }
  0xa1   : > { %v1929_v30 = vpop.permute.xlu1 %1928  ;;  %v1919_v27 = vpop.permute.xlu0 %1918  ;;  %v1190_v63 = vsel %vm1188_vm4, %v1173_v54, %v1926_v47  ;;  %v1189_v21 = vsel %vm1188_vm4, %v1172_v7, %v1925_v20  ;;  %v1911_v7 = vunpack.i.h.bf16 %v3051_v35 }
  0xa2   : > { %v1921_v56 = vunpack.i.h.bf16 %v1919_v27  ;;  %v1920_v49 = vunpack.i.l.bf16 %v1919_v27  ;;  %v1931_v1 = vunpack.i.h.bf16 %v1929_v30  ;;  %v1930_v15 = vunpack.i.l.bf16 %v1929_v30 }
  0xa3   : > { %v1206_v28 = vsel %vm1205_vm9, %v1189_v21, %v1895_v32  ;;  %v1207_v11 = vsel %vm1205_vm9, %v1190_v63, %v1896_v14 }
  0xa4   : > { %v1175_v61 = vsel %vm1171_vm8, %v2482_v57, %v1921_v56  ;;  %v1174_v4 = vsel %vm1171_vm8, %v2475_v53, %v1920_v49 }
  0xa5   : > { %v1939_v50 = vpop.permute.xlu1 %1938  ;;  %v1934_v41 = vpop.permute.xlu0 %1933  ;;  %v1192_v22 = vsel %vm1188_vm4, %v1175_v61, %v1931_v1  ;;  %v1191_v62 = vsel %vm1188_vm4, %v1174_v4, %v1930_v15  ;;  %v1910_v1 = vunpack.i.l.bf16 %v3051_v35 }
  0xa6   : > { %v1936_v5 = vunpack.i.h.bf16 %v1934_v41  ;;  %v1935_v57 = vunpack.i.l.bf16 %v1934_v41  ;;  %v1941_v18 = vunpack.i.h.bf16 %v1939_v50  ;;  %v1940_v24 = vunpack.i.l.bf16 %v1939_v50 }
  0xa7   : > { %v1208_v29 = vsel %vm1205_vm9, %v1191_v62, %v1900_v19  ;;  %v1209_v33 = vsel %vm1205_vm9, %v1192_v22, %v1901_v17 }
  0xa8   : > { %v1223_v39 = vsel %vm1222_vm1, %v1206_v28, %v1935_v57  ;;  %v1224_v13 = vsel %vm1222_vm1, %v1207_v11, %v1936_v5  ;;  %v1225_v31 = vsel %vm1222_vm1, %v1208_v29, %v1940_v24  ;;  %v1226_v42 = vsel %vm1222_vm1, %v1209_v33, %v1941_v18 }
  0xa9   : > { %v1949_v8 = vpop.permute.xlu1 %1948  ;;  %v1944_v0 = vpop.permute.xlu0 %1943 }
  0xaa   : > { %v1946_v53 = vunpack.i.h.bf16 %v1944_v0  ;;  %v1945_v36 = vunpack.i.l.bf16 %v1944_v0  ;;  %v1951_v37 = vunpack.i.h.bf16 %v1949_v8  ;;  %v1950_v44 = vunpack.i.l.bf16 %v1949_v8 }
  0xac   : > { %v1240_v10 = vsel %vm1239_vm5, %v1223_v39, %v1945_v36  ;;  %v1241_v40 = vsel %vm1239_vm5, %v1224_v13, %v1946_v53  ;;  %v1242_v30 = vsel %vm1239_vm5, %v1225_v31, %v1950_v44  ;;  %v1243_v27 = vsel %vm1239_vm5, %v1226_v42, %v1951_v37 }
  0xad   : > { %v1959_v43 = vpop.permute.xlu1 %1958  ;;  %v1954_v25 = vpop.permute.xlu0 %1953  ;;  %v1257_v47 = vsel %vm1256_vm14, %v1240_v10, %v1905_v6  ;;  %v1258_v20 = vsel %vm1256_vm14, %v1241_v40, %v1906_v26  ;;  %v1259_v63 = vsel %vm1256_vm14, %v1242_v30, %v1910_v1  ;;  %v1260_v21 = vsel %vm1256_vm14, %v1243_v27, %v1911_v7 }
  0xae   : > { %v1956_v2 = vunpack.i.h.bf16 %v1954_v25  ;;  %v1955_v16 = vunpack.i.l.bf16 %v1954_v25  ;;  %v1961_v50 = vunpack.i.h.bf16 %v1959_v43  ;;  %v1960_v12 = vunpack.i.l.bf16 %v1959_v43 }
  0xb0   : > { %v1274_v41 = vsel %vm1273_vm2, %v1257_v47, %v1955_v16  ;;  %v1275_v54 = vsel %vm1273_vm2, %v1258_v20, %v1956_v2  ;;  %v1276_v22 = vsel %vm1273_vm2, %v1259_v63, %v1960_v12  ;;  %v1277_v62 = vsel %vm1273_vm2, %v1260_v21, %v1961_v50 }
  0xb1   : > { %v1969_v46 = vpop.permute.xlu1 %1968  ;;  %v1964_v55 = vpop.permute.xlu0 %1963 }
  0xb2   : > { %v1966_v56 = vunpack.i.h.bf16 %v1964_v55  ;;  %v1965_v49 = vunpack.i.l.bf16 %v1964_v55  ;;  %v1971_v37 = vunpack.i.h.bf16 %v1969_v46  ;;  %v1970_v44 = vunpack.i.l.bf16 %v1969_v46 }
  0xb4   : > { %v1291_v15 = vsel %vm1290_vm15, %v1274_v41, %v1965_v49  ;;  %v1292_v61 = vsel %vm1290_vm15, %v1275_v54, %v1966_v56  ;;  %v1177_v30 = vsel %vm1171_vm8, %v2471_v52, %v1971_v37  ;;  %v1176_v27 = vsel %vm1171_vm8, %v2467_v51, %v1970_v44 }
  0xb5   : > { %v1979_v4 = vpop.permute.xlu1 %1978  ;;  %v1974_v14 = vpop.permute.xlu0 %1973  ;;  %v1307_v32 = vpack.c.bf16 %v1292_v61, %v1291_v15 }
  0xb6   : > { %v1976_v8 = vunpack.i.h.bf16 %v1974_v14  ;;  %v1975_v0 = vunpack.i.l.bf16 %v1974_v14  ;;  %v1981_v29 = vunpack.i.h.bf16 %v1979_v4  ;;  %v1980_v33 = vunpack.i.l.bf16 %v1979_v4 }
  0xb7   : > { %1813 = vmatprep.mubr.msk.bf16.mxu0 %vm1342_vm13, %v1307_v32 }
  0xb8   : > { %v1293_v35 = vsel %vm1290_vm15, %v1276_v22, %v1975_v0  ;;  %v1294_v5 = vsel %vm1290_vm15, %v1277_v62, %v1976_v8  ;;  %v1179_v26 = vsel %vm1171_vm8, %v2496_v60, %v1981_v29  ;;  %v1178_v6 = vsel %vm1171_vm8, %v2486_v58, %v1980_v33 }
  0xb9   : > { %v1308_v57 = vpack.c.bf16 %v1294_v5, %v1293_v35  ;;  %v1989_v17 = vpop.permute.xlu1 %1988  ;;  %v1984_v19 = vpop.permute.xlu0 %1983 }
  0xba   : > { %v1991_v43 = vunpack.i.h.bf16 %v1989_v17  ;;  %v1990_v25 = vunpack.i.l.bf16 %v1989_v17  ;;  %v1986_v39 = vunpack.i.h.bf16 %v1984_v19  ;;  %v1985_v13 = vunpack.i.l.bf16 %v1984_v19 }
  0xbb   : > { %1814 = vmatmul.mubr.msk.bf16.vlgmr.msra.gmra.mrb[0].mxu0 %vm1342_vm13, %v1308_v57 }
  0xbc   : > { %v1195_v46 = vsel %vm1188_vm4, %v1178_v6, %v1990_v25  ;;  %v1196_v55 = vsel %vm1188_vm4, %v1179_v26, %v1991_v43  ;;  %v1194_v56 = vsel %vm1188_vm4, %v1177_v30, %v1986_v39  ;;  %v1193_v49 = vsel %vm1188_vm4, %v1176_v27, %v1985_v13 }
  0xbd   : > { %v1999_v53 = vpop.permute.xlu1 %1998  ;;  %v1994_v36 = vpop.permute.xlu0 %1993 }
  0xbe   : > { %v2001_v10 = vunpack.i.h.bf16 %v1999_v53  ;;  %v2000_v40 = vunpack.i.l.bf16 %v1999_v53  ;;  %v1996_v31 = vunpack.i.h.bf16 %v1994_v36  ;;  %v1995_v42 = vunpack.i.l.bf16 %v1994_v36 }
  0xc0   : > { %v1212_v58 = vsel %vm1205_vm9, %v1195_v46, %v2000_v40  ;;  %v1213_v20 = vsel %vm1205_vm9, %v1196_v55, %v2001_v10  ;;  %v1210_v51 = vsel %vm1205_vm9, %v1193_v49, %v1995_v42  ;;  %v1211_v54 = vsel %vm1205_vm9, %v1194_v56, %v1996_v31 }
  0xc1   : > { %v3101_v18 = vpop.permute.xlu1 %2008  ;;  %v2004_v24 = vpop.permute.xlu0 %2003 }
  0xc2   : > { %v2006_v60 = vunpack.i.h.bf16 %v2004_v24  ;;  %v2005_v47 = vunpack.i.l.bf16 %v2004_v24  ;;  %v2011_v15 = vunpack.i.h.bf16 %v3101_v18  ;;  %v2010_v61 = vunpack.i.l.bf16 %v3101_v18 }
  0xc4   : > { %v1227_v32 = vsel %vm1222_vm1, %v1210_v51, %v2005_v47  ;;  %v1228_v63 = vsel %vm1222_vm1, %v1211_v54, %v2006_v60  ;;  %v1229_v29 = vsel %vm1222_vm1, %v1212_v58, %v2010_v61  ;;  %v1230_v33 = vsel %vm1222_vm1, %v1213_v20, %v2011_v15 }
  0xc5   : > { %v3103_v28 = vpop.permute.xlu1 %2018  ;;  %v2014_v11 = vpop.permute.xlu0 %2013 }
  0xc6   : > { %v2016_v50 = vunpack.i.h.bf16 %v2014_v11  ;;  %v2015_v12 = vunpack.i.l.bf16 %v2014_v11  ;;  %v2021_v21 = vunpack.i.h.bf16 %v3103_v28  ;;  %v2020_v8 = vunpack.i.l.bf16 %v3103_v28 }
  0xc8   : > { %v1244_v0 = vsel %vm1239_vm5, %v1227_v32, %v2015_v12  ;;  %v1245_v22 = vsel %vm1239_vm5, %v1228_v63, %v2016_v50  ;;  %v1246_v43 = vsel %vm1239_vm5, %v1229_v29, %v2020_v8  ;;  %v1247_v25 = vsel %vm1239_vm5, %v1230_v33, %v2021_v21 }
  0xc9   : > { %v2029_v2 = vpop.permute.xlu1 %2028  ;;  %v2024_v16 = vpop.permute.xlu0 %2023 }
  0xca   : > { %v2026_v7 = vunpack.i.h.bf16 %v2024_v16  ;;  %v2025_v1 = vunpack.i.l.bf16 %v2024_v16  ;;  %v2031_v62 = vunpack.i.h.bf16 %v2029_v2  ;;  %v2030_v35 = vunpack.i.l.bf16 %v2029_v2 }
  0xcc   : > { %v1261_v17 = vsel %vm1256_vm14, %v1244_v0, %v2025_v1  ;;  %v1262_v19 = vsel %vm1256_vm14, %v1245_v22, %v2026_v7  ;;  %v1263_v40 = vsel %vm1256_vm14, %v1246_v43, %v2030_v35  ;;  %v1264_v2 = vsel %vm1256_vm14, %v1247_v25, %v2031_v62 }
  0xcd   : > { %v2039_v52 = vpop.permute.xlu1 %2038  ;;  %v2034_v41 = vpop.permute.xlu0 %2033 }
  0xce   : > { %v2036_v4 = vunpack.i.h.bf16 %v2034_v41  ;;  %v2035_v14 = vunpack.i.l.bf16 %v2034_v41  ;;  %v2041_v18 = vunpack.i.h.bf16 %v2039_v52  ;;  %v2040_v24 = vunpack.i.l.bf16 %v2039_v52 }
  0xd0   : > { %v1278_v11 = vsel %vm1273_vm2, %v1261_v17, %v2035_v14  ;;  %v1279_v28 = vsel %vm1273_vm2, %v1262_v19, %v2036_v4  ;;  %v1280_v6 = vsel %vm1273_vm2, %v1263_v40, %v2040_v24  ;;  %v1281_v31 = vsel %vm1273_vm2, %v1264_v2, %v2041_v18 }
  0xd1   : > { %v2049_v5 = vpop.permute.xlu1 %2048  ;;  %v2044_v57 = vpop.permute.xlu0 %2043 }
  0xd2   : > { %v2046_v53 = vunpack.i.h.bf16 %v2044_v57  ;;  %v2045_v36 = vunpack.i.l.bf16 %v2044_v57  ;;  %v2051_v52 = vunpack.i.h.bf16 %v2049_v5  ;;  %v2050_v41 = vunpack.i.l.bf16 %v2049_v5 }
  0xd4   : > { %v1295_v37 = vsel %vm1290_vm15, %v1278_v11, %v2045_v36  ;;  %v1296_v44 = vsel %vm1290_vm15, %v1279_v28, %v2046_v53  ;;  %v1181_v0 = vsel %vm1171_vm8, %v2787_v34, %v2051_v52  ;;  %v1180_v22 = vsel %vm1171_vm8, %v2783_v23, %v2050_v41 }
  0xd5   : > { %v1309_v39 = vpack.c.bf16 %v1296_v44, %v1295_v37  ;;  %v2059_v13 = vpop.permute.xlu1 %2058  ;;  %v2054_v10 = vpop.permute.xlu0 %2053 }
  0xd6   : > { %v2056_v16 = vunpack.i.h.bf16 %v2054_v10  ;;  %v2055_v26 = vunpack.i.l.bf16 %v2054_v10  ;;  %v2061_v50 = vunpack.i.h.bf16 %v2059_v13  ;;  %v2060_v12 = vunpack.i.l.bf16 %v2059_v13 }
  0xd7   : > { %1817 = vmatprep.mubr.msk.bf16.mxu0 %vm1342_vm13, %v1309_v39 }
  0xd8   : > { %v1298_v42 = vsel %vm1290_vm15, %v1281_v31, %v2056_v16  ;;  %v1297_v30 = vsel %vm1290_vm15, %v1280_v6, %v2055_v26  ;;  %v1183_v32 = vsel %vm1171_vm8, %v2815_v59, %v2061_v50  ;;  %v1182_v63 = vsel %vm1171_vm8, %v2805_v3, %v2060_v12 }
  0xd9   : > { %v1310_v27 = vpack.c.bf16 %v1298_v42, %v1297_v30  ;;  %v2069_v46 = vpop.permute.xlu1 %2068  ;;  %v2064_v55 = vpop.permute.xlu0 %2063 }
  0xda   : > { %v2071_v51 = vunpack.i.h.bf16 %v2069_v46  ;;  %v2070_v54 = vunpack.i.l.bf16 %v2069_v46  ;;  %v2066_v7 = vunpack.i.h.bf16 %v2064_v55  ;;  %v2065_v1 = vunpack.i.l.bf16 %v2064_v55 }
  0xdb   : > { %1818 = vmatmul.mubr.msk.bf16.gmra.mrb[4].mxu0 %vm1342_vm13, %v1310_v27 }
  0xdc   : > { %v1199_v62 = vsel %vm1188_vm4, %v1182_v63, %v2070_v54  ;;  %v1200_v35 = vsel %vm1188_vm4, %v1183_v32, %v2071_v51  ;;  %v1198_v5 = vsel %vm1188_vm4, %v1181_v0, %v2066_v7  ;;  %v1197_v57 = vsel %vm1188_vm4, %v1180_v22, %v2065_v1 }
  0xdd   : > { %v2079_v56 = vpop.permute.xlu1 %2078  ;;  %v2074_v49 = vpop.permute.xlu0 %2073 }
  0xde   : > { %v2081_v15 = vunpack.i.h.bf16 %v2079_v56  ;;  %v2080_v61 = vunpack.i.l.bf16 %v2079_v56  ;;  %v2076_v21 = vunpack.i.h.bf16 %v2074_v49  ;;  %v2075_v8 = vunpack.i.l.bf16 %v2074_v49 }
  0xe0   : > { %v1216_v3 = vsel %vm1205_vm9, %v1199_v62, %v2080_v61  ;;  %v1217_v19 = vsel %vm1205_vm9, %v1200_v35, %v2081_v15  ;;  %v1214_v23 = vsel %vm1205_vm9, %v1197_v57, %v2075_v8  ;;  %v1215_v24 = vsel %vm1205_vm9, %v1198_v5, %v2076_v21 }
  0xe1   : > { %v3147_v60 = vpop.permute.xlu1 %2088  ;;  %v2084_v47 = vpop.permute.xlu0 %2083 }
  0xe2   : > { %v2086_v59 = vunpack.i.h.bf16 %v2084_v47  ;;  %v2085_v17 = vunpack.i.l.bf16 %v2084_v47  ;;  %v2091_v29 = vunpack.i.h.bf16 %v3147_v60  ;;  %v2090_v33 = vunpack.i.l.bf16 %v3147_v60 }
  0xe4   : > { %v1231_v43 = vsel %vm1222_vm1, %v1214_v23, %v2085_v17  ;;  %v1232_v25 = vsel %vm1222_vm1, %v1215_v24, %v2086_v59  ;;  %v1233_v60 = vsel %vm1222_vm1, %v1216_v3, %v2090_v33  ;;  %v1234_v47 = vsel %vm1222_vm1, %v1217_v19, %v2091_v29 }
  0xe5   : > { %v3149_v58 = vpop.permute.xlu1 %2098  ;;  %v2094_v20 = vpop.permute.xlu0 %2093 }
  0xe6   : > { %v2096_v53 = vunpack.i.h.bf16 %v2094_v20  ;;  %v2095_v36 = vunpack.i.l.bf16 %v2094_v20  ;;  %v2101_v39 = vunpack.i.h.bf16 %v3149_v58  ;;  %v2100_v13 = vunpack.i.l.bf16 %v3149_v58 }
  0xe8   : > { %v1248_v10 = vsel %vm1239_vm5, %v1231_v43, %v2095_v36  ;;  %v1249_v40 = vsel %vm1239_vm5, %v1232_v25, %v2096_v53  ;;  %v1250_v50 = vsel %vm1239_vm5, %v1233_v60, %v2100_v13  ;;  %v1251_v12 = vsel %vm1239_vm5, %v1234_v47, %v2101_v39 }
  0xe9   : > { %v2109_v4 = vpop.permute.xlu1 %2108  ;;  %v2104_v14 = vpop.permute.xlu0 %2103 }
  0xea   : > { %v2106_v11 = vunpack.i.h.bf16 %v2104_v14  ;;  %v2105_v28 = vunpack.i.l.bf16 %v2104_v14  ;;  %v2111_v2 = vunpack.i.h.bf16 %v2109_v4  ;;  %v2110_v16 = vunpack.i.l.bf16 %v2109_v4 }
  0xec   : > { %v1265_v31 = vsel %vm1256_vm14, %v1248_v10, %v2105_v28  ;;  %v1266_v42 = vsel %vm1256_vm14, %v1249_v40, %v2106_v11  ;;  %v1267_v54 = vsel %vm1256_vm14, %v1250_v50, %v2110_v16  ;;  %v1268_v7 = vsel %vm1256_vm14, %v1251_v12, %v2111_v2 }
  0xed   : > { %v2119_v34 = vpop.permute.xlu1 %2118  ;;  %v2114_v18 = vpop.permute.xlu0 %2113 }
  0xee   : > { %v2116_v37 = vunpack.i.h.bf16 %v2114_v18  ;;  %v2115_v44 = vunpack.i.l.bf16 %v2114_v18  ;;  %v2121_v46 = vunpack.i.h.bf16 %v2119_v34  ;;  %v2120_v55 = vunpack.i.l.bf16 %v2119_v34 }
  0xf0   : > { %v1282_v56 = vsel %vm1273_vm2, %v1265_v31, %v2115_v44  ;;  %v1283_v49 = vsel %vm1273_vm2, %v1266_v42, %v2116_v37  ;;  %v1284_v61 = vsel %vm1273_vm2, %v1267_v54, %v2120_v55  ;;  %v1285_v4 = vsel %vm1273_vm2, %v1268_v7, %v2121_v46 }
  0xf1   : > { %v2129_v26 = vpop.permute.xlu1 %2128  ;;  %v2124_v6 = vpop.permute.xlu0 %2123 }
  0xf2   : > { %v2126_v30 = vunpack.i.h.bf16 %v2124_v6  ;;  %v2125_v27 = vunpack.i.l.bf16 %v2124_v6  ;;  %v2131_v5 = vunpack.i.h.bf16 %v2129_v26  ;;  %v2130_v57 = vunpack.i.l.bf16 %v2129_v26 }
  0xf4   : > { %v1299_v58 = vsel %vm1290_vm15, %v1282_v56, %v2125_v27  ;;  %v1300_v20 = vsel %vm1290_vm15, %v1283_v49, %v2126_v30  ;;  %v1185_v29 = vsel %vm1171_vm8, %v2878_v9, %v2131_v5  ;;  %v1184_v33 = vsel %vm1171_vm8, %v2865_v45, %v2130_v57 }
  0xf5   : > { %v2139_v52 = vpop.permute.xlu1 %2138  ;;  %v2134_v41 = vpop.permute.xlu0 %2133  ;;  %v1311_v51 = vpack.c.bf16 %v1300_v20, %v1299_v58 }
  0xf6   : > { %v2136_v1 = vunpack.i.h.bf16 %v2134_v41  ;;  %v2135_v15 = vunpack.i.l.bf16 %v2134_v41  ;;  %v2141_v59 = vunpack.i.h.bf16 %v2139_v52  ;;  %v2140_v17 = vunpack.i.l.bf16 %v2139_v52 }
  0xf7   : > { %1821 = vmatprep.mubr.msk.bf16.mxu1 %vm1342_vm13, %v1311_v51 }
  0xf8   : > { %v1302_v14 = vsel %vm1290_vm15, %v1285_v4, %v2136_v1  ;;  %v1301_v32 = vsel %vm1290_vm15, %v1284_v61, %v2135_v15  ;;  %v1187_v37 = vsel %vm1171_vm8, %v2910_v48, %v2141_v59  ;;  %v1186_v44 = vsel %vm1171_vm8, %v2901_v38, %v2140_v17 }
  0xf9   : > { %v1312_v63 = vpack.c.bf16 %v1302_v14, %v1301_v32  ;;  %v2149_v21 = vpop.permute.xlu1 %2148  ;;  %v2144_v8 = vpop.permute.xlu0 %2143 }
  0xfa   : > { %v2151_v3 = vunpack.i.h.bf16 %v2149_v21  ;;  %v2150_v19 = vunpack.i.l.bf16 %v2149_v21  ;;  %v2146_v53 = vunpack.i.h.bf16 %v2144_v8  ;;  %v2145_v36 = vunpack.i.l.bf16 %v2144_v8 }
  0xfb   : > { %1822 = vmatmul.mubr.msk.bf16.vlgmr.msra.gmra.mrb[0].mxu1 %vm1342_vm13, %v1312_v63 }
  0xfc   : > { %v1203_v43 = vsel %vm1188_vm4, %v1186_v44, %v2150_v19  ;;  %v1204_v25 = vsel %vm1188_vm4, %v1187_v37, %v2151_v3  ;;  %v1202_v39 = vsel %vm1188_vm4, %v1185_v29, %v2146_v53  ;;  %v1201_v13 = vsel %vm1188_vm4, %v1184_v33, %v2145_v36 }
  0xfd   : > { %v2159_v0 = vpop.permute.xlu1 %2158  ;;  %v2154_v22 = vpop.permute.xlu0 %2153 }
  0xfe   : > { %v2161_v23 = vunpack.i.h.bf16 %v2159_v0  ;;  %v2160_v24 = vunpack.i.l.bf16 %v2159_v0  ;;  %v2156_v11 = vunpack.i.h.bf16 %v2154_v22  ;;  %v2155_v28 = vunpack.i.l.bf16 %v2154_v22 }
 0x100   : > { %v1220_v26 = vsel %vm1205_vm9, %v1203_v43, %v2160_v24  ;;  %v1221_v48 = vsel %vm1205_vm9, %v1204_v25, %v2161_v23  ;;  %v1218_v38 = vsel %vm1205_vm9, %v1201_v13, %v2155_v28  ;;  %v1219_v6 = vsel %vm1205_vm9, %v1202_v39, %v2156_v11 }
 0x101   : > { %v2169_v62 = vpop.permute.xlu1 %2168  ;;  %v2164_v35 = vpop.permute.xlu0 %2163 }
 0x102   : > { %v2171_v9 = vunpack.i.h.bf16 %v2169_v62  ;;  %v2170_v2 = vunpack.i.l.bf16 %v2169_v62  ;;  %v2166_v16 = vunpack.i.h.bf16 %v2164_v35  ;;  %v2165_v45 = vunpack.i.l.bf16 %v2164_v35 }
 0x104   : > { %v1237_v58 = vsel %vm1222_vm1, %v1220_v26, %v2170_v2  ;;  %v1238_v20 = vsel %vm1222_vm1, %v1221_v48, %v2171_v9  ;;  %v1235_v50 = vsel %vm1222_vm1, %v1218_v38, %v2165_v45  ;;  %v1236_v12 = vsel %vm1222_vm1, %v1219_v6, %v2166_v16 }
 0x105   : > { %v2179_v34 = vpop.permute.xlu1 %2178  ;;  %v2174_v18 = vpop.permute.xlu0 %2173 }
 0x106   : > { %v2181_v31 = vunpack.i.h.bf16 %v2179_v34  ;;  %v2180_v42 = vunpack.i.l.bf16 %v2179_v34  ;;  %v2176_v30 = vunpack.i.h.bf16 %v2174_v18  ;;  %v2175_v27 = vunpack.i.l.bf16 %v2174_v18 }
 0x108   : > { %v1254_v7 = vsel %vm1239_vm5, %v1237_v58, %v2180_v42  ;;  %v1255_v1 = vsel %vm1239_vm5, %v1238_v20, %v2181_v31  ;;  %v1252_v15 = vsel %vm1239_vm5, %v1235_v50, %v2175_v27  ;;  %v1253_v61 = vsel %vm1239_vm5, %v1236_v12, %v2176_v30 }
 0x109   : > { %v2189_v10 = vpop.permute.xlu1 %2188  ;;  %v2184_v40 = vpop.permute.xlu0 %2183 }
 0x10a   : > { %v2191_v46 = vunpack.i.h.bf16 %v2189_v10  ;;  %v2190_v55 = vunpack.i.l.bf16 %v2189_v10  ;;  %v2186_v56 = vunpack.i.h.bf16 %v2184_v40  ;;  %v2185_v49 = vunpack.i.l.bf16 %v2184_v40 }
 0x10c   : > { %v1271_v4 = vsel %vm1256_vm14, %v1254_v7, %v2190_v55  ;;  %v1272_v14 = vsel %vm1256_vm14, %v1255_v1, %v2191_v46  ;;  %v1269_v32 = vsel %vm1256_vm14, %v1252_v15, %v2185_v49  ;;  %v1270_v63 = vsel %vm1256_vm14, %v1253_v61, %v2186_v56 }
 0x10d   : > { %v2199_v60 = vpop.permute.xlu1 %2198  ;;  %v2194_v47 = vpop.permute.xlu0 %2193 }
 0x10e   : > { %v2201_v52 = vunpack.i.h.bf16 %v2199_v60  ;;  %v2200_v41 = vunpack.i.l.bf16 %v2199_v60  ;;  %v2196_v51 = vunpack.i.h.bf16 %v2194_v47  ;;  %v2195_v54 = vunpack.i.l.bf16 %v2194_v47 }
 0x110   : > { %v1288_v5 = vsel %vm1273_vm2, %v1271_v4, %v2200_v41  ;;  %v1289_v57 = vsel %vm1273_vm2, %v1272_v14, %v2201_v52  ;;  %v1286_v59 = vsel %vm1273_vm2, %v1269_v32, %v2195_v54  ;;  %v1287_v17 = vsel %vm1273_vm2, %v1270_v63, %v2196_v51 }
 0x111   : > { %v2209_v21 = vpop.permute.xlu1 %2208  ;;  %v2204_v8 = vpop.permute.xlu0 %2203 }
 0x112   : > { %v2211_v0 = vunpack.i.h.bf16 %v2209_v21  ;;  %v2210_v22 = vunpack.i.l.bf16 %v2209_v21  ;;  %v2206_v62 = vunpack.i.h.bf16 %v2204_v8  ;;  %v2205_v35 = vunpack.i.l.bf16 %v2204_v8 }
 0x114   : > { %v1305_v3 = vsel %vm1290_vm15, %v1288_v5, %v2210_v22  ;;  %v1306_v19 = vsel %vm1290_vm15, %v1289_v57, %v2211_v0  ;;  %v1303_v53 = vsel %vm1290_vm15, %v1286_v59, %v2205_v35  ;;  %v1304_v36 = vsel %vm1290_vm15, %v1287_v17, %v2206_v62 }
 0x115   : > { %v1314_v34 = vpack.c.bf16 %v1306_v19, %v1305_v3  ;;  %v1313_v18 = vpack.c.bf16 %v1304_v36, %v1303_v53 }
 0x117   : > { %1825 = vmatprep.mubr.msk.bf16.mxu1 %vm1342_vm13, %v1313_v18 }
 0x118   : > { %1826 = vmatmul.mubr.msk.bf16.gmra.mrb[4].mxu1 %vm1342_vm13, %v1314_v34 }
 0x18e   : > { %v1815_v23 = vpop.f32.mrb[0].mxu0 }
 0x18f   : > { %1564 = vst.msk [vmem:[%s3237_s17 + $0x10] sm:$0xff] %vm1171_vm8, %v1815_v23  ;;  %v1405_v24 = vpop.f32.mrb[1].mxu0  ;;  %v1507_v33 = vmul.f32 %v1815_v23, %v1815_v23  ;;  %v1471_v39 = vsel %vm1171_vm8, %v1815_v23, 0.0 }
 0x190   : > { %v1505_v11 = vmul.f32 %v1405_v24, %v1405_v24  ;;  %1562 = vst.msk [vmem:[%s3237_s17] sm:$0xff] %vm1171_vm8, %v1405_v24  ;;  %v1816_v28 = vpop.f32.mrb[2].mxu0  ;;  %v1468_v37 = vsel %vm1171_vm8, %v1405_v24, 0.0 }
 0x191   : > { %1565 = vst.msk [vmem:[%s3237_s17 + $0x18] sm:$0xff] %vm1171_vm8, %v1816_v28  ;;  %v1408_v29 = vpop.f32.mrb[3].mxu0  ;;  %v1508_v10 = vmul.f32 %v1816_v28, %v1816_v28  ;;  %v1524_v16 = vsel %vm1171_vm8, %v1507_v33, 0.0  ;;  %v1473_v45 = vsel %vm1171_vm8, %v1816_v28, 0.0 }
 0x192   : > { %v1469_v44 = vsel %vm1171_vm8, %v1408_v29, 0.0  ;;  %v1506_v43 = vmul.f32 %v1408_v29, %v1408_v29  ;;  %1563 = vst.msk [vmem:[%s3237_s17 + $0x8] sm:$0xff] %vm1171_vm8, %v1408_v29  ;;  %v1521_v13 = vsel %vm1171_vm8, %v1505_v11, 0.0 }
 0x193   : > { %v1470_v25 = vadd.f32 %v1469_v44, %v1468_v37  ;;  %v1526_v38 = vsel %vm1171_vm8, %v1508_v10, 0.0 }
 0x194   : > { %v1522_v40 = vsel %vm1171_vm8, %v1506_v43, 0.0 }
 0x195   : > { %v1472_v9 = vadd.f32 %v1471_v39, %v1470_v25  ;;  %v1523_v2 = vadd.f32 %v1522_v40, %v1521_v13 }
 0x197   : > { %v1525_v26 = vadd.f32 %v1524_v16, %v1523_v2  ;;  %v1474_v48 = vadd.f32 %v1473_v45, %v1472_v9 }
 0x199   : > { %v1527_v6 = vadd.f32 %v1526_v38, %v1525_v26 }
 0x1ae   : > { %v1819_v31 = vpop.f32.mrb[4].mxu0 }
 0x1af   : > { %1568 = vst.msk [vmem:[%s3237_s17 + $0x30] sm:$0xff] %vm1171_vm8, %v1819_v31  ;;  %v1421_v42 = vpop.f32.mrb[5].mxu0  ;;  %v1511_v49 = vmul.f32 %v1819_v31, %v1819_v31  ;;  %v1479_v12 = vsel %vm1171_vm8, %v1819_v31, 0.0 }
 0x1b0   : > { %v1475_v30 = vsel %vm1171_vm8, %v1421_v42, 0.0  ;;  %v1509_v27 = vmul.f32 %v1421_v42, %v1421_v42  ;;  %1566 = vst.msk [vmem:[%s3237_s17 + $0x20] sm:$0xff] %vm1171_vm8, %v1421_v42  ;;  %v1820_v46 = vpop.f32.mrb[6].mxu0 }
 0x1b1   : > { %v1476_v55 = vadd.f32 %v1475_v30, %v1474_v48  ;;  %1569 = vst.msk [vmem:[%s3237_s17 + $0x38] sm:$0xff] %vm1171_vm8, %v1820_v46  ;;  %v1424_v56 = vpop.f32.mrb[7].mxu0  ;;  %v1512_v52 = vmul.f32 %v1820_v46, %v1820_v46  ;;  %v1532_v7 = vsel %vm1171_vm8, %v1511_v49, 0.0  ;;  %v1481_v1 = vsel %vm1171_vm8, %v1820_v46, 0.0 }
 0x1b2   : > { %v1528_v60 = vsel %vm1171_vm8, %v1509_v27, 0.0  ;;  %v1477_v47 = vsel %vm1171_vm8, %v1424_v56, 0.0  ;;  %v1510_v58 = vmul.f32 %v1424_v56, %v1424_v56  ;;  %1567 = vst.msk [vmem:[%s3237_s17 + $0x28] sm:$0xff] %vm1171_vm8, %v1424_v56 }
 0x1b3   : > { %v1529_v20 = vadd.f32 %v1528_v60, %v1527_v6  ;;  %v1478_v50 = vadd.f32 %v1477_v47, %v1476_v55  ;;  %v1534_v4 = vsel %vm1171_vm8, %v1512_v52, 0.0 }
 0x1b4   : > { %v1530_v41 = vsel %vm1171_vm8, %v1510_v58, 0.0 }
 0x1b5   : > { %v1480_v51 = vadd.f32 %v1479_v12, %v1478_v50  ;;  %v1531_v54 = vadd.f32 %v1530_v41, %v1529_v20 }
 0x1b7   : > { %v1533_v15 = vadd.f32 %v1532_v7, %v1531_v54  ;;  %v1482_v61 = vadd.f32 %v1481_v1, %v1480_v51 }
 0x1b9   : > { %v1535_v14 = vadd.f32 %v1534_v4, %v1533_v15 }
 0x1ce   : > { %v1823_v32 = vpop.f32.mrb[0].mxu1 }
 0x1cf   : > { %1572 = vst.msk [vmem:[%s3237_s17 + $0x50] sm:$0xff] %vm1171_vm8, %v1823_v32  ;;  %v1437_v63 = vpop.f32.mrb[1].mxu1  ;;  %v1515_v35 = vmul.f32 %v1823_v32, %v1823_v32  ;;  %v1487_v19 = vsel %vm1171_vm8, %v1823_v32, 0.0 }
 0x1d0   : > { %v1483_v21 = vsel %vm1171_vm8, %v1437_v63, 0.0  ;;  %v1513_v8 = vmul.f32 %v1437_v63, %v1437_v63  ;;  %1570 = vst.msk [vmem:[%s3237_s17 + $0x40] sm:$0xff] %vm1171_vm8, %v1437_v63  ;;  %v1824_v0 = vpop.f32.mrb[2].mxu1 }
 0x1d1   : > { %v1484_v22 = vadd.f32 %v1483_v21, %v1482_v61  ;;  %1573 = vst.msk [vmem:[%s3237_s17 + $0x58] sm:$0xff] %vm1171_vm8, %v1824_v0  ;;  %v1440_v62 = vpop.f32.mrb[3].mxu1  ;;  %v1516_v53 = vmul.f32 %v1824_v0, %v1824_v0  ;;  %v1540_v23 = vsel %vm1171_vm8, %v1515_v35, 0.0  ;;  %v1489_v24 = vsel %vm1171_vm8, %v1824_v0, 0.0 }
 0x1d2   : > { %v1536_v5 = vsel %vm1171_vm8, %v1513_v8, 0.0  ;;  %v1485_v57 = vsel %vm1171_vm8, %v1440_v62, 0.0  ;;  %v1514_v59 = vmul.f32 %v1440_v62, %v1440_v62  ;;  %1571 = vst.msk [vmem:[%s3237_s17 + $0x48] sm:$0xff] %vm1171_vm8, %v1440_v62 }
 0x1d3   : > { %v1537_v17 = vadd.f32 %v1536_v5, %v1535_v14  ;;  %v1486_v3 = vadd.f32 %v1485_v57, %v1484_v22  ;;  %v1542_v29 = vsel %vm1171_vm8, %v1516_v53, 0.0 }
 0x1d4   : > { %v1538_v36 = vsel %vm1171_vm8, %v1514_v59, 0.0 }
 0x1d5   : > { %v1488_v34 = vadd.f32 %v1487_v19, %v1486_v3  ;;  %v1539_v18 = vadd.f32 %v1538_v36, %v1537_v17 }
 0x1d7   : > { %v1541_v11 = vadd.f32 %v1540_v23, %v1539_v18  ;;  %v1490_v28 = vadd.f32 %v1489_v24, %v1488_v34 }
 0x1d9   : > { %v1543_v33 = vadd.f32 %v1542_v29, %v1541_v11 }
 0x1eb   : > { %v1827_v37 = vpop.f32.mrb[4].mxu1 }
 0x1ec   : > { %1576 = vst.msk [vmem:[%s3237_s17 + $0x70] sm:$0xff] %vm1171_vm8, %v1827_v37  ;;  %v1453_v44 = vpop.f32.mrb[5].mxu1  ;;  %v1519_v40 = vmul.f32 %v1827_v37, %v1827_v37  ;;  %v1495_v48 = vsel %vm1171_vm8, %v1827_v37, 0.0 }
 0x1ed   : > { %v1491_v43 = vsel %vm1171_vm8, %v1453_v44, 0.0  ;;  %v1517_v25 = vmul.f32 %v1453_v44, %v1453_v44  ;;  %1574 = vst.msk [vmem:[%s3237_s17 + $0x60] sm:$0xff] %vm1171_vm8, %v1453_v44  ;;  %v1828_v39 = vpop.f32.mrb[6].mxu1 }
 0x1ee   : > { %v1492_v13 = vadd.f32 %v1491_v43, %v1490_v28  ;;  %1577 = vst.msk [vmem:[%s3237_s17 + $0x78] sm:$0xff] %vm1171_vm8, %v1828_v39  ;;  %v1456_v10 = vpop.f32.mrb[7].mxu1  ;;  %v1520_v38 = vmul.f32 %v1828_v39, %v1828_v39  ;;  %v1548_v30 = vsel %vm1171_vm8, %v1519_v40, 0.0  ;;  %v1497_v27 = vsel %vm1171_vm8, %v1828_v39, 0.0 }
 0x1ef   : > { %v1544_v9 = vsel %vm1171_vm8, %v1517_v25, 0.0  ;;  %v1493_v2 = vsel %vm1171_vm8, %v1456_v10, 0.0  ;;  %v1518_v16 = vmul.f32 %v1456_v10, %v1456_v10  ;;  %1575 = vst.msk [vmem:[%s3237_s17 + $0x68] sm:$0xff] %vm1171_vm8, %v1456_v10 }
 0x1f0   : > { %v1545_v45 = vadd.f32 %v1544_v9, %v1543_v33  ;;  %v1494_v26 = vadd.f32 %v1493_v2, %v1492_v13  ;;  %v1550_v56 = vsel %vm1171_vm8, %v1520_v38, 0.0 }
 0x1f1   : > { %v1546_v6 = vsel %vm1171_vm8, %v1518_v16, 0.0 }
 0x1f2   : > { %v1496_v31 = vadd.f32 %v1495_v48, %v1494_v26  ;;  %v1547_v42 = vadd.f32 %v1546_v6, %v1545_v45 }
 0x1f4   : > { %v1498_v46 = vadd.f32 %v1497_v27, %v1496_v31  ;;  %v1549_v55 = vadd.f32 %v1548_v30, %v1547_v42 }
 0x1f6   : > { %v1499_v49 = vrot.slane %v1498_v46, 4  ;;  %v1551_v60 = vadd.f32 %v1550_v56, %v1549_v55 }
 0x1f8   : > { %v1500_v47 = vadd.f32 %v1499_v49, %v1498_v46  ;;  %v1552_v58 = vrot.slane %v1551_v60, 4 }
 0x1fa   : > { %v1501_v20 = vrot.slane %v1500_v47, 2  ;;  %v1553_v50 = vadd.f32 %v1552_v58, %v1551_v60 }
 0x1fc   : > { %v1502_v12 = vadd.f32 %v1501_v20, %v1500_v47  ;;  %v1554_v52 = vrot.slane %v1553_v50, 2 }
 0x1fe   : > { %v1503_v41 = vrot.slane %v1502_v12, 1  ;;  %v1555_v51 = vadd.f32 %v1554_v52, %v1553_v50 }
 0x200   : > { %v1556_v54 = vrot.slane %v1555_v51, 1  ;;  %v1504_v7 = vadd.f32 %v1503_v41, %v1502_v12 }
 0x202   : > { %v1557_v1 = vadd.f32 %v1556_v54, %v1555_v51 }
 0x204   : > { %v1559_v15 = vsel %vm1558_vm6, %v1504_v7, %v1557_v1 }
 0x205   : > { %1561 = vst.msk [vmem:[%s369_s20] sm:$0x3] %vm1560_vm0, %v1559_v15 }
 0x206 PF: > { %s17_s25 = sadd.s32 1, %s2255_s25   ;;  %s3432_s21 = smov %s2247_s23 }
 0x207   : > { %p14_p10 = scmp.ge.s32.totalorder %s17_s25, 6   ;;  %s3433_s22 = smov %s2251_s24 }
 0x208   : > { %s3434_s23 = smov %s3437_s26  ;;  %s3435_s24 = smov %s3441_s27 }
 0x209   :  { %16 = sbr.rel (!%p14_p10) target bundleno = 3 (0x3), region = 85 }

// kernel: unet_conv_block.5
= control target key start
LH: loop header
LB: loop body
LE: loop exit
PB: predicated region body
PF: predicated region fallthrough
CT: control target
= control target key end

     0   :  { %s420_s12 = smov 0   ;;  %s422_s13 = smov 0   ;;  %s471_s0 = inlined_call_operand.vmem [shape: f32[2,16,128], index: 0, kind: input, shape index: {}]   ;;  %s472_s1 = inlined_call_operand.vmem [shape: f32[1,128], index: 1, kind: input, shape index: {}]   ;;  %s473_s2 = inlined_call_operand.vmem [shape: f32[1,128], index: 2, kind: input, shape index: {}]   ;;  %s474_s3 = inlined_call_operand.vmem [shape: f32[2,16,128], index: 3, kind: output, shape index: {}]  }
   0x1   :  { %s424_s14 = smov 0   ;;  %s426_s15 = smov 0  }
   0x2   :  { %s428_s16 = smov 0  }
   0x3 LB: > { %s22_s17 = sadd.s32 1, %s390_s14  ;;  %s25_s18 = sadd.s32 1, %s394_s15  ;;  %s398_s16 = sphi %s428_s16, %s13_s16   ;;  %s394_s15 = sphi %s426_s15, %s478_s15   ;;  %s390_s14 = sphi %s424_s14, %s477_s14   ;;  %s386_s13 = sphi %s422_s13, %s476_s13   ;;  %s382_s12 = sphi %s420_s12, %s475_s12  }
   0x4   : > { %p23_p0 = scmp.ge.s32.totalorder %s22_s17, 2  ;;  %p311_p1 = scmp.ge.s32.totalorder %s398_s16, 1 }
   0x5   : > { %p156_p2 = scmp.lt.s32.totalorder %s398_s16, 5 }
   0x6   : > { %s480_s17 = smov (%p23_p0, %s22_s17), 0  ;;  %s482_s18 = smov (!%p23_p0, %s25_s18), %s394_s15 }
   0x7   : > { %p157_p3 = pnand %p311_p1, %p156_p2  ;;  %p27_p4 = scmp.ge.s32.totalorder %s482_s18, 2 }
   0x8   : > { %p186_p5 = scmp.lt.s32.totalorder (!%p157_p3), %s386_s13, 1  ;;  %p188_p6 = scmp.lt.s32.totalorder (!%p157_p3), %s382_s12, 1  ;;  %v316_v0 = vld [vmem:[%s472_s1] ss:$0 sm:$0xff] (!%p157_p3) }
   0x9   : > { %s484_s18 = smov (%p27_p4, %s482_s18), 0  ;;  %160 = sbr.rel (%p157_p3) target bundleno = 29 (0x1d), region = 32 }
   0xa   : > { %v317_v2 = vld [vmem:[%s473_s2] ss:$0 sm:$0xff] (!%p157_p3) }
  0x10   : > { %s486_s13 = smov (!%p186_p5, %s386_s13), 1  ;;  %s488_s12 = smov (!%p188_p6, %s382_s12), 1 }
  0x11   : > { %s312_s19 = sshll.u32 %s486_s13, 1 }
  0x12   : > { %s191_s20 = sadd.s32 %s312_s19, %s488_s12 }
  0x13   : > { %s313_s21 = sshll.u32 %s191_s20, 3 }
  0x14   : > { %s193_s26 = scalar_lea.vmem %s471_s0, %s313_s21  ;;  %s201_s4 = scalar_lea.vmem %s474_s3, %s313_s21 }
  0x15   : > { %v202_v1 = vld [vmem:[%s193_s26] sm:$0xff] }
  0x16   : > { %v210_v3 = vmul.f32 %v316_v0, %v202_v1 }
  0x18   : > { %v218_v4 = vadd.f32 %v317_v2, %v210_v3 }
  0x1a   : > { %v219_v5 = vmax.f32 %v218_v4, 0.0 }
  0x1c   : > { %220 = vst [vmem:[%s201_s4] sm:$0xff] %v219_v5 }
  0x1d PF: > { %s13_s16 = sadd.s32 1, %s398_s16   ;;  %s475_s12 = smov %s390_s14 }
  0x1e   : > { %p10_p7 = scmp.ge.s32.totalorder %s13_s16, 6   ;;  %s476_s13 = smov %s394_s15 }
  0x1f   : > { %s477_s14 = smov %s480_s17  ;;  %s478_s15 = smov %s484_s18 }
  0x20   :  { %12 = sbr.rel (!%p10_p7) target bundleno = 3 (0x3), region = 62 }

</bundles_post_ra>
